<compile_context>
chip_gen: v7x
topology: tpu7x:2x2x1
jax: 0.10.0
libtpu: 0.0.40
codegen_flags: <defaults>
</compile_context>

<pallas_src>
import numpy as np
import jax
import jax.numpy as jnp
from jax.experimental import pallas as pl
from jax.experimental.pallas import tpu as pltpu


# ----------------------------------------------------------------------------
# Fused sequence kernel
# ----------------------------------------------------------------------------

def resegnn_seq_kernel(
    # scalar-prefetch graph structure (SMEM)
    edge_ent_ref,                 # (T, E) int32  entity index per edge (padded)
    edge_rel_ref,                 # (T, E) int32  relation row per edge (padded)
    n_edges_ref,                  # (T,)   int32  valid edge count per step
    # inputs
    dyn_hbm,                      # (N, d)  f32   initial h_e   (memory_space=ANY)
    embrel_hbm,                   # (2R, d) f32   initial h_r   (memory_space=ANY)
    invlen_ref,                   # (1, 2R, 1) f32  1/span_len per relation, this step
    rel_w_ref, rel_b_ref,         # (2d, 4d) bf16 / (1, 4d) f32  fused relation GRU
    ent_w_ref, ent_b_ref,         # (2d, 4d) bf16 / (1, 4d) f32  fused entity GRU
    e_gate_w_ref, e_gate_b_ref,   # (d, d) bf16 / (1, d) f32
    r_gate_w_ref, r_gate_b_ref,   # (d, d) bf16 / (1, d) f32
    # outputs
    hist_ref,                     # (1, N, d) f32   history[t]
    hr_out_ref,                   # (2R, d)   f32   final h_r (last step only)
    # scratch (persists across the T grid axis)
    he_carry,                     # (N, d)  f32
    hr_carry,                     # (2R, d) f32
    x_acc,                        # (2R, d) f32  segmented-sum accumulator
    init_sem,                     # DMA semaphores (2,)
):
    t = pl.program_id(0)
    d = e_gate_w_ref.shape[0]

    # t == 0: one-time DMA of the initial recurrent state into the VMEM carries.
    @pl.when(t == 0)
    def _init():
        cp_e = pltpu.make_async_copy(dyn_hbm, he_carry, init_sem.at[0])
        cp_r = pltpu.make_async_copy(embrel_hbm, hr_carry, init_sem.at[1])
        cp_e.start()
        cp_r.start()
        cp_e.wait()
        cp_r.wait()

    h_e = he_carry[...]                    # f32 (N, d)
    prev_r = hr_carry[...]                 # f32 (2R, d)
    h_e_bf = h_e.astype(jnp.bfloat16)      # hoisted; reused for both entity-GRU operands

    # 1) per-relation mean aggregation: gather active entity rows from the
    #    h_e carry and segment-sum them per relation (all f32), then scale by
    #    1/span_len.  Padding edges are never touched (dynamic trip count).
    x_acc[...] = jnp.zeros_like(x_acc)
    n_e = n_edges_ref[t]

    @pl.loop(0, n_e)
    def _edges(e):
        ent = edge_ent_ref[t, e]
        rel = edge_rel_ref[t, e]
        row = he_carry[pl.ds(ent, 1), :]                     # (1, d) f32
        x_acc[pl.ds(rel, 1), :] = x_acc[pl.ds(rel, 1), :] + row

    x_input = x_acc[...] * invlen_ref[0]                     # (2R, d) * (2R, 1)

    # Fused PyTorch nn.GRUCell (gate order r, z, n):
    #   [x|h] (m,2d) @ W (2d,4d) -> [rz_pre (2d) | i_n_pre (d) | h_n_pre (d)]
    # where the n-gate columns are block-diag(W_in, W_hn).
    def gru_fused(xh_bf, h_f32, w_ref, b_ref):
        g = jnp.dot(xh_bf, w_ref[...],
                    preferred_element_type=jnp.float32) + b_ref[...]
        rz = jax.nn.sigmoid(g[:, :2 * d])
        r = rz[:, :d]
        z = rz[:, d:]
        n = jnp.tanh(g[:, 2 * d:3 * d] + r * g[:, 3 * d:])
        return (1.0 - z) * n + z * h_f32                     # f32

    # 2) relation GRU
    xh_rel = jnp.concatenate(
        [x_input.astype(jnp.bfloat16), prev_r.astype(jnp.bfloat16)], axis=-1)
    current_r = gru_fused(xh_rel, prev_r, rel_w_ref, rel_b_ref)

    # TODO(synk): SEGNN encoder source not provided; identity pass-through.
    current_h = h_e

    # 3) entity GRU (x == h == h_e -> reuse the hoisted bf16 cast)
    xh_ent = jnp.concatenate([h_e_bf, h_e_bf], axis=-1)
    h_e_gru = gru_fused(xh_ent, h_e, ent_w_ref, ent_b_ref)

    # 4) e_time gate: w = sigmoid(h_e_gru @ We + be); mix current_h / h_e_gru
    ew = jax.nn.sigmoid(
        jnp.dot(h_e_gru.astype(jnp.bfloat16), e_gate_w_ref[...],
                preferred_element_type=jnp.float32) + e_gate_b_ref[...])
    h_e_new = ew * current_h + (1.0 - ew) * h_e_gru

    # 5) r_time gate: w = sigmoid(current_r @ Wr + br); mix current_r / prev_r
    rw = jax.nn.sigmoid(
        jnp.dot(current_r.astype(jnp.bfloat16), r_gate_w_ref[...],
                preferred_element_type=jnp.float32) + r_gate_b_ref[...])
    h_r_new = rw * current_r + (1.0 - rw) * prev_r

    # carry + outputs
    he_carry[...] = h_e_new
    hr_carry[...] = h_r_new
    hist_ref[0] = h_e_new

    @pl.when(t == pl.num_programs(0) - 1)
    def _final():
        hr_out_ref[...] = h_r_new


# ----------------------------------------------------------------------------
# Parameter restructuring (fused GRU gate weights, bf16 matmul operands)
# ----------------------------------------------------------------------------

def prepare_kernel_inputs(params):
    d = params["dynamic_emb"].shape[1]

    def fuse_gru(prefix):
        w_ih_t = params[prefix + "_w_ih_t"]          # (d, 3d), gate order r, z, n
        w_hh_t = params[prefix + "_w_hh_t"]
        b_ih = params[prefix + "_b_ih"]
        b_hh = params[prefix + "_b_hh"]
        zero = jnp.zeros((d, d), jnp.float32)
        # columns: [rz (2d) | i_n (d) | h_n (d)], rows: [x part (d) | h part (d)]
        top = jnp.concatenate([w_ih_t[:, :2 * d], w_ih_t[:, 2 * d:], zero], axis=1)
        bot = jnp.concatenate([w_hh_t[:, :2 * d], zero, w_hh_t[:, 2 * d:]], axis=1)
        w = jnp.concatenate([top, bot], axis=0).astype(jnp.bfloat16)       # (2d, 4d)
        b = jnp.concatenate(
            [b_ih[:2 * d] + b_hh[:2 * d], b_ih[2 * d:], b_hh[2 * d:]]
        ).reshape(1, 4 * d).astype(jnp.float32)                            # (1, 4d)
        return w, b

    rel_w, rel_b = fuse_gru("rel")
    ent_w, ent_b = fuse_gru("ent")
    gates = (params["e_gate_w"].astype(jnp.bfloat16),
             params["e_gate_b"].reshape(1, d).astype(jnp.float32),
             params["r_gate_w"].astype(jnp.bfloat16),
             params["r_gate_b"].reshape(1, d).astype(jnp.float32))
    return (rel_w, rel_b, ent_w, ent_b) + gates


# ----------------------------------------------------------------------------
# Fused forward wrapper (one pallas_call for the whole graph sequence)
# ----------------------------------------------------------------------------

def resegnn_forward(edge_ent, edge_rel, n_edges, inv_len, params):
    """Padded edge lists + params -> RESEGNN.forward outputs.

    edge_ent/edge_rel: [T, E] int32, n_edges: [T] int32, inv_len: [T, 2R, 1] f32.
    Returns (history list of [N, d] f32, static_emb=None, h_r [2R, d] f32),
    mirroring RESEGNN.forward with layer_norm=False, use_static=False.
    """
    T, E = edge_ent.shape
    R2 = inv_len.shape[1]
    N, d = params["dynamic_emb"].shape
    weights = prepare_kernel_inputs(params)

    def const2d(shape):
        # TODO(synk): add pipeline_mode=pl.Buffered(1) for these constant-index
        # weight blocks once single-buffer mode is confirmed on the target jax
        # version (small VMEM saving at d=128).
        return pl.BlockSpec(shape, lambda t, *_: (0, 0))

    in_specs = [
        pl.BlockSpec(memory_space=pl.ANY),                   # dynamic_emb: DMA'd once at t==0
        pl.BlockSpec(memory_space=pl.ANY),                   # emb_rel:     DMA'd once at t==0
        pl.BlockSpec((1, R2, 1), lambda t, *_: (t, 0, 0)),   # 1/span_len per relation, per step
        const2d((2 * d, 4 * d)), const2d((1, 4 * d)),        # fused relation GRU
        const2d((2 * d, 4 * d)), const2d((1, 4 * d)),        # fused entity GRU
        const2d((d, d)), const2d((1, d)),                    # e_time gate
        const2d((d, d)), const2d((1, d)),                    # r_time gate
    ]
    out_specs = [
        pl.BlockSpec((1, N, d), lambda t, *_: (t, 0, 0)),    # history[t]
        pl.BlockSpec((R2, d), lambda t, *_: (0, 0)),         # final h_r
    ]
    out_shape = (jax.ShapeDtypeStruct((T, N, d), jnp.float32),
                 jax.ShapeDtypeStruct((R2, d), jnp.float32))

    # advisory cost estimate for XLA's scheduler
    flops = T * (16 * (N + R2) * d * d        # two fused (m,2d)@(2d,4d) GRU matmuls
                 + 2 * (N + R2) * d * d       # time gates
                 + 3 * E * d)                 # gather / segmented mean
    trans = T * 4 * d * (R2 + N)
    bytes_acc = int(T * E * 8 + T * 4 + T * R2 * 4          # graph structure
                    + (N + R2) * d * 4                      # initial embeddings
                    + 2 * (2 * d) * (4 * d) * 2             # fused GRU weights (bf16)
                    + 2 * d * d * 2                         # gate weights (bf16)
                    + T * N * d * 4 + R2 * d * 4)           # outputs

    history, h_r = pl.pallas_call(
        resegnn_seq_kernel,
        out_shape=out_shape,
        grid_spec=pltpu.PrefetchScalarGridSpec(
            num_scalar_prefetch=3,
            grid=(T,),
            in_specs=in_specs,
            out_specs=out_specs,
            scratch_shapes=[
                pltpu.VMEM((N, d), jnp.float32),     # h_e carry
                pltpu.VMEM((R2, d), jnp.float32),    # h_r carry
                pltpu.VMEM((R2, d), jnp.float32),    # segmented-sum accumulator
                pltpu.SemaphoreType.DMA((2,)),       # init-DMA semaphores
            ],
        ),
        compiler_params=pltpu.CompilerParams(
            dimension_semantics=("arbitrary",),      # sequential recurrence over T
        ),
        cost_estimate=pl.CostEstimate(
            flops=int(flops), transcendentals=int(trans),
            bytes_accessed=bytes_acc),
    )(
        edge_ent, edge_rel, n_edges,
        params["dynamic_emb"].astype(jnp.float32),
        params["emb_rel"].astype(jnp.float32),
        inv_len,
        *weights,
    )
    return [history[t] for t in range(T)], None, h_r


# ----------------------------------------------------------------------------
# Pure-JAX reference (canonical nn.GRUCell math, matmul dtype configurable)
# ----------------------------------------------------------------------------

def resegnn_forward_ref(edge_ent, edge_rel, n_edges, inv_len, params, matmul_dtype):
    N, d = params["dynamic_emb"].shape
    R2 = inv_len.shape[1]

    def mm(a, b):
        return jnp.dot(a.astype(matmul_dtype), b.astype(matmul_dtype),
                       preferred_element_type=jnp.float32)

    def gru(x, h, w_ih_t, w_hh_t, b_ih, b_hh):
        gi = mm(x, w_ih_t) + b_ih
        gh = mm(h, w_hh_t) + b_hh
        r = jax.nn.sigmoid(gi[:, :d] + gh[:, :d])
        z = jax.nn.sigmoid(gi[:, d:2 * d] + gh[:, d:2 * d])
        n = jnp.tanh(gi[:, 2 * d:] + r * gh[:, 2 * d:])
        return (1.0 - z) * n + z * h

    h_e = params["dynamic_emb"]
    h_r = None
    history = []
    T = edge_ent.shape[0]
    for i in range(T):
        n_e = int(n_edges[i])
        ent = edge_ent[i, :n_e]
        rel = edge_rel[i, :n_e]
        x_sum = jnp.zeros((R2, d), jnp.float32).at[rel].add(h_e[ent])
        x_input = x_sum * inv_len[i][:, None]
        prev_r = params["emb_rel"] if i == 0 else h_r
        current_r = gru(x_input, prev_r,
                        params["rel_w_ih_t"], params["rel_w_hh_t"],
                        params["rel_b_ih"], params["rel_b_hh"])
        current_h = h_e   # SEGNN identity pass-through (same as the kernel)
        h_e_gru = gru(current_h, h_e,
                      params["ent_w_ih_t"], params["ent_w_hh_t"],
                      params["ent_b_ih"], params["ent_b_hh"])
        ew = jax.nn.sigmoid(mm(h_e_gru, params["e_gate_w"]) + params["e_gate_b"])
        h_e = ew * current_h + (1.0 - ew) * h_e_gru
        rw = jax.nn.sigmoid(mm(current_r, params["r_gate_w"]) + params["r_gate_b"])
        h_r = rw * current_r + (1.0 - rw) * prev_r
        history.append(h_e)
    return history, None, h_r


# ----------------------------------------------------------------------------
# Deterministic setup
# ----------------------------------------------------------------------------

def xavier_normal(key, shape):
    fan_in, fan_out = shape[0], shape[1]
    std = np.sqrt(2.0 / (fan_in + fan_out))
    return std * jax.random.normal(key, shape, dtype=jnp.float32)


def make_params(key, num_ents, num_rels, h_dim):
    ks = jax.random.split(key, 12)
    lim = 1.0 / np.sqrt(h_dim)   # PyTorch GRUCell init range
    return {
        "dynamic_emb": jax.random.normal(ks[0], (num_ents, h_dim), jnp.float32),
        "emb_rel": xavier_normal(ks[1], (2 * num_rels, h_dim)),
        # GRUCell weights stored pre-transposed: [h_dim, 3*h_dim], gates r,z,n
        "rel_w_ih_t": jax.random.uniform(ks[2], (h_dim, 3 * h_dim), jnp.float32, -lim, lim),
        "rel_w_hh_t": jax.random.uniform(ks[3], (h_dim, 3 * h_dim), jnp.float32, -lim, lim),
        "rel_b_ih": jax.random.uniform(ks[4], (3 * h_dim,), jnp.float32, -lim, lim),
        "rel_b_hh": jax.random.uniform(ks[5], (3 * h_dim,), jnp.float32, -lim, lim),
        "ent_w_ih_t": jax.random.uniform(ks[6], (h_dim, 3 * h_dim), jnp.float32, -lim, lim),
        "ent_w_hh_t": jax.random.uniform(ks[7], (h_dim, 3 * h_dim), jnp.float32, -lim, lim),
        "ent_b_ih": jax.random.uniform(ks[8], (3 * h_dim,), jnp.float32, -lim, lim),
        "ent_b_hh": jax.random.uniform(ks[9], (3 * h_dim,), jnp.float32, -lim, lim),
        "e_gate_w": xavier_normal(ks[10], (h_dim, h_dim)) * np.sqrt(2.0),  # relu gain
        "e_gate_b": jnp.zeros((h_dim,), jnp.float32),
        "r_gate_w": xavier_normal(ks[11], (h_dim, h_dim)) * np.sqrt(2.0),
        "r_gate_b": jnp.zeros((h_dim,), jnp.float32),
    }


def make_graph_edges(key, num_ents, num_rels, n_active, span_len, e_max):
    """Encode (uniq_r, r_len, r_to_e) as padded edge lists + per-relation 1/len."""
    k1, k2 = jax.random.split(key)
    uniq_r = np.asarray(jax.random.permutation(k1, 2 * num_rels))[:n_active]
    r_to_e = np.asarray(jax.random.randint(k2, (n_active * span_len,), 0, num_ents))
    edge_ent = np.zeros((e_max,), np.int32)
    edge_rel = np.zeros((e_max,), np.int32)
    inv_len = np.zeros((2 * num_rels,), np.float32)
    n_e = n_active * span_len
    edge_ent[:n_e] = r_to_e
    edge_rel[:n_e] = np.repeat(uniq_r, span_len)
    inv_len[uniq_r] = 1.0 / span_len
    return edge_ent, edge_rel, np.int32(n_e), inv_len


if __name__ == "__main__":
    num_ents, num_rels, h_dim = 256, 64, 128   # 2*num_rels = 128
    seq_len, e_max, span_len = 4, 64, 4
    n_active_per_step = [16, 14, 12, 16]       # varying -> exercises edge padding

    key = jax.random.PRNGKey(0)
    k_par, k_g = jax.random.split(key)
    params = make_params(k_par, num_ents, num_rels, h_dim)

    g_keys = jax.random.split(k_g, seq_len)
    ee, er, ne, il = [], [], [], []
    for i in range(seq_len):
        a, b, c, w = make_graph_edges(g_keys[i], num_ents, num_rels,
                                      n_active_per_step[i], span_len, e_max)
        ee.append(a); er.append(b); ne.append(c); il.append(w)
    edge_ent_np = np.stack(ee)
    edge_rel_np = np.stack(er)
    n_edges_np = np.asarray(ne, np.int32)
    inv_len_np = np.stack(il)

    edge_ent = jnp.asarray(edge_ent_np, jnp.int32)
    edge_rel = jnp.asarray(edge_rel_np, jnp.int32)
    n_edges = jnp.asarray(n_edges_np, jnp.int32)
    inv_len = jnp.asarray(inv_len_np, jnp.float32).reshape(seq_len, 2 * num_rels, 1)

    # Fused Pallas forward over the whole sequence
    history, static_emb, h_r = resegnn_forward(edge_ent, edge_rel, n_edges,
                                               inv_len, params)
    history, h_r = jax.block_until_ready((history, h_r))

    # Strict check vs a pure-JAX reference mirroring the bf16 matmul casts
    hist_bf, _, hr_bf = resegnn_forward_ref(edge_ent_np, edge_rel_np, n_edges_np,
                                            inv_len_np, params, jnp.bfloat16)
    # Loose sanity check vs the full-f32 canonical GRUCell reference
    hist_f32, _, hr_f32 = resegnn_forward_ref(edge_ent_np, edge_rel_np, n_edges_np,
                                              inv_len_np, params, jnp.float32)

    for t in range(seq_len):
        np.testing.assert_allclose(np.asarray(history[t]), np.asarray(hist_bf[t]),
                                   rtol=2e-3, atol=2e-3)
        np.testing.assert_allclose(np.asarray(history[t]), np.asarray(hist_f32[t]),
                                   rtol=1e-1, atol=1e-1)
    np.testing.assert_allclose(np.asarray(h_r), np.asarray(hr_bf), rtol=2e-3, atol=2e-3)
    np.testing.assert_allclose(np.asarray(h_r), np.asarray(hr_f32), rtol=1e-1, atol=1e-1)

    assert len(history) == seq_len
    assert history[-1].shape == (num_ents, h_dim)
    assert h_r.shape == (2 * num_rels, h_dim)
    print("KERNEL_OK")
</pallas_src>

<mosaic_0001>
module attributes {stable_mosaic.version = 11 : i64} {
  func.func @resegnn_seq_kernel(%arg0: i32, %arg1: memref<4x64xi32, #tpu.memory_space<smem>>, %arg2: memref<4x64xi32, #tpu.memory_space<smem>>, %arg3: memref<4xi32, #tpu.memory_space<smem>>, %arg4: memref<256x128xf32, #tpu.memory_space<any>>, %arg5: memref<128x128xf32, #tpu.memory_space<any>>, %arg6: memref<1x128x1xf32, #tpu.memory_space<vmem>>, %arg7: memref<256x512xbf16, #tpu.memory_space<vmem>>, %arg8: memref<1x512xf32, #tpu.memory_space<vmem>>, %arg9: memref<256x512xbf16, #tpu.memory_space<vmem>>, %arg10: memref<1x512xf32, #tpu.memory_space<vmem>>, %arg11: memref<128x128xbf16, #tpu.memory_space<vmem>>, %arg12: memref<1x128xf32, #tpu.memory_space<vmem>>, %arg13: memref<128x128xbf16, #tpu.memory_space<vmem>>, %arg14: memref<1x128xf32, #tpu.memory_space<vmem>>, %arg15: memref<1x256x128xf32, #tpu.memory_space<vmem>>, %arg16: memref<128x128xf32, #tpu.memory_space<vmem>>, %arg17: memref<256x128xf32, #tpu.memory_space<vmem>>, %arg18: memref<128x128xf32, #tpu.memory_space<vmem>>, %arg19: memref<128x128xf32, #tpu.memory_space<vmem>>, %arg20: memref<2x!tpu.dma_semaphore, #tpu.memory_space<semaphore_mem>>) attributes {dimension_semantics = [#tpu.dimension_semantics<arbitrary>], iteration_bounds = array<i64: 4>, scalar_prefetch = 3 : i64, scratch_operands = 4 : i64, tpu.core_type = #tpu.core_type<tc>, window_params = [{}, {}, {transform_indices = @transform_2, window_bounds = array<i64: 1, 128, 1>}, {pipeline_mode = #tpu.pipeline_mode<synchronous>, transform_indices = @transform_3, window_bounds = array<i64: 256, 512>}, {pipeline_mode = #tpu.pipeline_mode<synchronous>, transform_indices = @transform_4, window_bounds = array<i64: 1, 512>}, {pipeline_mode = #tpu.pipeline_mode<synchronous>, transform_indices = @transform_5, window_bounds = array<i64: 256, 512>}, {pipeline_mode = #tpu.pipeline_mode<synchronous>, transform_indices = @transform_6, window_bounds = array<i64: 1, 512>}, {pipeline_mode = #tpu.pipeline_mode<synchronous>, transform_indices = @transform_7, window_bounds = array<i64: 128, 128>}, {pipeline_mode = #tpu.pipeline_mode<synchronous>, transform_indices = @transform_8, window_bounds = array<i64: 1, 128>}, {pipeline_mode = #tpu.pipeline_mode<synchronous>, transform_indices = @transform_9, window_bounds = array<i64: 128, 128>}, {pipeline_mode = #tpu.pipeline_mode<synchronous>, transform_indices = @transform_10, window_bounds = array<i64: 1, 128>}, {transform_indices = @transform_11, window_bounds = array<i64: 1, 256, 128>}, {pipeline_mode = #tpu.pipeline_mode<synchronous>, transform_indices = @transform_12, window_bounds = array<i64: 128, 128>}]} {
    %c0_i32 = arith.constant 0 : i32
    %0 = arith.cmpi eq, %arg0, %c0_i32 : i32
    %1 = arith.extui %0 : i1 to i32
    %c0_i32_0 = arith.constant 0 : i32
    %2 = arith.cmpi ne, %1, %c0_i32_0 : i32
    scf.if %2 {
      %c0_i32_54 = arith.constant 0 : i32
      %111 = tpu.memref_slice %arg20[%c0_i32_54] : memref<2x!tpu.dma_semaphore, #tpu.memory_space<semaphore_mem>> -> memref<1x!tpu.dma_semaphore, #tpu.memory_space<semaphore_mem>>
      %112 = tpu.memref_squeeze %111 : memref<1x!tpu.dma_semaphore, #tpu.memory_space<semaphore_mem>> -> memref<!tpu.dma_semaphore, #tpu.memory_space<semaphore_mem>>
      tpu.enqueue_dma source(%arg4 : memref<256x128xf32, #tpu.memory_space<any>>) target(%arg17 : memref<256x128xf32, #tpu.memory_space<vmem>>) target_semaphore(%112 : memref<!tpu.dma_semaphore, #tpu.memory_space<semaphore_mem>>)
      %c1_i32_55 = arith.constant 1 : i32
      %113 = tpu.memref_slice %arg20[%c1_i32_55] : memref<2x!tpu.dma_semaphore, #tpu.memory_space<semaphore_mem>> -> memref<1x!tpu.dma_semaphore, #tpu.memory_space<semaphore_mem>>
      %114 = tpu.memref_squeeze %113 : memref<1x!tpu.dma_semaphore, #tpu.memory_space<semaphore_mem>> -> memref<!tpu.dma_semaphore, #tpu.memory_space<semaphore_mem>>
      tpu.enqueue_dma source(%arg5 : memref<128x128xf32, #tpu.memory_space<any>>) target(%arg18 : memref<128x128xf32, #tpu.memory_space<vmem>>) target_semaphore(%114 : memref<!tpu.dma_semaphore, #tpu.memory_space<semaphore_mem>>)
      %c0_i32_56 = arith.constant 0 : i32
      %115 = tpu.memref_slice %arg20[%c0_i32_56] : memref<2x!tpu.dma_semaphore, #tpu.memory_space<semaphore_mem>> -> memref<1x!tpu.dma_semaphore, #tpu.memory_space<semaphore_mem>>
      %116 = tpu.memref_squeeze %115 : memref<1x!tpu.dma_semaphore, #tpu.memory_space<semaphore_mem>> -> memref<!tpu.dma_semaphore, #tpu.memory_space<semaphore_mem>>
      tpu.wait_dma2 semaphore(%116 : memref<!tpu.dma_semaphore, #tpu.memory_space<semaphore_mem>>) src(%arg4 : memref<256x128xf32, #tpu.memory_space<any>>) dst(%arg17 : memref<256x128xf32, #tpu.memory_space<vmem>>)
      %c1_i32_57 = arith.constant 1 : i32
      %117 = tpu.memref_slice %arg20[%c1_i32_57] : memref<2x!tpu.dma_semaphore, #tpu.memory_space<semaphore_mem>> -> memref<1x!tpu.dma_semaphore, #tpu.memory_space<semaphore_mem>>
      %118 = tpu.memref_squeeze %117 : memref<1x!tpu.dma_semaphore, #tpu.memory_space<semaphore_mem>> -> memref<!tpu.dma_semaphore, #tpu.memory_space<semaphore_mem>>
      tpu.wait_dma2 semaphore(%118 : memref<!tpu.dma_semaphore, #tpu.memory_space<semaphore_mem>>) src(%arg5 : memref<128x128xf32, #tpu.memory_space<any>>) dst(%arg18 : memref<128x128xf32, #tpu.memory_space<vmem>>)
    } else {
    }
    %c0 = arith.constant 0 : index
    %c0_1 = arith.constant 0 : index
    %3 = vector.load %arg17[%c0, %c0_1] : memref<256x128xf32, #tpu.memory_space<vmem>>, vector<256x128xf32>
    %c0_2 = arith.constant 0 : index
    %c0_3 = arith.constant 0 : index
    %4 = vector.load %arg18[%c0_2, %c0_3] : memref<128x128xf32, #tpu.memory_space<vmem>>, vector<128x128xf32>
    %5 = arith.truncf %3 : vector<256x128xf32> to vector<256x128xbf16>
    %cst = arith.constant 0.000000e+00 : f32
    %6 = vector.broadcast %cst : f32 to vector<128x128xf32>
    %c0_4 = arith.constant 0 : index
    %c0_5 = arith.constant 0 : index
    %7 = vector.load %arg19[%c0_4, %c0_5] : memref<128x128xf32, #tpu.memory_space<vmem>>, vector<128x128xf32>
    tpu.vector_store %arg19[%c0_4, %c0_5], %6 {strides = array<i32>} : memref<128x128xf32, #tpu.memory_space<vmem>>, vector<128x128xf32>,
    %8 = arith.index_cast %arg0 : i32 to index
    %9 = memref.load %arg3[%8] : memref<4xi32, #tpu.memory_space<smem>>
    %c0_i32_6 = arith.constant 0 : i32
    %10 = arith.subi %9, %c0_i32_6 : i32
    %c1_i32 = arith.constant 1 : i32
    %c1_i32_7 = arith.constant 1 : i32
    %11 = arith.subi %c1_i32, %c1_i32_7 : i32
    %12 = arith.addi %10, %11 : i32
    %c1_i32_8 = arith.constant 1 : i32
    %13 = arith.divsi %12, %c1_i32_8 : i32
    %c1_i32_9 = arith.constant 1 : i32
    %c0_i32_10 = arith.constant 0 : i32
    %c0_i32_11 = arith.constant 0 : i32
    %14 = arith.subi %13, %c0_i32_11 : i32
    %15 = arith.addi %c0_i32_11, %14 : i32
    %c1_i32_12 = arith.constant 1 : i32
    scf.for %arg21 = %c0_i32_11 to %15 step %c1_i32_12  : i32 {
      %111 = arith.muli %arg21, %c1_i32_9 : i32
      %112 = arith.addi %c0_i32_10, %111 : i32
      %113 = arith.index_cast %arg0 : i32 to index
      %114 = arith.index_cast %112 : i32 to index
      %115 = memref.load %arg1[%113, %114] : memref<4x64xi32, #tpu.memory_space<smem>>
      %116 = arith.index_cast %arg0 : i32 to index
      %117 = arith.index_cast %112 : i32 to index
      %118 = memref.load %arg2[%116, %117] : memref<4x64xi32, #tpu.memory_space<smem>>
      %119 = arith.index_cast %115 : i32 to index
      %c0_54 = arith.constant 0 : index
      %120 = vector.load %arg17[%119, %c0_54] : memref<256x128xf32, #tpu.memory_space<vmem>>, vector<1x128xf32>
      %121 = arith.index_cast %118 : i32 to index
      %c0_55 = arith.constant 0 : index
      %122 = vector.load %arg19[%121, %c0_55] : memref<128x128xf32, #tpu.memory_space<vmem>>, vector<1x128xf32>
      %123 = arith.addf %122, %120 : vector<1x128xf32>
      %124 = arith.index_cast %118 : i32 to index
      %c0_56 = arith.constant 0 : index
      %125 = vector.load %arg19[%124, %c0_56] : memref<128x128xf32, #tpu.memory_space<vmem>>, vector<1x128xf32>
      tpu.vector_store %arg19[%124, %c0_56], %123 {strides = array<i32>} : memref<128x128xf32, #tpu.memory_space<vmem>>, vector<1x128xf32>,
    }
    %c0_13 = arith.constant 0 : index
    %c0_14 = arith.constant 0 : index
    %16 = vector.load %arg19[%c0_13, %c0_14] : memref<128x128xf32, #tpu.memory_space<vmem>>, vector<128x128xf32>
    %c0_15 = arith.constant 0 : index
    %c0_16 = arith.constant 0 : index
    %c0_17 = arith.constant 0 : index
    %17 = vector.load %arg6[%c0_15, %c0_16, %c0_17] : memref<1x128x1xf32, #tpu.memory_space<vmem>>, vector<1x128x1xf32>
    %18 = vector.shape_cast %17 : vector<1x128x1xf32> to vector<128x1xf32>
    %19 = vector.broadcast %18 : vector<128x1xf32> to vector<128x128xf32>
    %20 = arith.mulf %16, %19 : vector<128x128xf32>
    %21 = arith.truncf %20 : vector<128x128xf32> to vector<128x128xbf16>
    %22 = arith.truncf %4 : vector<128x128xf32> to vector<128x128xbf16>
    %23 = tpu.concatenate %21, %22 in 1 : vector<128x128xbf16>, vector<128x128xbf16> -> vector<128x256xbf16>
    %c0_18 = arith.constant 0 : index
    %c0_19 = arith.constant 0 : index
    %24 = vector.load %arg7[%c0_18, %c0_19] : memref<256x512xbf16, #tpu.memory_space<vmem>>, vector<256x512xbf16>
    %cst_20 = arith.constant dense<0.000000e+00> : vector<128x512xf32>
    %25 = tpu.matmul %23, %24, %cst_20 {dimension_numbers = #tpu.dot_dimension_numbers<[1], [0], [0], [1], [0, 0, 1, 1], [], []>} : vector<128x256xbf16>, vector<256x512xbf16>, vector<128x512xf32> -> vector<128x512xf32>
    %c0_21 = arith.constant 0 : index
    %c0_22 = arith.constant 0 : index
    %26 = vector.load %arg8[%c0_21, %c0_22] : memref<1x512xf32, #tpu.memory_space<vmem>>, vector<1x512xf32>
    %27 = vector.broadcast %26 : vector<1x512xf32> to vector<128x512xf32>
    %28 = arith.addf %25, %27 : vector<128x512xf32>
    %29 = vector.extract_strided_slice %28 {offsets = [0, 0], sizes = [128, 256], strides = [1, 1]} : vector<128x512xf32> to vector<128x256xf32>
    %30 = arith.negf %29 : vector<128x256xf32>
    %31 = math.exp %30 : vector<128x256xf32>
    %cst_23 = arith.constant 1.000000e+00 : f32
    %32 = vector.broadcast %cst_23 : f32 to vector<128x256xf32>
    %33 = arith.addf %32, %31 : vector<128x256xf32>
    %34 = arith.divf %32, %33 : vector<128x256xf32>
    %35 = vector.extract_strided_slice %34 {offsets = [0, 0], sizes = [128, 128], strides = [1, 1]} : vector<128x256xf32> to vector<128x128xf32>
    %36 = vector.extract_strided_slice %34 {offsets = [0, 128], sizes = [128, 128], strides = [1, 1]} : vector<128x256xf32> to vector<128x128xf32>
    %37 = vector.extract_strided_slice %28 {offsets = [0, 256], sizes = [128, 128], strides = [1, 1]} : vector<128x512xf32> to vector<128x128xf32>
    %38 = vector.extract_strided_slice %28 {offsets = [0, 384], sizes = [128, 128], strides = [1, 1]} : vector<128x512xf32> to vector<128x128xf32>
    %39 = arith.mulf %35, %38 : vector<128x128xf32>
    %40 = arith.addf %37, %39 : vector<128x128xf32>
    %41 = math.tanh %40 : vector<128x128xf32>
    %cst_24 = arith.constant 1.000000e+00 : f32
    %42 = vector.broadcast %cst_24 : f32 to vector<128x128xf32>
    %43 = arith.subf %42, %36 : vector<128x128xf32>
    %44 = arith.mulf %43, %41 : vector<128x128xf32>
    %45 = arith.mulf %36, %4 : vector<128x128xf32>
    %46 = arith.addf %44, %45 : vector<128x128xf32>
    %47 = tpu.concatenate %5, %5 in 1 : vector<256x128xbf16>, vector<256x128xbf16> -> vector<256x256xbf16>
    %c0_25 = arith.constant 0 : index
    %c0_26 = arith.constant 0 : index
    %48 = vector.load %arg9[%c0_25, %c0_26] : memref<256x512xbf16, #tpu.memory_space<vmem>>, vector<256x512xbf16>
    %cst_27 = arith.constant dense<0.000000e+00> : vector<256x512xf32>
    %49 = tpu.matmul %47, %48, %cst_27 {dimension_numbers = #tpu.dot_dimension_numbers<[1], [0], [0], [1], [0, 0, 1, 1], [], []>} : vector<256x256xbf16>, vector<256x512xbf16>, vector<256x512xf32> -> vector<256x512xf32>
    %c0_28 = arith.constant 0 : index
    %c0_29 = arith.constant 0 : index
    %50 = vector.load %arg10[%c0_28, %c0_29] : memref<1x512xf32, #tpu.memory_space<vmem>>, vector<1x512xf32>
    %51 = vector.broadcast %50 : vector<1x512xf32> to vector<256x512xf32>
    %52 = arith.addf %49, %51 : vector<256x512xf32>
    %53 = vector.extract_strided_slice %52 {offsets = [0, 0], sizes = [256, 256], strides = [1, 1]} : vector<256x512xf32> to vector<256x256xf32>
    %54 = arith.negf %53 : vector<256x256xf32>
    %55 = math.exp %54 : vector<256x256xf32>
    %cst_30 = arith.constant 1.000000e+00 : f32
    %56 = vector.broadcast %cst_30 : f32 to vector<256x256xf32>
    %57 = arith.addf %56, %55 : vector<256x256xf32>
    %58 = arith.divf %56, %57 : vector<256x256xf32>
    %59 = vector.extract_strided_slice %58 {offsets = [0, 0], sizes = [256, 128], strides = [1, 1]} : vector<256x256xf32> to vector<256x128xf32>
    %60 = vector.extract_strided_slice %58 {offsets = [0, 128], sizes = [256, 128], strides = [1, 1]} : vector<256x256xf32> to vector<256x128xf32>
    %61 = vector.extract_strided_slice %52 {offsets = [0, 256], sizes = [256, 128], strides = [1, 1]} : vector<256x512xf32> to vector<256x128xf32>
    %62 = vector.extract_strided_slice %52 {offsets = [0, 384], sizes = [256, 128], strides = [1, 1]} : vector<256x512xf32> to vector<256x128xf32>
    %63 = arith.mulf %59, %62 : vector<256x128xf32>
    %64 = arith.addf %61, %63 : vector<256x128xf32>
    %65 = math.tanh %64 : vector<256x128xf32>
    %cst_31 = arith.constant 1.000000e+00 : f32
    %66 = vector.broadcast %cst_31 : f32 to vector<256x128xf32>
    %67 = arith.subf %66, %60 : vector<256x128xf32>
    %68 = arith.mulf %67, %65 : vector<256x128xf32>
    %69 = arith.mulf %60, %3 : vector<256x128xf32>
    %70 = arith.addf %68, %69 : vector<256x128xf32>
    %71 = arith.truncf %70 : vector<256x128xf32> to vector<256x128xbf16>
    %c0_32 = arith.constant 0 : index
    %c0_33 = arith.constant 0 : index
    %72 = vector.load %arg11[%c0_32, %c0_33] : memref<128x128xbf16, #tpu.memory_space<vmem>>, vector<128x128xbf16>
    %cst_34 = arith.constant dense<0.000000e+00> : vector<256x128xf32>
    %73 = tpu.matmul %71, %72, %cst_34 {dimension_numbers = #tpu.dot_dimension_numbers<[1], [0], [0], [1], [0, 0, 1, 1], [], []>} : vector<256x128xbf16>, vector<128x128xbf16>, vector<256x128xf32> -> vector<256x128xf32>
    %c0_35 = arith.constant 0 : index
    %c0_36 = arith.constant 0 : index
    %74 = vector.load %arg12[%c0_35, %c0_36] : memref<1x128xf32, #tpu.memory_space<vmem>>, vector<1x128xf32>
    %75 = vector.broadcast %74 : vector<1x128xf32> to vector<256x128xf32>
    %76 = arith.addf %73, %75 : vector<256x128xf32>
    %77 = arith.negf %76 : vector<256x128xf32>
    %78 = math.exp %77 : vector<256x128xf32>
    %cst_37 = arith.constant 1.000000e+00 : f32
    %79 = vector.broadcast %cst_37 : f32 to vector<256x128xf32>
    %80 = arith.addf %79, %78 : vector<256x128xf32>
    %81 = arith.divf %79, %80 : vector<256x128xf32>
    %82 = arith.mulf %81, %3 : vector<256x128xf32>
    %cst_38 = arith.constant 1.000000e+00 : f32
    %83 = vector.broadcast %cst_38 : f32 to vector<256x128xf32>
    %84 = arith.subf %83, %81 : vector<256x128xf32>
    %85 = arith.mulf %84, %70 : vector<256x128xf32>
    %86 = arith.addf %82, %85 : vector<256x128xf32>
    %87 = arith.truncf %46 : vector<128x128xf32> to vector<128x128xbf16>
    %c0_39 = arith.constant 0 : index
    %c0_40 = arith.constant 0 : index
    %88 = vector.load %arg13[%c0_39, %c0_40] : memref<128x128xbf16, #tpu.memory_space<vmem>>, vector<128x128xbf16>
    %cst_41 = arith.constant dense<0.000000e+00> : vector<128x128xf32>
    %89 = tpu.matmul %87, %88, %cst_41 {dimension_numbers = #tpu.dot_dimension_numbers<[1], [0], [0], [1], [0, 0, 1, 1], [], []>} : vector<128x128xbf16>, vector<128x128xbf16>, vector<128x128xf32> -> vector<128x128xf32>
    %c0_42 = arith.constant 0 : index
    %c0_43 = arith.constant 0 : index
    %90 = vector.load %arg14[%c0_42, %c0_43] : memref<1x128xf32, #tpu.memory_space<vmem>>, vector<1x128xf32>
    %91 = vector.broadcast %90 : vector<1x128xf32> to vector<128x128xf32>
    %92 = arith.addf %89, %91 : vector<128x128xf32>
    %93 = arith.negf %92 : vector<128x128xf32>
    %94 = math.exp %93 : vector<128x128xf32>
    %cst_44 = arith.constant 1.000000e+00 : f32
    %95 = vector.broadcast %cst_44 : f32 to vector<128x128xf32>
    %96 = arith.addf %95, %94 : vector<128x128xf32>
    %97 = arith.divf %95, %96 : vector<128x128xf32>
    %98 = arith.mulf %97, %46 : vector<128x128xf32>
    %cst_45 = arith.constant 1.000000e+00 : f32
    %99 = vector.broadcast %cst_45 : f32 to vector<128x128xf32>
    %100 = arith.subf %99, %97 : vector<128x128xf32>
    %101 = arith.mulf %100, %4 : vector<128x128xf32>
    %102 = arith.addf %98, %101 : vector<128x128xf32>
    %c0_46 = arith.constant 0 : index
    %c0_47 = arith.constant 0 : index
    %103 = vector.load %arg17[%c0_46, %c0_47] : memref<256x128xf32, #tpu.memory_space<vmem>>, vector<256x128xf32>
    tpu.vector_store %arg17[%c0_46, %c0_47], %86 {strides = array<i32>} : memref<256x128xf32, #tpu.memory_space<vmem>>, vector<256x128xf32>,
    %c0_48 = arith.constant 0 : index
    %c0_49 = arith.constant 0 : index
    %104 = vector.load %arg18[%c0_48, %c0_49] : memref<128x128xf32, #tpu.memory_space<vmem>>, vector<128x128xf32>
    tpu.vector_store %arg18[%c0_48, %c0_49], %102 {strides = array<i32>} : memref<128x128xf32, #tpu.memory_space<vmem>>, vector<128x128xf32>,
    %c0_50 = arith.constant 0 : index
    %c0_51 = arith.constant 0 : index
    %c0_52 = arith.constant 0 : index
    %105 = vector.load %arg15[%c0_50, %c0_51, %c0_52] : memref<1x256x128xf32, #tpu.memory_space<vmem>>, vector<1x256x128xf32>
    %106 = vector.shape_cast %105 : vector<1x256x128xf32> to vector<256x128xf32>
    %107 = vector.shape_cast %86 : vector<256x128xf32> to vector<1x256x128xf32>
    tpu.vector_store %arg15[%c0_50, %c0_51, %c0_52], %107 {strides = array<i32>} : memref<1x256x128xf32, #tpu.memory_space<vmem>>, vector<1x256x128xf32>,
    %c3_i32 = arith.constant 3 : i32
    %108 = arith.cmpi eq, %arg0, %c3_i32 : i32
    %109 = arith.extui %108 : i1 to i32
    %c0_i32_53 = arith.constant 0 : i32
    %110 = arith.cmpi ne, %109, %c0_i32_53 : i32
    scf.if %110 {
      %c0_54 = arith.constant 0 : index
      %c0_55 = arith.constant 0 : index
      %111 = vector.load %arg16[%c0_54, %c0_55] : memref<128x128xf32, #tpu.memory_space<vmem>>, vector<128x128xf32>
      tpu.vector_store %arg16[%c0_54, %c0_55], %102 {strides = array<i32>} : memref<128x128xf32, #tpu.memory_space<vmem>>, vector<128x128xf32>,
    } else {
    }
    return
  }
  func.func @transform_2(%arg0: i32, %arg1: memref<4x64xi32, #tpu.memory_space<smem>>, %arg2: memref<4x64xi32, #tpu.memory_space<smem>>, %arg3: memref<4xi32, #tpu.memory_space<smem>>) -> (i32, i32, i32) {
    %c0_i32 = arith.constant 0 : i32
    %c0_i32_0 = arith.constant 0 : i32
    %c0_i32_1 = arith.constant 0 : i32
    return %arg0, %c0_i32, %c0_i32_0 : i32, i32, i32
  }
  func.func @transform_3(%arg0: i32, %arg1: memref<4x64xi32, #tpu.memory_space<smem>>, %arg2: memref<4x64xi32, #tpu.memory_space<smem>>, %arg3: memref<4xi32, #tpu.memory_space<smem>>) -> (i32, i32) {
    %c0_i32 = arith.constant 0 : i32
    %c0_i32_0 = arith.constant 0 : i32
    %c0_i32_1 = arith.constant 0 : i32
    return %c0_i32, %c0_i32_0 : i32, i32
  }
  func.func @transform_4(%arg0: i32, %arg1: memref<4x64xi32, #tpu.memory_space<smem>>, %arg2: memref<4x64xi32, #tpu.memory_space<smem>>, %arg3: memref<4xi32, #tpu.memory_space<smem>>) -> (i32, i32) {
    %c0_i32 = arith.constant 0 : i32
    %c0_i32_0 = arith.constant 0 : i32
    %c0_i32_1 = arith.constant 0 : i32
    return %c0_i32, %c0_i32_0 : i32, i32
  }
  func.func @transform_5(%arg0: i32, %arg1: memref<4x64xi32, #tpu.memory_space<smem>>, %arg2: memref<4x64xi32, #tpu.memory_space<smem>>, %arg3: memref<4xi32, #tpu.memory_space<smem>>) -> (i32, i32) {
    %c0_i32 = arith.constant 0 : i32
    %c0_i32_0 = arith.constant 0 : i32
    %c0_i32_1 = arith.constant 0 : i32
    return %c0_i32, %c0_i32_0 : i32, i32
  }
  func.func @transform_6(%arg0: i32, %arg1: memref<4x64xi32, #tpu.memory_space<smem>>, %arg2: memref<4x64xi32, #tpu.memory_space<smem>>, %arg3: memref<4xi32, #tpu.memory_space<smem>>) -> (i32, i32) {
    %c0_i32 = arith.constant 0 : i32
    %c0_i32_0 = arith.constant 0 : i32
    %c0_i32_1 = arith.constant 0 : i32
    return %c0_i32, %c0_i32_0 : i32, i32
  }
  func.func @transform_7(%arg0: i32, %arg1: memref<4x64xi32, #tpu.memory_space<smem>>, %arg2: memref<4x64xi32, #tpu.memory_space<smem>>, %arg3: memref<4xi32, #tpu.memory_space<smem>>) -> (i32, i32) {
    %c0_i32 = arith.constant 0 : i32
    %c0_i32_0 = arith.constant 0 : i32
    %c0_i32_1 = arith.constant 0 : i32
    return %c0_i32, %c0_i32_0 : i32, i32
  }
  func.func @transform_8(%arg0: i32, %arg1: memref<4x64xi32, #tpu.memory_space<smem>>, %arg2: memref<4x64xi32, #tpu.memory_space<smem>>, %arg3: memref<4xi32, #tpu.memory_space<smem>>) -> (i32, i32) {
    %c0_i32 = arith.constant 0 : i32
    %c0_i32_0 = arith.constant 0 : i32
    %c0_i32_1 = arith.constant 0 : i32
    return %c0_i32, %c0_i32_0 : i32, i32
  }
  func.func @transform_9(%arg0: i32, %arg1: memref<4x64xi32, #tpu.memory_space<smem>>, %arg2: memref<4x64xi32, #tpu.memory_space<smem>>, %arg3: memref<4xi32, #tpu.memory_space<smem>>) -> (i32, i32) {
    %c0_i32 = arith.constant 0 : i32
    %c0_i32_0 = arith.constant 0 : i32
    %c0_i32_1 = arith.constant 0 : i32
    return %c0_i32, %c0_i32_0 : i32, i32
  }
  func.func @transform_10(%arg0: i32, %arg1: memref<4x64xi32, #tpu.memory_space<smem>>, %arg2: memref<4x64xi32, #tpu.memory_space<smem>>, %arg3: memref<4xi32, #tpu.memory_space<smem>>) -> (i32, i32) {
    %c0_i32 = arith.constant 0 : i32
    %c0_i32_0 = arith.constant 0 : i32
    %c0_i32_1 = arith.constant 0 : i32
    return %c0_i32, %c0_i32_0 : i32, i32
  }
  func.func @transform_11(%arg0: i32, %arg1: memref<4x64xi32, #tpu.memory_space<smem>>, %arg2: memref<4x64xi32, #tpu.memory_space<smem>>, %arg3: memref<4xi32, #tpu.memory_space<smem>>) -> (i32, i32, i32) {
    %c0_i32 = arith.constant 0 : i32
    %c0_i32_0 = arith.constant 0 : i32
    %c0_i32_1 = arith.constant 0 : i32
    return %arg0, %c0_i32, %c0_i32_0 : i32, i32, i32
  }
  func.func @transform_12(%arg0: i32, %arg1: memref<4x64xi32, #tpu.memory_space<smem>>, %arg2: memref<4x64xi32, #tpu.memory_space<smem>>, %arg3: memref<4xi32, #tpu.memory_space<smem>>) -> (i32, i32) {
    %c0_i32 = arith.constant 0 : i32
    %c0_i32_0 = arith.constant 0 : i32
    %c0_i32_1 = arith.constant 0 : i32
    return %c0_i32, %c0_i32_0 : i32, i32
  }
}

</mosaic_0001>

<bundles_post_ra>
// kernel: tpu_custom_call.1
= control target key start
LH: loop header
LB: loop body
LE: loop exit
PB: predicated region body
PF: predicated region fallthrough
CT: control target
= control target key end

     0   :  { %s8039_s0 = inlined_call_operand.vmem [shape: s32[4,64], index: 0, kind: input, shape index: {}]   ;;  %s8040_s3 = inlined_call_operand.hbm [shape: f32[256,128], index: 3, kind: input, shape index: {}]   ;;  %s8041_s4 = inlined_call_operand.hbm [shape: f32[128,128], index: 4, kind: input, shape index: {}]   ;;  %s8042_s5 = inlined_call_operand.vmem [shape: f32[4,128,1], index: 5, kind: input, shape index: {}]   ;;  %s8043_s6 = inlined_call_operand.vmem [shape: bf16[256,512], index: 6, kind: input, shape index: {}]   ;;  %s8044_s7 = inlined_call_operand.vmem [shape: f32[1,512], index: 7, kind: input, shape index: {}]   ;;  %s8045_s8 = inlined_call_operand.hbm [shape: bf16[256,512], index: 8, kind: input, shape index: {}]   ;;  %s8046_s9 = inlined_call_operand.vmem [shape: f32[1,512], index: 9, kind: input, shape index: {}]   ;;  %s8047_s10 = inlined_call_operand.hbm [shape: bf16[128,128], index: 10, kind: input, shape index: {}]   ;;  %s8048_s11 = inlined_call_operand.vmem [shape: f32[1,128], index: 11, kind: input, shape index: {}]   ;;  %s8049_s12 = inlined_call_operand.hbm [shape: bf16[128,128], index: 12, kind: input, shape index: {}]   ;;  %s8050_s13 = inlined_call_operand.vmem [shape: f32[1,128], index: 13, kind: input, shape index: {}]   ;;  %s8051_s14 = inlined_call_operand.hbm [shape: f32[4,256,128], index: 14, kind: output, shape index: {0}]   ;;  %s8052_s15 = inlined_call_operand.hbm [shape: f32[128,128], index: 15, kind: output, shape index: {1}]   ;;  %s8053_s2 = inlined_call_operand.vmem [shape: s32[4], index: 2, kind: input, shape index: {}]   ;;  %s8054_s1 = inlined_call_operand.hbm [shape: s32[4,64], index: 1, kind: input, shape index: {}]  }
   0x1   :  { %8196 = sst [smem:[#allocation119_spill]] %s8047_s10  ;;  %s21_s20 = sshll.u32 %s8039_s0, 4  ;;  %s22_s20 = int_to_ptr.vmem [resolvable:$true] %s21_s20 }
   0x2   :  { %8197 = sst [smem:[#allocation120_spill]] %s8052_s15  ;;  %s27_s23 = sshll.u32 %s8053_s2, 4  ;;  %s28_s23 = int_to_ptr.vmem [resolvable:$true] %s27_s23 }
   0x3   :  { %s5613_s24 = scalar_lea.vmem %s22_s20, 64  ;;  %p5618_p1 = scmp.lt.s32.totalorder %s22_s20, %s22_s20 }
   0x4   :  { %p5614_p0 = scmp.ne.s32.totalorder %s22_s20, %s5613_s24  ;;  %p5619_p2 = scmp.lt.s32.totalorder %s5613_s24, %s5613_s24 }
   0x6   :  { %p5620_p3 = por %p5619_p2, %p5618_p1 }
   0x8   :  { %p5621_p4 = pnand %p5620_p3, %p5614_p0 }
   0xa   :  { %5624 = shalt.err (!%p5621_p4)  }
   0xb   :  { %s5903_s25 = smov [#allocation7]   ;;  %s5625_s28 = scalar_lea.hbm %s8054_s1, 64 }
   0xc   :  { %24 = dma.vmem_to_smem %s22_s20, 64, %s5903_s25, [#allocation6] }
   0xd   :  { %p5626_p5 = scmp.ne.s32.totalorder %s8054_s1, %s5625_s28  ;;  %p5629_p6 = scmp.lt.u32.totalorder %s5625_s28, %s8054_s1 }
   0xf   :  { %p5631_p7 = pnand %p5629_p6, %p5626_p5 }
  0x11   :  { %5634 = shalt.err (!%p5631_p7)  }
  0x12   :  { %s5904_s16 = smov [#allocation8]   ;;  %s5635_s19 = scalar_lea.vmem %s28_s23, 16 }
  0x13   :  { %26 = dma.hbm_to_smem %s8054_s1, 64, %s5904_s16, [#allocation6] }
  0x14   :  { %p5636_p8 = scmp.ne.s32.totalorder %s28_s23, %s5635_s19  ;;  %p5640_p9 = scmp.lt.s32.totalorder %s28_s23, %s28_s23 }
  0x15   :  { %p5641_p10 = scmp.lt.s32.totalorder %s5635_s19, %s5635_s19 }
  0x17   :  { %p5642_p11 = por %p5641_p10, %p5640_p9 }
  0x19   :  { %p5643_p12 = pnand %p5642_p11, %p5636_p8 }
  0x1b   :  { %5646 = shalt.err (!%p5643_p12)  }
  0x1c   :  { %s5905_s20 = smov [#allocation9]  }
  0x1d   :  { %30 = dma.vmem_to_smem %s28_s23, 16, %s5905_s20, [#allocation6] }
  0x1e   :  { %5857 = dma.done.wait [#allocation6], 144 }
  0x1f   :  { %5858 = vsyncadd [#allocation6], 4294967152 }
  0x20   :  { %32 = sfence }
  0x21   :  { %33 = vsyncpa [#allocation11], 0 }
  0x22   :  { %34 = vsyncpa [#allocation14], 0 }
  0x23   :  { %35 = vsyncpa [#allocation12], 0 }
  0x24   :  { %37 = vsyncpa [#allocation12 + $0x1], 0 }
  0x25   :  { %38 = vsyncpa [#allocation18], 0  ;;  %s6019_s21 = smov 0   ;;  %s6021_s1 = smov 0  }
  0x26   :  { %s6023_s22 = smov 0   ;;  %s6025_s24 = smov 0  }
  0x27 LB: > { %8198 = sst [smem:[#allocation32_spill]] %s5885_s21  ;;  %s6040_s23 = sadd.s32 4294967295, %s5897_s24   ;;  %s5897_s24 = sphi %s6025_s24, %s8446_s24   ;;  %s5893_s22 = sphi %s6023_s22, %s8448_s22   ;;  %s5889_s1 = sphi %s6021_s1, %s8450_s1   ;;  %s5885_s21 = sphi %s6019_s21, %s8449_s21  }
  0x28   : > { %8199 = sst [smem:[#allocation33_spill]] %s5893_s22  ;;  %s4189_s25 = sadd.s32 4294967294, %s5897_s24  }
  0x29   : > { %8200 = sst [smem:[#allocation34_spill]] %s5897_s24  ;;  %s6044_s26 = sadd.s32 1, %s5897_s24  }
  0x2a   : > { %8201 = sst [smem:[#allocation35_spill]] %s6044_s26  ;;  %s245_s27 = sadd.s32 1, %s5893_s22 }
  0x2b   : > { %s242_s28 = ssub.s32 %s5897_s24, %s6044_s26  ;;  %p255_p13 = scmp.ne.s32.totalorder %s5893_s22, %s5889_s1 }
  0x2c   : > { %p243_p0 = scmp.eq.s32.totalorder %s242_s28, 0  ;;  %p8058_p1 = scmp.eq.s32.totalorder %s6040_s23, 3 }
  0x2d   : > { %p261_p2 = scmp.ne.s32.totalorder %s5889_s1, %s5885_s21  ;;  %p262_p3 = scmp.eq.s32.totalorder %s4189_s25, 3 }
  0x2e   : > { %s6055_s0 = scalar_select %p243_p0, %s5893_s22, %s245_s27  }
  0x2f   : > { %p6059_p4 = por %p8058_p1, %p255_p13  ;;  %p6063_p5 = por %p262_p3, %p261_p2 }
  0x30   : > { %8202 = sst [smem:[#allocation36_spill]] %s6055_s0  ;;  %p4190_p6 = scmp.ge.s32.totalorder %s5897_s24, 1 }
  0x31   : > { %s8203_s29 = scalar_select %p6059_p4, 1, 0 }
  0x32   : > { %s8204_s2 = scalar_select %p6063_p5, 1, 0 }
  0x33   : > { %p290_p7 = scmp.lt.s32.totalorder %s5897_s24, 5  ;;  %p8059_p8 = scmp.eq.s32.totalorder %s6040_s23, 0 }
  0x34   : > { %8205 = sst [smem:[#allocation37_spill]] %s8204_s2  ;;  %s5906_s16 = smov [#allocation13]  }
  0x35   : > { %p6070_p9 = pnand %p4190_p6, %p290_p7  ;;  %s324_s17 = sshll.u32 %s5906_s16, 4  ;;  %s325_s17 = int_to_ptr.vmem [resolvable:$true] %s324_s17 }
  0x36   : > { %s5907_s19 = smov [#allocation10]   ;;  %s8208_s10 = sld [smem:[#allocation119_spill]] }
  0x37   : > { %s8206_s30 = scalar_select %p6070_p9, 1, 0 }
  0x38   : > { %p4650_p10 = pneg %p6070_p9  ;;  %s308_s20 = sshll.u32 %s5907_s19, 4  ;;  %s6082_s20 = int_to_ptr.vmem [resolvable:$true] %s308_s20 }
  0x3a   : > { %p6078_p11 = pnand %p8059_p8, %p4650_p10 }
  0x3c   : > { %s5647_s28 = scalar_lea.hbm %s8208_s10, 1024  ;;  %p6092_p13 = pneg %p6078_p11 }
  0x3d   : > { %p5648_p12 = scmp.ne.s32.totalorder %s8208_s10, %s5647_s28  ;;  %p5654_p3 = scmp.lt.u32.totalorder %s5647_s28, %s8208_s10 }
  0x3f   : > { %p5650_p0 = pnand %p6092_p13, %p5648_p12 }
  0x41   : > { %p5651_p2 = pneg %p5650_p0 }
  0x43   : > { %p5656_p6 = pnand %p5654_p3, %p5651_p2 }
  0x45   : > { %5659 = shalt.err (!%p5656_p6)
}
  0x46   : > { %s5660_s25 = scalar_lea.vmem %s325_s17, 1024  ;;  %p5668_p8 = scmp.lt.s32.totalorder %s325_s17, %s325_s17 }
  0x47   : > { %p5661_p7 = scmp.ne.s32.totalorder %s325_s17, %s5660_s25  ;;  %p5669_p5 = scmp.lt.s32.totalorder %s5660_s25, %s5660_s25 }
  0x49   : > { %p5663_p10 = pnand %p5661_p7, %p6092_p13  ;;  %p5670_p4 = por %p5669_p5, %p5668_p8 }
  0x4b   : > { %p5664_p1 = pneg %p5663_p10 }
  0x4d   : > { %p5671_p9 = pnand %p5670_p4, %p5664_p1 }
  0x4f   : > { %5674 = shalt.err (!%p5671_p9)
}
  0x50   : > { %s8066_s22 = smov 64   ;;  %s8067_s0 = smov 4  }
  0x51   : > { %4656 = dma.hbm_to_vmem [thread:$0]  (!%p6078_p11), %s8208_s10, 1024, %s325_s17, [#allocation14], %s8066_s22, %s8066_s22, %s8067_s0  }
  0x52   : > { %s5675_s2 = scalar_lea.hbm %s8045_s8, 8192 }
  0x53   : > { %p5676_p1 = scmp.ne.s32.totalorder %s8045_s8, %s5675_s2  ;;  %p5682_p8 = scmp.lt.u32.totalorder %s5675_s2, %s8045_s8 }
  0x55   : > { %p5678_p4 = pnand %p5676_p1, %p6092_p13 }
  0x57   : > { %p5679_p5 = pneg %p5678_p4 }
  0x59   : > { %p5684_p9 = pnand %p5682_p8, %p5679_p5 }
  0x5b   : > { %5687 = shalt.err (!%p5684_p9)
}
  0x5c   : > { %s5688_s17 = scalar_lea.vmem %s6082_s20, 8192  ;;  %p5696_p3 = scmp.lt.s32.totalorder %s6082_s20, %s6082_s20 }
  0x5d   : > { %p5689_p12 = scmp.ne.s32.totalorder %s6082_s20, %s5688_s17  ;;  %p5697_p6 = scmp.lt.s32.totalorder %s5688_s17, %s5688_s17 }
  0x5f   : > { %p5691_p0 = pnand %p5689_p12, %p6092_p13  ;;  %p5698_p7 = por %p5697_p6, %p5696_p3 }
  0x61   : > { %p5692_p2 = pneg %p5691_p0 }
  0x63   : > { %p5699_p10 = pnand %p5698_p7, %p5692_p2 }
  0x65   : > { %5702 = shalt.err (!%p5699_p10)
}
  0x66   : > { %s5910_s21 = smov 256   ;;  %s5911_s15 = smov 16  }
  0x67   : > { %4653 = dma.hbm_to_vmem [thread:$0]  (!%p6078_p11), %s8045_s8, 8192, %s6082_s20, [#allocation11], %s5910_s21, %s5910_s21, %s5911_s15  }
  0x68   : > { %s5912_s26 = smov [#allocation15]   ;;  %s5703_s25 = scalar_lea.hbm %s8049_s12, 1024 }
  0x69   : > { %s340_s27 = sshll.u32 %s5912_s26, 4  ;;  %p5704_p1 = scmp.ne.s32.totalorder %s8049_s12, %s5703_s25  ;;  %s341_s27 = int_to_ptr.vmem [resolvable:$true] %s340_s27 }
  0x6a   : > { %p5710_p8 = scmp.lt.u32.totalorder %s5703_s25, %s8049_s12 }
  0x6b   : > { %p5706_p4 = pnand %p5704_p1, %p6092_p13 }
  0x6d   : > { %p5707_p5 = pneg %p5706_p4 }
  0x6f   : > { %p5712_p9 = pnand %p5710_p8, %p5707_p5 }
  0x71   : > { %5715 = shalt.err (!%p5712_p9)
}
  0x72   : > { %s5716_s20 = scalar_lea.vmem %s341_s27, 1024  ;;  %p5724_p3 = scmp.lt.s32.totalorder %s341_s27, %s341_s27 }
  0x73   : > { %p5717_p12 = scmp.ne.s32.totalorder %s341_s27, %s5716_s20  ;;  %p5725_p6 = scmp.lt.s32.totalorder %s5716_s20, %s5716_s20 }
  0x75   : > { %p5719_p0 = pnand %p5717_p12, %p6092_p13  ;;  %p5726_p7 = por %p5725_p6, %p5724_p3 }
  0x77   : > { %p5720_p2 = pneg %p5719_p0 }
  0x79   : > { %p5727_p10 = pnand %p5726_p7, %p5720_p2 }
  0x7b   : > { %5730 = shalt.err (!%p5727_p10)
}
  0x7c   : > { %s8210_s22 = smov 4   ;;  %s8211_s21 = smov 64  }
  0x7d   : > { %4659 = dma.hbm_to_vmem [thread:$0]  (!%p6078_p11), %s8049_s12, 1024, %s341_s27, [#allocation14], %s8211_s21, %s8211_s21, %s8210_s22  }
  0x7e   : > { %p8212_p1 = scmp.ne.s32.totalorder %s8206_s30, 0 }
  0x80   : > { %367 = sbr.rel (%p8212_p1) target bundleno = 1191 (0x4a7), region = 56 }
  0x87   : > { %p8213_p13 = scmp.eq.s32.totalorder %s6040_s23, 0 }
  0x89   : > { %5860 = dma.done.wait (%p8213_p13), [#allocation11], 8192   ;;  %p8214_p4 = pmov %p8213_p13 }
  0x8b   : > { %5862 = vsyncadd (%p8214_p4), [#allocation11], 4294959104  ;;  %p8215_p5 = pmov %p8214_p4 }
  0x8c   : > { %p8216_p8 = pmov %p8214_p4 }
  0x8d   : > { %5864 = dma.done.wait (%p8215_p5), [#allocation14], 2048  }
  0x8e   : > { %5866 = vsyncadd (%p8216_p8), [#allocation14], 4294965248  ;;  %s408_s18 = sand.u32 1, %s5889_s1   ;;  %p413_p11 = scmp.lt.s32.totalorder %s6040_s23, 3 }
  0x8f   : > { %s6169_s30 = sshll.u32 %s408_s18, 8  ;;  %s5913_s16 = smov [#allocation2]  }
  0x90   : > { %s430_s15 = sshll.u32 %s5913_s16, 4  ;;  %s5914_s26 = smov [#allocation3]   ;;  %s431_s15 = int_to_ptr.vmem [resolvable:$true] %s430_s15 }
  0x91   : > { %s414_s24 = scalar_select %p413_p11, %s6040_s23, 3 }
  0x92   : > { %s442_s27 = sshll.u32 %s5914_s26, 4  ;;  %s5731_s22 = scalar_lea.hbm %s8040_s3, 4096  ;;  %s6177_s27 = int_to_ptr.vmem [resolvable:$true] %s442_s27 }
  0x93   : > { %s4505_s2 = sshll.u32 %s414_s24, 7  ;;  %p5732_p9 = scmp.ne.s32.totalorder %s8040_s3, %s5731_s22 }
  0x94   : > { %s6175_s25 = scalar_lea.vmem %s8042_s5, %s4505_s2  ;;  %p8217_p12 = pmov %p8214_p4 }
  0x95   : > { %p5737_p3 = scmp.lt.u32.totalorder %s5731_s22, %s8040_s3 }
  0x96   : > { %p5733_p0 = pnand %p5732_p9, %p8217_p12 }
  0x98   : > { %p5734_p2 = pneg %p5733_p0 }
  0x9a   : > { %p5739_p6 = pnand %p5737_p3, %p5734_p2 }
  0x9c   : > { %5742 = shalt.err (!%p5739_p6)  }
  0x9d   : > { %s5743_s24 = scalar_lea.vmem %s431_s15, 4096  ;;  %p8218_p10 = pmov %p8214_p4 }
  0x9e   : > { %p5744_p7 = scmp.ne.s32.totalorder %s431_s15, %s5743_s24  ;;  %p5750_p4 = scmp.lt.s32.totalorder %s431_s15, %s431_s15 }
  0x9f   : > { %p5751_p5 = scmp.lt.s32.totalorder %s5743_s24, %s5743_s24 }
  0xa0   : > { %p5745_p1 = pnand %p5744_p7, %p8218_p10 }
  0xa1   : > { %p5752_p8 = por %p5751_p5, %p5750_p4 }
  0xa2   : > { %p5746_p13 = pneg %p5745_p1 }
  0xa4   : > { %p5753_p11 = pnand %p5752_p8, %p5746_p13 }
  0xa6   : > { %5756 = shalt.err (!%p5753_p11)  }
  0xa7   : > { %p8219_p9 = pmov %p8218_p10  ;;  %s5757_s17 = scalar_lea.hbm %s8041_s4, 2048 }
  0xa8   : > { %p5758_p12 = scmp.ne.s32.totalorder %s8041_s4, %s5757_s17  ;;  %p5763_p6 = scmp.lt.u32.totalorder %s5757_s17, %s8041_s4 }
  0xa9   : > { %4640 = dma.hbm_to_vmem [thread:$0]  (%p8219_p9), %s8040_s3, 4096, %s431_s15, [#allocation5] }
  0xaa   : > { %p8220_p0 = pmov %p8219_p9 }
  0xac   : > { %p5759_p2 = pnand %p5758_p12, %p8220_p0 }
  0xae   : > { %p5760_p3 = pneg %p5759_p2 }
  0xb0   : > { %p5765_p7 = pnand %p5763_p6, %p5760_p3 }
  0xb2   : > { %5768 = shalt.err (!%p5765_p7)  }
  0xb3   : > { %s5769_s15 = scalar_lea.vmem %s6177_s27, 2048  ;;  %p8221_p1 = pmov %p8220_p0 }
  0xb4   : > { %p5770_p10 = scmp.ne.s32.totalorder %s6177_s27, %s5769_s15  ;;  %p5776_p5 = scmp.lt.s32.totalorder %s6177_s27, %s6177_s27 }
  0xb5   : > { %p5777_p8 = scmp.lt.s32.totalorder %s5769_s15, %s5769_s15 }
  0xb6   : > { %p5771_p13 = pnand %p5770_p10, %p8221_p1 }
  0xb7   : > { %p5778_p11 = por %p5777_p8, %p5776_p5 }
  0xb8   : > { %p5772_p4 = pneg %p5771_p13 }
  0xba   : > { %p5779_p9 = pnand %p5778_p11, %p5772_p4 }
  0xbc   : > { %5782 = shalt.err (!%p5779_p9)  }
  0xbd   : > { %p8222_p12 = pmov %p8220_p0  ;;  %s6221_s24 = scalar_lea.vmem [#allocation16], %s6169_s30 }
  0xbf   : > { %4641 = dma.hbm_to_vmem [thread:$0]  (%p8222_p12), %s8041_s4, 2048, %s6177_s27, [#allocation5 + $0x1] }
  0xc0   : > { %5868 = dma.done.wait (%p8220_p0), [#allocation5], 4096  ;;  %p8223_p2 = pmov %p8220_p0 }
  0xc1   : > { %p8224_p3 = pmov %p8220_p0 }
  0xc2   : > { %5870 = vsyncadd (%p8223_p2), [#allocation5], 4294963200 }
  0xc3   : > { %5872 = dma.done.wait (%p8224_p3), [#allocation5 + $0x1], 2048  ;;  %p8225_p6 = pmov %p8220_p0 }
  0xc4   : > { %s6232_s2 = sld [smem:[#allocation9 + %s6040_s23]]  ;;  %v5915_v0 = vmov 0.0   ;;  %v6234_v1 = vld [vmem:[#allocation2] sm:$0xff]  ;;  %v6236_v2 = vld [vmem:[#allocation2 + $0x8] sm:$0xff]  ;;  %v6238_v3 = vld [vmem:[#allocation2 + $0x10] sm:$0xff] }
  0xc5   : > { %5874 = vsyncadd (%p8225_p6), [#allocation5 + $0x1], 4294965248  ;;  %516 = vst [vmem:[#allocation4] sm:$0xff] %v5915_v0  ;;  %v6240_v4 = vld [vmem:[#allocation2 + $0x18] sm:$0xff]  ;;  %v6242_v5 = vld [vmem:[#allocation2 + $0x20] sm:$0xff]  ;;  %v6248_v7 = vpack.c.bf16 %v6236_v2, %v6234_v1 }
  0xc6   : > { %517 = vst [vmem:[#allocation4 + $0x8] sm:$0xff] %v5915_v0  ;;  %518 = vst [vmem:[#allocation4 + $0x10] sm:$0xff] %v5915_v0  ;;  %v6244_v6 = vld [vmem:[#allocation2 + $0x28] sm:$0xff]  ;;  %v6250_v8 = vld [vmem:[#allocation2 + $0x30] sm:$0xff]  ;;  %v6258_v11 = vpack.c.bf16 %v6240_v4, %v6238_v3 }
  0xc7   : > { %519 = vst [vmem:[#allocation4 + $0x18] sm:$0xff] %v5915_v0  ;;  %520 = vst [vmem:[#allocation4 + $0x20] sm:$0xff] %v5915_v0  ;;  %v6252_v9 = vld [vmem:[#allocation2 + $0x38] sm:$0xff]  ;;  %v6254_v10 = vld [vmem:[#allocation2 + $0x40] sm:$0xff]  ;;  %v6262_v12 = vpack.c.bf16 %v6244_v6, %v6242_v5 }
  0xc8   : > { %521 = vst [vmem:[#allocation4 + $0x28] sm:$0xff] %v5915_v0  ;;  %522 = vst [vmem:[#allocation4 + $0x30] sm:$0xff] %v5915_v0  ;;  %v6264_v13 = vld [vmem:[#allocation2 + $0x48] sm:$0xff]  ;;  %v6266_v14 = vld [vmem:[#allocation2 + $0x50] sm:$0xff]  ;;  %v6272_v16 = vpack.c.bf16 %v6252_v9, %v6250_v8 }
  0xc9   : > { %523 = vst [vmem:[#allocation4 + $0x38] sm:$0xff] %v5915_v0  ;;  %524 = vst [vmem:[#allocation4 + $0x40] sm:$0xff] %v5915_v0  ;;  %v6268_v15 = vld [vmem:[#allocation2 + $0x58] sm:$0xff]  ;;  %v6274_v17 = vld [vmem:[#allocation2 + $0x60] sm:$0xff]  ;;  %v6282_v20 = vpack.c.bf16 %v6264_v13, %v6254_v10 }
  0xca   : > { %525 = vst [vmem:[#allocation4 + $0x48] sm:$0xff] %v5915_v0  ;;  %526 = vst [vmem:[#allocation4 + $0x50] sm:$0xff] %v5915_v0  ;;  %v6276_v18 = vld [vmem:[#allocation2 + $0x68] sm:$0xff]  ;;  %v6278_v19 = vld [vmem:[#allocation2 + $0x70] sm:$0xff]  ;;  %v6286_v21 = vpack.c.bf16 %v6268_v15, %v6266_v14  ;;  %p4203_p7 = scmp.le.s32.totalorder %s6232_s2, 0 }
  0xcb   : > { %527 = vst [vmem:[#allocation4 + $0x58] sm:$0xff] %v5915_v0  ;;  %528 = vst [vmem:[#allocation4 + $0x60] sm:$0xff] %v5915_v0  ;;  %v6288_v22 = vld [vmem:[#allocation2 + $0x78] sm:$0xff]  ;;  %v6290_v23 = vld [vmem:[#allocation2 + $0x80] sm:$0xff]  ;;  %v6296_v25 = vpack.c.bf16 %v6276_v18, %v6274_v17  ;;  %s5899_s30 = smov (!%p4203_p7), 0  }
  0xcc   : > { %529 = vst [vmem:[#allocation4 + $0x68] sm:$0xff] %v5915_v0  ;;  %530 = vst [vmem:[#allocation4 + $0x70] sm:$0xff] %v5915_v0  ;;  %v6292_v24 = vld [vmem:[#allocation2 + $0x88] sm:$0xff]  ;;  %v6298_v26 = vld [vmem:[#allocation2 + $0x90] sm:$0xff]  ;;  %v6306_v29 = vpack.c.bf16 %v6288_v22, %v6278_v19 }
  0xcd   : > { %531 = vst [vmem:[#allocation4 + $0x78] sm:$0xff] %v5915_v0  ;;  %8226 = vst [vmem:[#allocation38_spill] sm:$0xff] %v6234_v1  ;;  %v6300_v27 = vld [vmem:[#allocation2 + $0x98] sm:$0xff]  ;;  %v6302_v28 = vld [vmem:[#allocation2 + $0xa0] sm:$0xff]  ;;  %v6310_v30 = vpack.c.bf16 %v6292_v24, %v6290_v23 }
  0xce   : > { %8227 = vst [vmem:[#allocation39_spill] sm:$0xff] %v6236_v2  ;;  %8228 = vst [vmem:[#allocation40_spill] sm:$0xff] %v6238_v3  ;;  %v6312_v31 = vld [vmem:[#allocation2 + $0xa8] sm:$0xff]  ;;  %v6314_v32 = vld [vmem:[#allocation2 + $0xb0] sm:$0xff]  ;;  %v6320_v34 = vpack.c.bf16 %v6300_v27, %v6298_v26 }
  0xcf   : > { %8229 = vst [vmem:[#allocation41_spill] sm:$0xff] %v6240_v4  ;;  %8230 = vst [vmem:[#allocation42_spill] sm:$0xff] %v6242_v5  ;;  %v6316_v33 = vld [vmem:[#allocation2 + $0xb8] sm:$0xff]  ;;  %v6322_v35 = vld [vmem:[#allocation2 + $0xc0] sm:$0xff]  ;;  %v6330_v38 = vpack.c.bf16 %v6312_v31, %v6302_v28 }
  0xd0   : > { %8231 = vst [vmem:[#allocation43_spill] sm:$0xff] %v6244_v6  ;;  %8232 = vst [vmem:[#allocation44_spill] sm:$0xff] %v6250_v8  ;;  %v6324_v36 = vld [vmem:[#allocation2 + $0xc8] sm:$0xff]  ;;  %v6326_v37 = vld [vmem:[#allocation2 + $0xd0] sm:$0xff]  ;;  %v6334_v39 = vpack.c.bf16 %v6316_v33, %v6314_v32 }
  0xd1   : > { %8233 = vst [vmem:[#allocation45_spill] sm:$0xff] %v6252_v9  ;;  %8234 = vst [vmem:[#allocation46_spill] sm:$0xff] %v6254_v10  ;;  %v6336_v40 = vld [vmem:[#allocation2 + $0xd8] sm:$0xff]  ;;  %v6338_v41 = vld [vmem:[#allocation2 + $0xe0] sm:$0xff]  ;;  %v6344_v43 = vpack.c.bf16 %v6324_v36, %v6322_v35 }
  0xd2   : > { %8235 = vst [vmem:[#allocation47_spill] sm:$0xff] %v6264_v13  ;;  %8236 = vst [vmem:[#allocation48_spill] sm:$0xff] %v6266_v14  ;;  %v6340_v42 = vld [vmem:[#allocation2 + $0xe8] sm:$0xff]  ;;  %v6346_v44 = vld [vmem:[#allocation2 + $0xf0] sm:$0xff]  ;;  %v6354_v47 = vpack.c.bf16 %v6336_v40, %v6326_v37 }
  0xd3   : > { %8237 = vst [vmem:[#allocation49_spill] sm:$0xff] %v6268_v15  ;;  %8238 = vst [vmem:[#allocation50_spill] sm:$0xff] %v6274_v17  ;;  %v6348_v45 = vld [vmem:[#allocation2 + $0xf8] sm:$0xff]  ;;  %v6350_v46 = vld [vmem:[#allocation3] sm:$0xff]  ;;  %v6358_v48 = vpack.c.bf16 %v6340_v42, %v6338_v41 }
  0xd4   : > { %8239 = vst [vmem:[#allocation51_spill] sm:$0xff] %v6276_v18  ;;  %8240 = vst [vmem:[#allocation52_spill] sm:$0xff] %v6278_v19  ;;  %v6360_v49 = vld [vmem:[#allocation3 + $0x8] sm:$0xff]  ;;  %v6362_v50 = vld [vmem:[#allocation3 + $0x10] sm:$0xff]  ;;  %v6368_v52 = vpack.c.bf16 %v6348_v45, %v6346_v44 }
  0xd5   : > { %8241 = vst [vmem:[#allocation53_spill] sm:$0xff] %v6288_v22  ;;  %8242 = vst [vmem:[#allocation54_spill] sm:$0xff] %v6290_v23  ;;  %v6364_v51 = vld [vmem:[#allocation3 + $0x18] sm:$0xff]  ;;  %v6370_v53 = vld [vmem:[#allocation3 + $0x20] sm:$0xff] }
  0xd6   : > { %8243 = vst [vmem:[#allocation55_spill] sm:$0xff] %v6292_v24  ;;  %8244 = vst [vmem:[#allocation56_spill] sm:$0xff] %v6298_v26  ;;  %v6372_v54 = vld [vmem:[#allocation3 + $0x28] sm:$0xff]  ;;  %v6374_v55 = vld [vmem:[#allocation3 + $0x30] sm:$0xff] }
  0xd7   : > { %8245 = vst [vmem:[#allocation57_spill] sm:$0xff] %v6300_v27  ;;  %8246 = vst [vmem:[#allocation58_spill] sm:$0xff] %v6302_v28  ;;  %v6376_v56 = vld [vmem:[#allocation3 + $0x38] sm:$0xff]  ;;  %v6378_v57 = vld [vmem:[#allocation3 + $0x40] sm:$0xff] }
  0xd8   : > { %8247 = vst [vmem:[#allocation59_spill] sm:$0xff] %v6312_v31  ;;  %8248 = vst [vmem:[#allocation60_spill] sm:$0xff] %v6314_v32  ;;  %v6380_v58 = vld [vmem:[#allocation3 + $0x48] sm:$0xff]  ;;  %v6382_v59 = vld [vmem:[#allocation3 + $0x50] sm:$0xff] }
  0xd9   : > { %8249 = vst [vmem:[#allocation61_spill] sm:$0xff] %v6316_v33  ;;  %8250 = vst [vmem:[#allocation62_spill] sm:$0xff] %v6322_v35  ;;  %v6384_v60 = vld [vmem:[#allocation3 + $0x58] sm:$0xff]  ;;  %v6386_v61 = vld [vmem:[#allocation3 + $0x60] sm:$0xff] }
  0xda   : > { %8251 = vst [vmem:[#allocation63_spill] sm:$0xff] %v6324_v36  ;;  %8252 = vst [vmem:[#allocation64_spill] sm:$0xff] %v6326_v37  ;;  %v6388_v62 = vld [vmem:[#allocation3 + $0x68] sm:$0xff]  ;;  %v6390_v63 = vld [vmem:[#allocation3 + $0x70] sm:$0xff] }
  0xdb   : > { %8253 = vst [vmem:[#allocation65_spill] sm:$0xff] %v6336_v40  ;;  %8254 = vst [vmem:[#allocation66_spill] sm:$0xff] %v6338_v41  ;;  %v6392_v0 = vld [vmem:[#allocation3 + $0x78] sm:$0xff] }
  0xdc   : > { %8255 = vst [vmem:[#allocation67_spill] sm:$0xff] %v6340_v42  ;;  %8256 = vst [vmem:[#allocation68_spill] sm:$0xff] %v6346_v44 }
  0xdd   : > { %8257 = vst [vmem:[#allocation69_spill] sm:$0xff] %v6348_v45  ;;  %8258 = vst [vmem:[#allocation70_spill] sm:$0xff] %v6350_v46 }
  0xde   : > { %8259 = vst [vmem:[#allocation71_spill] sm:$0xff] %v6360_v49  ;;  %8260 = vst [vmem:[#allocation72_spill] sm:$0xff] %v6362_v50 }
  0xdf   : > { %8261 = vst [vmem:[#allocation73_spill] sm:$0xff] %v6364_v51  ;;  %8262 = vst [vmem:[#allocation74_spill] sm:$0xff] %v6370_v53  ;;  %4132 = sbr.rel (%p4203_p7) target bundleno = 246 (0xf6), region = 133 }
  0xe0   : > { %8263 = vst [vmem:[#allocation75_spill] sm:$0xff] %v6372_v54  ;;  %8264 = vst [vmem:[#allocation76_spill] sm:$0xff] %v6374_v55 }
  0xe1   : > { %8265 = vst [vmem:[#allocation77_spill] sm:$0xff] %v6376_v56  ;;  %8266 = vst [vmem:[#allocation78_spill] sm:$0xff] %v6378_v57 }
  0xe2   : > { %8267 = vst [vmem:[#allocation79_spill] sm:$0xff] %v6380_v58  ;;  %8268 = vst [vmem:[#allocation80_spill] sm:$0xff] %v6382_v59 }
  0xe3   : > { %8269 = vst [vmem:[#allocation81_spill] sm:$0xff] %v6384_v60  ;;  %8270 = vst [vmem:[#allocation82_spill] sm:$0xff] %v6386_v61 }
  0xe4   : > { %8271 = vst [vmem:[#allocation83_spill] sm:$0xff] %v6388_v62  ;;  %8272 = vst [vmem:[#allocation84_spill] sm:$0xff] %v6390_v63 }
  0xe5   : > { %8273 = vst [vmem:[#allocation85_spill] sm:$0xff] %v6392_v0 }
  0xe6 LB: >> { %s539_s27 = sshra.s32 %s5901_s30, 7  ;;  %s544_s26 = sand.u32 127, %s5901_s30  ;;  %s5901_s30 = sphi %s5899_s30, %s536_s30  }
  0xe7   : >> { %s541_s28 = sadd.s32 %s6040_s23, %s539_s27  ;;  %s536_s30 = sadd.s32 1, %s5901_s30  }
  0xe8   : >> { %s4204_s19 = sshll.u32 %s541_s28, 7  ;;  %p535_p10 = scmp.ge.s32.totalorder %s536_s30, %s6232_s2 }
  0xe9   : >> { %s545_s17 = sadd.s32 %s4204_s19, %s544_s26 }
  0xea   : >> { %s546_s20 = sld [smem:[#allocation7 + %s545_s17]] }
  0xeb   : >> { %s547_s22 = sld [smem:[#allocation8 + %s545_s17]] }
  0xef   : > { %538 = sbr.rel (!%p535_p10) target bundleno = 230 (0xe6), region = 139 }
  0xf0   : >> { %s548_s21 = scalar_lea.vmem [#allocation2], %s546_s20 }
  0xf1   : >> { %v549_v45 = vld [vmem:[%s548_s21] sm:$0x1]  ;;  %s550_s10 = scalar_lea.vmem [#allocation4], %s547_s22 }
  0xf2   : >> { %v551_v44 = vld [vmem:[%s550_s10] sm:$0x1] }
  0xf3   : >> { %v552_v42 = vadd.f32 %v551_v44, %v549_v45 }
  0xf5   : >> { %553 = vst [vmem:[%s550_s10] sm:$0x1] %v552_v42 }
  0xf6 PF: > { %v572_v41 = vld [vmem:[%s6175_s25 + $0x10] sm:$0xff]  ;;  %v570_v40 = vld [vmem:[%s6175_s25] sm:$0xff]  ;;  %v5916_v37 = vmov 0   ;;  %v573_v42 = vld [vmem:[%s6175_s25 + $0x18] sm:$0xff]  ;;  %p4495_p1 = scmp.ne.s32.totalorder %s6040_s23, 3 }
  0xf7   : > { %4732 = vset.pattern.permute.xlu1 %v5916_v37  ;;  %4731 = vset.pattern.permute.xlu0 %v5916_v37  ;;  %v571_v44 = vld [vmem:[%s6175_s25 + $0x8] sm:$0xff]  ;;  %v574_v36 = vld [vmem:[%s6175_s25 + $0x20] sm:$0xff]  ;;  %v576_v31 = vld [vmem:[%s6175_s25 + $0x30] sm:$0xff] }
  0xf8   : > { %598 = vperm.xlu1 %4732, %v572_v41   ;;  %588 = vperm.xlu0 %4731, %v570_v40   ;;  %v575_v45 = vld [vmem:[%s6175_s25 + $0x28] sm:$0xff]  ;;  %v4733_v35 = vld [vmem:[%s8043_s6 + $0x4] ss:$16 sps:$4 sm:$0xff]   ;;  %v4735_v33 = vld [vmem:[%s8043_s6] ss:$16 sps:$4 sm:$0xff]  }
  0xf9   : > { %v4736_v37 = vld [vmem:[%s8043_s6 + $0xc] ss:$16 sps:$4 sm:$0xff]   ;;  %v4738_v40 = vld [vmem:[%s8043_s6 + $0x8] ss:$16 sps:$4 sm:$0xff]   ;;  %1104 = vmatprep.subr.bf16.mxu0 %v4733_v35  ;;  %v4739_v41 = vld [vmem:[%s8043_s6 + $0x24] ss:$16 sps:$4 sm:$0xff]  }
  0xfa   : > { %1105 = vmatpush1.bf16.msra.mxu0 %v4735_v33  ;;  %1217 = vmatprep.subr.bf16.mxu1 %v4736_v37  ;;  %v4741_v32 = vld [vmem:[%s8043_s6 + $0x20] ss:$16 sps:$4 sm:$0xff]   ;;  %v4742_v35 = vld [vmem:[%s8043_s6 + $0x2c] ss:$16 sps:$4 sm:$0xff]   ;;  %v4744_v33 = vld [vmem:[%s8043_s6 + $0x28] ss:$16 sps:$4 sm:$0xff]  }
  0xfb   : > { %1218 = vmatpush1.bf16.msra.mxu1 %v4738_v40  ;;  %1106 = vmatprep.subr.bf16.mxu0 %v4739_v41  ;;  %v4745_v37 = vld [vmem:[%s8043_s6 + $0x44] ss:$16 sps:$4 sm:$0xff]   ;;  %v579_v40 = vld [vmem:[%s6175_s25 + $0x48] sm:$0xff] }
  0xfc   : > { %603 = vperm.xlu1 %4732, %v573_v42   ;;  %593 = vperm.xlu0 %4731, %v571_v44   ;;  %v690_v42 = vpack.c.bf16 %v6360_v49, %v6350_v46  ;;  %v577_v44 = vld [vmem:[%s6175_s25 + $0x38] sm:$0xff]  ;;  %v578_v41 = vld [vmem:[%s6175_s25 + $0x40] sm:$0xff]  ;;  %v556_v22 = vld [vmem:[#allocation4 + $0x10] sm:$0xff] }
  0xfd   : > { %1219 = vmatprep.subr.bf16.mxu1 %v4742_v35  ;;  %v4750_v35 = vld [vmem:[%s8043_s6 + $0x48] ss:$16 sps:$4 sm:$0xff]   ;;  %v4834_v23 = vld [vmem:[#allocation10 + $0x24] ss:$16 sps:$4 sm:$0xff]  }
  0xfe   : > { %1136 = vmatprep.mubr.bf16.mxu0 %v690_v42  ;;  %1107 = vmatpush1.bf16.msra.mxu0 %v4741_v32  ;;  %v4751_v32 = vld [vmem:[%s8043_s6 + $0x64] ss:$16 sps:$4 sm:$0xff]   ;;  %v4847_v19 = vld [vmem:[#allocation10 + $0x8] ss:$16 sps:$4 sm:$0xff]  }
  0xff   : > { %1249 = vmatprep.mubr.bf16.mxu1 %v690_v42  ;;  %1220 = vmatpush1.bf16.msra.mxu1 %v4744_v33  ;;  %v4754_v42 = vld [vmem:[%s8043_s6 + $0x6c] ss:$16 sps:$4 sm:$0xff]   ;;  %v580_v33 = vld [vmem:[%s6175_s25 + $0x50] sm:$0xff]  ;;  %v558_v15 = vld [vmem:[#allocation4 + $0x20] sm:$0xff] }
 0x100   : > { %613 = vperm.xlu1 %4732, %v575_v45   ;;  %608 = vperm.xlu0 %4731, %v574_v36   ;;  %v4748_v36 = vld [vmem:[%s8043_s6 + $0x4c] ss:$16 sps:$4 sm:$0xff]   ;;  %v4747_v45 = vld [vmem:[%s8043_s6 + $0x40] ss:$16 sps:$4 sm:$0xff]  }
 0x101   : > { %1108 = vmatprep.subr.bf16.mxu0 %v4745_v37  ;;  %1221 = vmatprep.subr.bf16.mxu1 %v4748_v36  ;;  %v4756_v37 = vld [vmem:[%s8043_s6 + $0x68] ss:$16 sps:$4 sm:$0xff]   ;;  %v4757_v36 = vld [vmem:[%s8043_s6 + $0x84] ss:$16 sps:$4 sm:$0xff]  }
 0x102   : > { %1109 = vmatpush1.bf16.msra.mxu0 %v4747_v45  ;;  %v4760_v45 = vld [vmem:[%s8043_s6 + $0x8c] ss:$16 sps:$4 sm:$0xff]  }
 0x103   : > { %1222 = vmatpush1.bf16.msra.mxu1 %v4750_v35  ;;  %1110 = vmatprep.subr.bf16.mxu0 %v4751_v32  ;;  %v582_v35 = vld [vmem:[%s6175_s25 + $0x60] sm:$0xff]  ;;  %v4762_v32 = vld [vmem:[%s8043_s6 + $0x88] ss:$16 sps:$4 sm:$0xff]  }
 0x104   : > { %623 = vperm.xlu1 %4732, %v577_v44   ;;  %618 = vperm.xlu0 %4731, %v576_v31   ;;  %v4753_v31 = vld [vmem:[%s8043_s6 + $0x60] ss:$16 sps:$4 sm:$0xff]   ;;  %v581_v44 = vld [vmem:[%s6175_s25 + $0x58] sm:$0xff] }
 0x105   : > { %1223 = vmatprep.subr.bf16.mxu1 %v4754_v42  ;;  %v4763_v42 = vld [vmem:[%s8043_s6 + $0xa4] ss:$16 sps:$4 sm:$0xff]  }
 0x106   : > { %1111 = vmatpush1.bf16.msra.mxu0 %v4753_v31  ;;  %v4766_v31 = vld [vmem:[%s8043_s6 + $0xac] ss:$16 sps:$4 sm:$0xff]  }
 0x107   : > { %1224 = vmatpush1.bf16.msra.mxu1 %v4756_v37  ;;  %1112 = vmatprep.subr.bf16.mxu0 %v4757_v36  ;;  %v584_v37 = vld [vmem:[%s6175_s25 + $0x70] sm:$0xff]  ;;  %v4768_v36 = vld [vmem:[%s8043_s6 + $0xa8] ss:$16 sps:$4 sm:$0xff]  }
 0x108   : > { %633 = vperm.xlu1 %4732, %v579_v40   ;;  %628 = vperm.xlu0 %4731, %v578_v41   ;;  %v4759_v40 = vld [vmem:[%s8043_s6 + $0x80] ss:$16 sps:$4 sm:$0xff]   ;;  %v583_v41 = vld [vmem:[%s6175_s25 + $0x68] sm:$0xff] }
 0x109   : > { %1225 = vmatprep.subr.bf16.mxu1 %v4760_v45  ;;  %v4769_v45 = vld [vmem:[%s8043_s6 + $0xc4] ss:$16 sps:$4 sm:$0xff]  }
 0x10a   : > { %1113 = vmatpush1.bf16.msra.mxu0 %v4759_v40  ;;  %v4772_v40 = vld [vmem:[%s8043_s6 + $0xcc] ss:$16 sps:$4 sm:$0xff]  }
 0x10b   : > { %1226 = vmatpush1.bf16.msra.mxu1 %v4762_v32  ;;  %1114 = vmatprep.subr.bf16.mxu0 %v4763_v42  ;;  %v4774_v32 = vld [vmem:[%s8043_s6 + $0xc8] ss:$16 sps:$4 sm:$0xff]   ;;  %v4778_v42 = vld [vmem:[%s8043_s6 + $0xec] ss:$16 sps:$4 sm:$0xff]  }
 0x10c   : > { %643 = vperm.xlu1 %4732, %v581_v44   ;;  %638 = vperm.xlu0 %4731, %v580_v33   ;;  %v4765_v44 = vld [vmem:[%s8043_s6 + $0xa0] ss:$16 sps:$4 sm:$0xff]   ;;  %v585_v33 = vld [vmem:[%s6175_s25 + $0x78] sm:$0xff] }
 0x10d   : > { %1227 = vmatprep.subr.bf16.mxu1 %v4766_v31  ;;  %v4777_v31 = vld [vmem:[%s8043_s6 + $0xe0] ss:$16 sps:$4 sm:$0xff]  }
 0x10e   : > { %1115 = vmatpush1.bf16.msra.mxu0 %v4765_v44  ;;  %v4781_v44 = vld [vmem:[%s8043_s6 + $0x104] ss:$16 sps:$4 sm:$0xff]  }
 0x10f   : > { %1228 = vmatpush1.bf16.msra.mxu1 %v4768_v36  ;;  %1116 = vmatprep.subr.bf16.mxu0 %v4769_v45  ;;  %v4783_v36 = vld [vmem:[%s8043_s6 + $0x100] ss:$16 sps:$4 sm:$0xff]   ;;  %v4787_v45 = vld [vmem:[%s8043_s6 + $0x124] ss:$16 sps:$4 sm:$0xff]  }
 0x110   : > { %653 = vperm.xlu1 %4732, %v583_v41   ;;  %648 = vperm.xlu0 %4731, %v582_v35   ;;  %v4771_v41 = vld [vmem:[%s8043_s6 + $0xc0] ss:$16 sps:$4 sm:$0xff]   ;;  %v4775_v35 = vld [vmem:[%s8043_s6 + $0xe4] ss:$16 sps:$4 sm:$0xff]  }
 0x111   : > { %1229 = vmatprep.subr.bf16.mxu1 %v4772_v40  ;;  %v4786_v40 = vld [vmem:[%s8043_s6 + $0x108] ss:$16 sps:$4 sm:$0xff]  }
 0x112   : > { %1117 = vmatpush1.bf16.msra.mxu0 %v4771_v41  ;;  %v4790_v41 = vld [vmem:[%s8043_s6 + $0x12c] ss:$16 sps:$4 sm:$0xff]  }
 0x113   : > { %1118 = vmatprep.subr.bf16.mxu0 %v4775_v35  ;;  %1230 = vmatpush1.bf16.msra.mxu1 %v4774_v32  ;;  %v4789_v35 = vld [vmem:[%s8043_s6 + $0x120] ss:$16 sps:$4 sm:$0xff]   ;;  %v4793_v32 = vld [vmem:[%s8043_s6 + $0x144] ss:$16 sps:$4 sm:$0xff]  }
 0x114   : > { %663 = vperm.xlu1 %4732, %v585_v33   ;;  %658 = vperm.xlu0 %4731, %v584_v37   ;;  %v4780_v33 = vld [vmem:[%s8043_s6 + $0xe8] ss:$16 sps:$4 sm:$0xff]   ;;  %v4784_v37 = vld [vmem:[%s8043_s6 + $0x10c] ss:$16 sps:$4 sm:$0xff]  }
 0x115   : > { %1231 = vmatprep.subr.bf16.mxu1 %v4778_v42  ;;  %v4792_v42 = vld [vmem:[%s8043_s6 + $0x128] ss:$16 sps:$4 sm:$0xff]  }
 0x116   : > { %1119 = vmatpush1.bf16.msra.mxu0 %v4777_v31  ;;  %v4796_v31 = vld [vmem:[%s8043_s6 + $0x14c] ss:$16 sps:$4 sm:$0xff]  }
 0x117   : > { %1120 = vmatprep.subr.bf16.mxu0 %v4781_v44  ;;  %1232 = vmatpush1.bf16.msra.mxu1 %v4780_v33  ;;  %v4795_v44 = vld [vmem:[%s8043_s6 + $0x140] ss:$16 sps:$4 sm:$0xff]   ;;  %v4799_v33 = vld [vmem:[%s8043_s6 + $0x164] ss:$16 sps:$4 sm:$0xff]  }
 0x118   : > { %1233 = vmatprep.subr.bf16.mxu1 %v4784_v37  ;;  %v4798_v37 = vld [vmem:[%s8043_s6 + $0x148] ss:$16 sps:$4 sm:$0xff]  }
 0x11a   : > { %1121 = vmatpush1.bf16.msra.mxu0 %v4783_v36  ;;  %v4802_v36 = vld [vmem:[%s8043_s6 + $0x16c] ss:$16 sps:$4 sm:$0xff]  }
 0x11b   : > { %1122 = vmatprep.subr.bf16.mxu0 %v4787_v45  ;;  %1234 = vmatpush1.bf16.msra.mxu1 %v4786_v40  ;;  %v4801_v45 = vld [vmem:[%s8043_s6 + $0x160] ss:$16 sps:$4 sm:$0xff]   ;;  %v4805_v40 = vld [vmem:[%s8043_s6 + $0x184] ss:$16 sps:$4 sm:$0xff]  }
 0x11c   : > { %1235 = vmatprep.subr.bf16.mxu1 %v4790_v41  ;;  %v4804_v41 = vld [vmem:[%s8043_s6 + $0x168] ss:$16 sps:$4 sm:$0xff]  }
 0x11e   : > { %1123 = vmatpush1.bf16.msra.mxu0 %v4789_v35  ;;  %v4808_v35 = vld [vmem:[%s8043_s6 + $0x18c] ss:$16 sps:$4 sm:$0xff]  }
 0x11f   : > { %1124 = vmatprep.subr.bf16.mxu0 %v4793_v32  ;;  %1236 = vmatpush1.bf16.msra.mxu1 %v4792_v42  ;;  %v4807_v32 = vld [vmem:[%s8043_s6 + $0x180] ss:$16 sps:$4 sm:$0xff]   ;;  %v4811_v42 = vld [vmem:[%s8043_s6 + $0x1a4] ss:$16 sps:$4 sm:$0xff]  }
 0x120   : > { %1237 = vmatprep.subr.bf16.mxu1 %v4796_v31  ;;  %v4810_v31 = vld [vmem:[%s8043_s6 + $0x188] ss:$16 sps:$4 sm:$0xff]  }
 0x122   : > { %1125 = vmatpush1.bf16.msra.mxu0 %v4795_v44  ;;  %v4814_v44 = vld [vmem:[%s8043_s6 + $0x1ac] ss:$16 sps:$4 sm:$0xff]  }
 0x123   : > { %1126 = vmatprep.subr.bf16.mxu0 %v4799_v33  ;;  %1238 = vmatpush1.bf16.msra.mxu1 %v4798_v37  ;;  %v4813_v33 = vld [vmem:[%s8043_s6 + $0x1a0] ss:$16 sps:$4 sm:$0xff]   ;;  %v4817_v37 = vld [vmem:[%s8043_s6 + $0x1c4] ss:$16 sps:$4 sm:$0xff]  }
 0x124   : > { %1239 = vmatprep.subr.bf16.mxu1 %v4802_v36  ;;  %v4816_v36 = vld [vmem:[%s8043_s6 + $0x1a8] ss:$16 sps:$4 sm:$0xff]  }
 0x126   : > { %1127 = vmatpush1.bf16.msra.mxu0 %v4801_v45  ;;  %v4820_v45 = vld [vmem:[%s8043_s6 + $0x1cc] ss:$16 sps:$4 sm:$0xff]  }
 0x127   : > { %1128 = vmatprep.subr.bf16.mxu0 %v4805_v40  ;;  %1240 = vmatpush1.bf16.msra.mxu1 %v4804_v41  ;;  %v4819_v40 = vld [vmem:[%s8043_s6 + $0x1c0] ss:$16 sps:$4 sm:$0xff]   ;;  %v4823_v41 = vld [vmem:[%s8043_s6 + $0x1e4] ss:$16 sps:$4 sm:$0xff]  }
 0x128   : > { %1241 = vmatprep.subr.bf16.mxu1 %v4808_v35  ;;  %v4822_v35 = vld [vmem:[%s8043_s6 + $0x1c8] ss:$16 sps:$4 sm:$0xff]  }
 0x12a   : > { %1129 = vmatpush1.bf16.msra.mxu0 %v4807_v32  ;;  %v4826_v32 = vld [vmem:[%s8043_s6 + $0x1ec] ss:$16 sps:$4 sm:$0xff]  }
 0x12b   : > { %1130 = vmatprep.subr.bf16.mxu0 %v4811_v42  ;;  %1242 = vmatpush1.bf16.msra.mxu1 %v4810_v31  ;;  %v4825_v42 = vld [vmem:[%s8043_s6 + $0x1e0] ss:$16 sps:$4 sm:$0xff]   ;;  %v4831_v31 = vld [vmem:[#allocation10 + $0x4] ss:$16 sps:$4 sm:$0xff]  }
 0x12c   : > { %1243 = vmatprep.subr.bf16.mxu1 %v4814_v44  ;;  %v4828_v44 = vld [vmem:[%s8043_s6 + $0x1e8] ss:$16 sps:$4 sm:$0xff]  }
 0x12e   : > { %1131 = vmatpush1.bf16.msra.mxu0 %v4813_v33  ;;  %v4849_v33 = vld [vmem:[#allocation10 + $0xc] ss:$16 sps:$4 sm:$0xff]  }
 0x12f   : > { %1132 = vmatprep.subr.bf16.mxu0 %v4817_v37  ;;  %1244 = vmatpush1.bf16.msra.mxu1 %v4816_v36  ;;  %v554_v36 = vld [vmem:[#allocation4] sm:$0xff] }
 0x130   : > { %1245 = vmatprep.subr.bf16.mxu1 %v4820_v45  ;;  %v555_v45 = vld [vmem:[#allocation4 + $0x8] sm:$0xff] }
 0x132   : > { %1133 = vmatpush1.bf16.msra.mxu0 %v4819_v40 }
 0x133   : > { %1134 = vmatprep.subr.bf16.mxu0 %v4823_v41  ;;  %1246 = vmatpush1.bf16.msra.mxu1 %v4822_v35  ;;  %v4829_v41 = vld [vmem:[#allocation10] ss:$16 sps:$4 sm:$0xff]   ;;  %v691_v35 = vpack.c.bf16 %v6364_v51, %v6362_v50 }
 0x134   : > { %1247 = vmatprep.subr.bf16.mxu1 %v4826_v32  ;;  %v557_v32 = vld [vmem:[#allocation4 + $0x18] sm:$0xff] }
 0x136   : > { %1135 = vmatpush1.bf16.msra.mxu0 %v4825_v42  ;;  %v4855_v42 = vld [vmem:[#allocation10 + $0x2c] ss:$16 sps:$4 sm:$0xff]  }
 0x137   : > { %2040 = vmatprep.subr.bf16.mxu0 %v4831_v31  ;;  %1248 = vmatpush1.bf16.msra.mxu1 %v4828_v44  ;;  %v4832_v44 = vld [vmem:[#allocation10 + $0x20] ss:$16 sps:$4 sm:$0xff]  }
 0x138   : > { %2233 = vmatprep.subr.bf16.mxu1 %v4849_v33 }
 0x177   : > { %v589_v37 = vpop.permute.xlu0 %588  ;;  %v599_v40 = vpop.permute.xlu1 %598 }
 0x178   : > { %v666_v27 = vmul.f32 %v589_v37, %v554_v36  ;;  %v668_v33 = vmul.f32 %v599_v40, %v556_v22  ;;  %v4853_v37 = vld [vmem:[#allocation10 + $0x28] ss:$16 sps:$4 sm:$0xff]   ;;  %v4861_v22 = vld [vmem:[#allocation10 + $0x4c] ss:$16 sps:$4 sm:$0xff]  }
 0x179   : > { %v4867_v40 = vld [vmem:[#allocation10 + $0x6c] ss:$16 sps:$4 sm:$0xff]  }
 0x17b   : > { %v594_v28 = vpop.permute.xlu0 %593  ;;  %v604_v31 = vpop.permute.xlu1 %603 }
 0x17c   : > { %v667_v26 = vmul.f32 %v594_v28, %v555_v45  ;;  %v669_v18 = vmul.f32 %v604_v31, %v557_v32  ;;  %v4837_v28 = vld [vmem:[#allocation10 + $0x44] ss:$16 sps:$4 sm:$0xff]   ;;  %v693_v31 = vpack.c.bf16 %v6376_v56, %v6374_v55 }
 0x17e   : > { %v682_v24 = vpack.c.bf16 %v667_v26, %v666_v27  ;;  %v4835_v26 = vld [vmem:[#allocation10 + $0x40] ss:$16 sps:$4 sm:$0xff]   ;;  %v692_v27 = vpack.c.bf16 %v6372_v54, %v6370_v53  ;;  %v683_v36 = vpack.c.bf16 %v669_v18, %v668_v33  ;;  %v4843_v18 = vld [vmem:[#allocation10 + $0x84] ss:$16 sps:$4 sm:$0xff]  }
 0x17f   : > { %v614_v45 = vpop.permute.xlu1 %613  ;;  %v609_v17 = vpop.permute.xlu0 %608  ;;  %v4846_v33 = vld [vmem:[#allocation10 + $0xa4] ss:$16 sps:$4 sm:$0xff]  }
 0x180   : > { %1137 = vmatmul.mubr.bf16.vlgmr.msra.gmra.mrb[0].mxu0 %v682_v24  ;;  %1250 = vmatmul.mubr.bf16.vlgmr.msra.gmra.mrb[0].mxu1 %v682_v24  ;;  %v4840_v24 = vld [vmem:[#allocation10 + $0x64] ss:$16 sps:$4 sm:$0xff]   ;;  %v670_v32 = vmul.f32 %v609_v17, %v558_v15  ;;  %v4873_v15 = vld [vmem:[#allocation10 + $0x8c] ss:$16 sps:$4 sm:$0xff]   ;;  %v4844_v17 = vld [vmem:[#allocation10 + $0xa0] ss:$16 sps:$4 sm:$0xff]  }
 0x181   : > { %2041 = vmatpush1.bf16.msra.mxu0 %v4829_v41  ;;  %1146 = vmatprep.mubr.bf16.mxu0 %v691_v35  ;;  %v559_v41 = vld [vmem:[#allocation4 + $0x28] sm:$0xff] }
 0x182   : > { %2042 = vmatprep.subr.bf16.mxu0 %v4834_v23  ;;  %1259 = vmatprep.mubr.bf16.mxu1 %v691_v35  ;;  %v4859_v23 = vld [vmem:[#allocation10 + $0x48] ss:$16 sps:$4 sm:$0xff]   ;;  %v671_v35 = vmul.f32 %v614_v45, %v559_v41  ;;  %v4852_v41 = vld [vmem:[#allocation10 + $0xc4] ss:$16 sps:$4 sm:$0xff]  }
 0x183   : > { %2234 = vmatpush1.bf16.msra.mxu1 %v4847_v19  ;;  %v4838_v19 = vld [vmem:[#allocation10 + $0x60] ss:$16 sps:$4 sm:$0xff]   ;;  %v4865_v45 = vld [vmem:[#allocation10 + $0x68] ss:$16 sps:$4 sm:$0xff]  }
 0x184   : > { %2235 = vmatprep.subr.bf16.mxu1 %v4855_v42  ;;  %v4841_v42 = vld [vmem:[#allocation10 + $0x80] ss:$16 sps:$4 sm:$0xff]  }
 0x185   : > { %2043 = vmatpush1.bf16.msra.mxu0 %v4832_v44  ;;  %v684_v44 = vpack.c.bf16 %v671_v35, %v670_v32  ;;  %v4858_v35 = vld [vmem:[#allocation10 + $0xe4] ss:$16 sps:$4 sm:$0xff]  }
 0x186   : > { %2044 = vmatprep.subr.bf16.mxu0 %v4837_v28  ;;  %v624_v28 = vpop.permute.xlu1 %623 }
 0x187   : > { %2236 = vmatpush1.bf16.msra.mxu1 %v4853_v37  ;;  %v561_v37 = vld [vmem:[#allocation4 + $0x38] sm:$0xff] }
 0x188   : > { %1147 = vmatmul.mubr.bf16.gmra.mrb[4].mxu0 %v683_v36  ;;  %1260 = vmatmul.mubr.bf16.gmra.mrb[4].mxu1 %v683_v36  ;;  %v560_v36 = vld [vmem:[#allocation4 + $0x30] sm:$0xff] }
 0x189   : > { %2045 = vmatpush1.bf16.msra.mxu0 %v4835_v26  ;;  %1156 = vmatprep.mubr.bf16.mxu0 %v692_v27  ;;  %v619_v26 = vpop.permute.xlu0 %618 }
 0x18a   : > { %2046 = vmatprep.subr.bf16.mxu0 %v4840_v24  ;;  %1269 = vmatprep.mubr.bf16.mxu1 %v692_v27  ;;  %v673_v27 = vmul.f32 %v624_v28, %v561_v37  ;;  %v672_v24 = vmul.f32 %v619_v26, %v560_v36  ;;  %v634_v32 = vpop.permute.xlu1 %633  ;;  %v4879_v28 = vld [vmem:[#allocation10 + $0xac] ss:$16 sps:$4 sm:$0xff]  }
 0x18b   : > { %2237 = vmatprep.subr.bf16.mxu1 %v4861_v22  ;;  %v4871_v22 = vld [vmem:[#allocation10 + $0x88] ss:$16 sps:$4 sm:$0xff]   ;;  %v4885_v37 = vld [vmem:[#allocation10 + $0xcc] ss:$16 sps:$4 sm:$0xff]  }
 0x18c   : > { %2238 = vmatpush1.bf16.msra.mxu1 %v4859_v23  ;;  %v4850_v23 = vld [vmem:[#allocation10 + $0xc0] ss:$16 sps:$4 sm:$0xff]  }
 0x18d   : > { %2047 = vmatpush1.bf16.msra.mxu0 %v4838_v19  ;;  %2239 = vmatprep.subr.bf16.mxu1 %v4867_v40  ;;  %v694_v19 = vpack.c.bf16 %v6380_v58, %v6378_v57  ;;  %v685_v40 = vpack.c.bf16 %v673_v27, %v672_v24  ;;  %v4870_v24 = vld [vmem:[#allocation10 + $0x124] ss:$16 sps:$4 sm:$0xff]  }
 0x18e   : > { %2048 = vmatprep.subr.bf16.mxu0 %v4843_v18  ;;  %v563_v18 = vld [vmem:[#allocation4 + $0x48] sm:$0xff] }
 0x18f   : > { %v675_v26 = vmul.f32 %v634_v32, %v563_v18  ;;  %v4883_v32 = vld [vmem:[#allocation10 + $0xc8] ss:$16 sps:$4 sm:$0xff]  }
 0x190   : > { %1157 = vmatmul.mubr.bf16.gmra.mrb[8].mxu0 %v684_v44  ;;  %1270 = vmatmul.mubr.bf16.gmra.mrb[8].mxu1 %v684_v44  ;;  %v562_v44 = vld [vmem:[#allocation4 + $0x40] sm:$0xff] }
 0x191   : > { %2049 = vmatpush1.bf16.msra.mxu0 %v4841_v42  ;;  %1166 = vmatprep.mubr.bf16.mxu0 %v693_v31  ;;  %v629_v42 = vpop.permute.xlu0 %628 }
 0x192   : > { %2050 = vmatprep.subr.bf16.mxu0 %v4846_v33  ;;  %1279 = vmatprep.mubr.bf16.mxu1 %v693_v31  ;;  %v4877_v31 = vld [vmem:[#allocation10 + $0xa8] ss:$16 sps:$4 sm:$0xff]   ;;  %v4856_v33 = vld [vmem:[#allocation10 + $0xe0] ss:$16 sps:$4 sm:$0xff]   ;;  %v674_v36 = vmul.f32 %v629_v42, %v562_v44  ;;  %v4876_v44 = vld [vmem:[#allocation10 + $0x144] ss:$16 sps:$4 sm:$0xff]  }
 0x193   : > { %2240 = vmatpush1.bf16.msra.mxu1 %v4865_v45  ;;  %v4864_v45 = vld [vmem:[#allocation10 + $0x104] ss:$16 sps:$4 sm:$0xff]  }
 0x194   : > { %2241 = vmatprep.subr.bf16.mxu1 %v4873_v15  ;;  %v4862_v15 = vld [vmem:[#allocation10 + $0x100] ss:$16 sps:$4 sm:$0xff]   ;;  %v686_v27 = vpack.c.bf16 %v675_v26, %v674_v36  ;;  %v4882_v26 = vld [vmem:[#allocation10 + $0x164] ss:$16 sps:$4 sm:$0xff]  }
 0x195   : > { %2051 = vmatpush1.bf16.msra.mxu0 %v4844_v17  ;;  %v695_v17 = vpack.c.bf16 %v6384_v60, %v6382_v59 }
 0x196   : > { %2052 = vmatprep.subr.bf16.mxu0 %v4852_v41  ;;  %v644_v41 = vpop.permute.xlu1 %643 }
 0x197   : > { %2242 = vmatpush1.bf16.msra.mxu1 %v4871_v22  ;;  %v565_v22 = vld [vmem:[#allocation4 + $0x58] sm:$0xff] }
 0x198   : > { %1167 = vmatmul.mubr.bf16.gmra.mrb[12].mxu0 %v685_v40  ;;  %1280 = vmatmul.mubr.bf16.gmra.mrb[12].mxu1 %v685_v40  ;;  %v564_v40 = vld [vmem:[#allocation4 + $0x50] sm:$0xff]  ;;  %v677_v18 = vmul.f32 %v644_v41, %v565_v22  ;;  %v4897_v41 = vld [vmem:[#allocation10 + $0x10c] ss:$16 sps:$4 sm:$0xff]  }
 0x199   : > { %2053 = vmatpush1.bf16.msra.mxu0 %v4850_v23  ;;  %1176 = vmatprep.mubr.bf16.mxu0 %v694_v19  ;;  %v639_v23 = vpop.permute.xlu0 %638  ;;  %v4903_v22 = vld [vmem:[#allocation10 + $0x12c] ss:$16 sps:$4 sm:$0xff]  }
 0x19a   : > { %2054 = vmatprep.subr.bf16.mxu0 %v4858_v35  ;;  %1289 = vmatprep.mubr.bf16.mxu1 %v694_v19  ;;  %v4891_v19 = vld [vmem:[#allocation10 + $0xec] ss:$16 sps:$4 sm:$0xff]   ;;  %v4868_v35 = vld [vmem:[#allocation10 + $0x120] ss:$16 sps:$4 sm:$0xff]   ;;  %v676_v42 = vmul.f32 %v639_v23, %v564_v40  ;;  %v654_v36 = vpop.permute.xlu1 %653 }
 0x19b   : > { %2243 = vmatprep.subr.bf16.mxu1 %v4879_v28  ;;  %v4889_v28 = vld [vmem:[#allocation10 + $0xe8] ss:$16 sps:$4 sm:$0xff]  }
 0x19c   : > { %2244 = vmatpush1.bf16.msra.mxu1 %v4877_v31  ;;  %v4874_v31 = vld [vmem:[#allocation10 + $0x140] ss:$16 sps:$4 sm:$0xff]  }
 0x19d   : > { %2055 = vmatpush1.bf16.msra.mxu0 %v4856_v33  ;;  %2245 = vmatprep.subr.bf16.mxu1 %v4885_v37  ;;  %v696_v33 = vpack.c.bf16 %v6388_v62, %v6386_v61  ;;  %v687_v37 = vpack.c.bf16 %v677_v18, %v676_v42  ;;  %v4894_v42 = vld [vmem:[#allocation10 + $0x1a4] ss:$16 sps:$4 sm:$0xff]  }
 0x19e   : > { %2056 = vmatprep.subr.bf16.mxu0 %v4864_v45  ;;  %v567_v45 = vld [vmem:[#allocation4 + $0x68] sm:$0xff] }
 0x19f   : > { %v679_v23 = vmul.f32 %v654_v36, %v567_v45  ;;  %v4901_v36 = vld [vmem:[#allocation10 + $0x128] ss:$16 sps:$4 sm:$0xff]  }
 0x1a0   : > { %1177 = vmatmul.mubr.bf16.gmra.mrb[16].mxu0 %v686_v27  ;;  %1290 = vmatmul.mubr.bf16.gmra.mrb[16].mxu1 %v686_v27  ;;  %v566_v27 = vld [vmem:[#allocation4 + $0x60] sm:$0xff] }
 0x1a1   : > { %2057 = vmatpush1.bf16.msra.mxu0 %v4862_v15  ;;  %1186 = vmatprep.mubr.bf16.mxu0 %v695_v17  ;;  %v649_v15 = vpop.permute.xlu0 %648 }
 0x1a2   : > { %2058 = vmatprep.subr.bf16.mxu0 %v4870_v24  ;;  %1299 = vmatprep.mubr.bf16.mxu1 %v695_v17  ;;  %v4895_v17 = vld [vmem:[#allocation10 + $0x108] ss:$16 sps:$4 sm:$0xff]   ;;  %v4880_v24 = vld [vmem:[#allocation10 + $0x160] ss:$16 sps:$4 sm:$0xff]   ;;  %v678_v40 = vmul.f32 %v649_v15, %v566_v27  ;;  %v4900_v27 = vld [vmem:[#allocation10 + $0x1c4] ss:$16 sps:$4 sm:$0xff]  }
 0x1a3   : > { %2246 = vmatpush1.bf16.msra.mxu1 %v4883_v32  ;;  %v4888_v32 = vld [vmem:[#allocation10 + $0x184] ss:$16 sps:$4 sm:$0xff]  }
 0x1a4   : > { %2247 = vmatprep.subr.bf16.mxu1 %v4891_v19  ;;  %v4886_v19 = vld [vmem:[#allocation10 + $0x180] ss:$16 sps:$4 sm:$0xff]   ;;  %v688_v18 = vpack.c.bf16 %v679_v23, %v678_v40  ;;  %v4912_v23 = vld [vmem:[#allocation10 + $0x16c] ss:$16 sps:$4 sm:$0xff]   ;;  %v4910_v40 = vld [vmem:[#allocation10 + $0x168] ss:$16 sps:$4 sm:$0xff]  }
 0x1a5   : > { %2059 = vmatpush1.bf16.msra.mxu0 %v4868_v35  ;;  %v697_v35 = vpack.c.bf16 %v6392_v0, %v6390_v63 }
 0x1a6   : > { %2060 = vmatprep.subr.bf16.mxu0 %v4876_v44  ;;  %v664_v44 = vpop.permute.xlu1 %663 }
 0x1a7   : > { %2248 = vmatpush1.bf16.msra.mxu1 %v4889_v28  ;;  %v569_v28 = vld [vmem:[#allocation4 + $0x78] sm:$0xff] }
 0x1a8   : > { %1187 = vmatmul.mubr.bf16.gmra.mrb[20].mxu0 %v687_v37  ;;  %1300 = vmatmul.mubr.bf16.gmra.mrb[20].mxu1 %v687_v37  ;;  %v568_v37 = vld [vmem:[#allocation4 + $0x70] sm:$0xff]  ;;  %v681_v45 = vmul.f32 %v664_v44, %v569_v28  ;;  %v4921_v44 = vld [vmem:[#allocation10 + $0x1cc] ss:$16 sps:$4 sm:$0xff]   ;;  %v4919_v28 = vld [vmem:[#allocation10 + $0x1c8] ss:$16 sps:$4 sm:$0xff]  }
 0x1a9   : > { %2061 = vmatpush1.bf16.msra.mxu0 %v4874_v31  ;;  %1196 = vmatprep.mubr.bf16.mxu0 %v696_v33  ;;  %v659_v31 = vpop.permute.xlu0 %658 }
 0x1aa   : > { %2062 = vmatprep.subr.bf16.mxu0 %v4882_v26  ;;  %1309 = vmatprep.mubr.bf16.mxu1 %v696_v33  ;;  %v4909_v33 = vld [vmem:[#allocation10 + $0x14c] ss:$16 sps:$4 sm:$0xff]   ;;  %v4892_v26 = vld [vmem:[#allocation10 + $0x1a0] ss:$16 sps:$4 sm:$0xff]   ;;  %v680_v15 = vmul.f32 %v659_v31, %v568_v37  ;;  %v4922_v37 = vld [vmem:[#allocation10 + $0x1e8] ss:$16 sps:$4 sm:$0xff]  }
 0x1ab   : > { %2249 = vmatprep.subr.bf16.mxu1 %v4897_v41  ;;  %v4907_v41 = vld [vmem:[#allocation10 + $0x148] ss:$16 sps:$4 sm:$0xff]   ;;  %v4924_v31 = vld [vmem:[#allocation10 + $0x1ec] ss:$16 sps:$4 sm:$0xff]  }
 0x1ac   : > { %2250 = vmatpush1.bf16.msra.mxu1 %v4895_v17  ;;  %v4898_v17 = vld [vmem:[#allocation10 + $0x1c0] ss:$16 sps:$4 sm:$0xff]  }
 0x1ad   : > { %2063 = vmatpush1.bf16.msra.mxu0 %v4880_v24  ;;  %2251 = vmatprep.subr.bf16.mxu1 %v4903_v22  ;;  %v689_v24 = vpack.c.bf16 %v681_v45, %v680_v15  ;;  %v4906_v22 = vld [vmem:[#allocation10 + $0x1e4] ss:$16 sps:$4 sm:$0xff]  }
 0x1ae   : > { %2064 = vmatprep.subr.bf16.mxu0 %v4888_v32  ;;  %v4915_v32 = vld [vmem:[#allocation10 + $0x18c] ss:$16 sps:$4 sm:$0xff]  }
 0x1b0   : > { %1197 = vmatmul.mubr.bf16.gmra.mrb[24].mxu0 %v688_v18  ;;  %1310 = vmatmul.mubr.bf16.gmra.mrb[24].mxu1 %v688_v18  ;;  %v4918_v18 = vld [vmem:[#allocation10 + $0x1ac] ss:$16 sps:$4 sm:$0xff]  }
 0x1b1   : > { %2065 = vmatpush1.bf16.msra.mxu0 %v4886_v19  ;;  %1206 = vmatprep.mubr.bf16.mxu0 %v697_v35  ;;  %v4904_v19 = vld [vmem:[#allocation10 + $0x1e0] ss:$16 sps:$4 sm:$0xff]  }
 0x1b2   : > { %2066 = vmatprep.subr.bf16.mxu0 %v4894_v42  ;;  %1319 = vmatprep.mubr.bf16.mxu1 %v697_v35  ;;  %v4913_v35 = vld [vmem:[#allocation10 + $0x188] ss:$16 sps:$4 sm:$0xff]  }
 0x1b3   : > { %2252 = vmatpush1.bf16.msra.mxu1 %v4901_v36  ;;  %v4916_v42 = vld [vmem:[#allocation10 + $0x1a8] ss:$16 sps:$4 sm:$0xff]   ;;  %v6691_v36 = vld [vmem:[%s8044_s7] sm:$0xf] }
 0x1b4   : > { %2253 = vmatprep.subr.bf16.mxu1 %v4909_v33 }
 0x1b5   : > { %2067 = vmatpush1.bf16.msra.mxu0 %v4892_v26  ;;  %v4936_v26 = vld [vmem:[#allocation13 + $0x18] sm:$0xff]  }
 0x1b6   : > { %2068 = vmatprep.subr.bf16.mxu0 %v4900_v27 }
 0x1b7   : > { %2254 = vmatpush1.bf16.msra.mxu1 %v4907_v41 }
 0x1b8   : > { %1207 = vmatmul.mubr.bf16.gmra.mrb[28].mxu0 %v689_v24  ;;  %1320 = vmatmul.mubr.bf16.gmra.mrb[28].mxu1 %v689_v24 }
 0x1b9   : > { %2069 = vmatpush1.bf16.msra.mxu0 %v4898_v17  ;;  %2072 = vmatprep.mubr.bf16.mxu0 %v6248_v7 }
 0x1ba   : > { %2070 = vmatprep.subr.bf16.mxu0 %v4906_v22  ;;  %2255 = vmatprep.subr.bf16.mxu1 %v4912_v23 }
 0x1bb   : > { %2256 = vmatpush1.bf16.msra.mxu1 %v4910_v40  ;;  %2265 = vmatprep.mubr.bf16.mxu1 %v6248_v7 }
 0x1bc   : > { %2257 = vmatprep.subr.bf16.mxu1 %v4915_v32 }
 0x1bd   : > { %2071 = vmatpush1.bf16.msra.mxu0 %v4904_v19 }
 0x1bf   : > { %2258 = vmatpush1.bf16.msra.mxu1 %v4913_v35 }
 0x1c0   : > { %2073 = vmatmul.mubr.bf16.vlgmr.msra.gmra.mrb[32].mxu0 %v6248_v7  ;;  %2259 = vmatprep.subr.bf16.mxu1 %v4918_v18  ;;  %v4937_v18 = vld [vmem:[#allocation13 + $0x20] sm:$0xff]  }
 0x1c1   : > { %2082 = vmatprep.mubr.bf16.mxu0 %v6258_v11 }
 0x1c3   : > { %2260 = vmatpush1.bf16.msra.mxu1 %v4916_v42 }
 0x1c4   : > { %2261 = vmatprep.subr.bf16.mxu1 %v4921_v44 }
 0x1c7   : > { %2262 = vmatpush1.bf16.msra.mxu1 %v4919_v28 }
 0x1c8   : > { %2083 = vmatmul.mubr.bf16.gmra.mrb[36].mxu0 %v6258_v11  ;;  %2263 = vmatprep.subr.bf16.mxu1 %v4924_v31 }
 0x1c9   : > { %2092 = vmatprep.mubr.bf16.mxu0 %v6262_v12 }
 0x1cb   : > { %2264 = vmatpush1.bf16.msra.mxu1 %v4922_v37  ;;  %v4938_v37 = vld [vmem:[#allocation13 + $0x28] sm:$0xff]  }
 0x1ce   : > { %2266 = vmatmul.mubr.bf16.vlgmr.msra.gmra.mrb[32].mxu1 %v6248_v7  ;;  %v4925_v7 = vld [vmem:[#allocation15] sm:$0xff]  }
 0x1cf   : > { %2275 = vmatprep.mubr.bf16.mxu1 %v6258_v11  ;;  %4595 = vmatprep.subr.bf16.mxu1 %v4925_v7 }
 0x1d0   : > { %2093 = vmatmul.mubr.bf16.gmra.mrb[40].mxu0 %v6262_v12  ;;  %4596 = vmatpush3.bf16.msra.mxu1 %v4925_v7 }
 0x1d1   : > { %2102 = vmatprep.mubr.bf16.mxu0 %v6272_v16 }
 0x1d6   : > { %2276 = vmatmul.mubr.bf16.gmra.mrb[36].mxu1 %v6258_v11  ;;  %v4926_v11 = vld [vmem:[#allocation15 + $0x8] sm:$0xff]  }
 0x1d7   : > { %2285 = vmatprep.mubr.bf16.mxu1 %v6262_v12  ;;  %4597 = vmatprep.subr.bf16.mxu1 %v4926_v11 }
 0x1d8   : > { %2103 = vmatmul.mubr.bf16.gmra.mrb[44].mxu0 %v6272_v16  ;;  %4598 = vmatpush3.bf16.msra.mxu1 %v4926_v11 }
 0x1d9   : > { %2112 = vmatprep.mubr.bf16.mxu0 %v6282_v20 }
 0x1de   : > { %2286 = vmatmul.mubr.bf16.gmra.mrb[40].mxu1 %v6262_v12  ;;  %v4927_v12 = vld [vmem:[#allocation15 + $0x10] sm:$0xff]  }
 0x1df   : > { %2295 = vmatprep.mubr.bf16.mxu1 %v6272_v16  ;;  %4599 = vmatprep.subr.bf16.mxu1 %v4927_v12 }
 0x1e0   : > { %2113 = vmatmul.mubr.bf16.gmra.mrb[48].mxu0 %v6282_v20  ;;  %4600 = vmatpush3.bf16.msra.mxu1 %v4927_v12 }
 0x1e1   : > { %2122 = vmatprep.mubr.bf16.mxu0 %v6286_v21 }
 0x1e6   : > { %2296 = vmatmul.mubr.bf16.gmra.mrb[44].mxu1 %v6272_v16  ;;  %v4928_v16 = vld [vmem:[#allocation15 + $0x18] sm:$0xff]  }
 0x1e7   : > { %2305 = vmatprep.mubr.bf16.mxu1 %v6282_v20  ;;  %4601 = vmatprep.subr.bf16.mxu1 %v4928_v16 }
 0x1e8   : > { %2123 = vmatmul.mubr.bf16.gmra.mrb[52].mxu0 %v6286_v21  ;;  %4602 = vmatpush3.bf16.msra.mxu1 %v4928_v16 }
 0x1e9   : > { %2132 = vmatprep.mubr.bf16.mxu0 %v6296_v25 }
 0x1ee   : > { %2306 = vmatmul.mubr.bf16.gmra.mrb[48].mxu1 %v6282_v20  ;;  %v4929_v20 = vld [vmem:[#allocation15 + $0x20] sm:$0xff]  }
 0x1ef   : > { %2315 = vmatprep.mubr.bf16.mxu1 %v6286_v21  ;;  %4603 = vmatprep.subr.bf16.mxu1 %v4929_v20 }
 0x1f0   : > { %2133 = vmatmul.mubr.bf16.gmra.mrb[56].mxu0 %v6296_v25  ;;  %4604 = vmatpush3.bf16.msra.mxu1 %v4929_v20 }
 0x1f1   : > { %2142 = vmatprep.mubr.bf16.mxu0 %v6306_v29 }
 0x1f6   : > { %2316 = vmatmul.mubr.bf16.gmra.mrb[52].mxu1 %v6286_v21  ;;  %v4930_v21 = vld [vmem:[#allocation15 + $0x28] sm:$0xff]  }
 0x1f7   : > { %2325 = vmatprep.mubr.bf16.mxu1 %v6296_v25  ;;  %4605 = vmatprep.subr.bf16.mxu1 %v4930_v21 }
 0x1f8   : > { %2143 = vmatmul.mubr.bf16.gmra.mrb[60].mxu0 %v6306_v29  ;;  %4606 = vmatpush3.bf16.msra.mxu1 %v4930_v21 }
 0x1f9   : > { %2152 = vmatprep.mubr.bf16.mxu0 %v6310_v30 }
 0x1fe   : > { %2326 = vmatmul.mubr.bf16.gmra.mrb[56].mxu1 %v6296_v25  ;;  %v4932_v25 = vld [vmem:[#allocation15 + $0x30] sm:$0xff]  }
 0x1ff   : > { %2335 = vmatprep.mubr.bf16.mxu1 %v6306_v29  ;;  %4607 = vmatprep.subr.bf16.mxu1 %v4932_v25 }
 0x200   : > { %2153 = vmatmul.mubr.bf16.gmra.mrb[64].mxu0 %v6310_v30  ;;  %4608 = vmatpush3.bf16.msra.mxu1 %v4932_v25 }
 0x201   : > { %2162 = vmatprep.mubr.bf16.mxu0 %v6320_v34 }
 0x206   : > { %2336 = vmatmul.mubr.bf16.gmra.mrb[60].mxu1 %v6306_v29  ;;  %v4933_v29 = vld [vmem:[#allocation15 + $0x38] sm:$0xff]  }
 0x207   : > { %2345 = vmatprep.mubr.bf16.mxu1 %v6310_v30  ;;  %4609 = vmatprep.subr.bf16.mxu1 %v4933_v29 }
 0x208   : > { %2163 = vmatmul.mubr.bf16.gmra.mrb[68].mxu0 %v6320_v34  ;;  %4610 = vmatpush3.bf16.msra.mxu1 %v4933_v29 }
 0x209   : > { %2172 = vmatprep.mubr.bf16.mxu0 %v6330_v38 }
 0x20e   : > { %2346 = vmatmul.mubr.bf16.gmra.mrb[64].mxu1 %v6310_v30  ;;  %v4931_v30 = vld [vmem:[#allocation13] sm:$0xff]  }
 0x20f   : > { %2355 = vmatprep.mubr.bf16.mxu1 %v6320_v34  ;;  %4547 = vmatprep.subr.bf16.mxu0 %v4931_v30 }
 0x210   : > { %2173 = vmatmul.mubr.bf16.gmra.mrb[72].mxu0 %v6330_v38 }
 0x211   : > { %2182 = vmatprep.mubr.bf16.mxu0 %v6334_v39  ;;  %4548 = vmatpush3.bf16.msra.mxu0 %v4931_v30 }
 0x216   : > { %2356 = vmatmul.mubr.bf16.gmra.mrb[68].mxu1 %v6320_v34  ;;  %v4934_v34 = vld [vmem:[#allocation13 + $0x8] sm:$0xff]  }
 0x217   : > { %2365 = vmatprep.mubr.bf16.mxu1 %v6330_v38  ;;  %4549 = vmatprep.subr.bf16.mxu0 %v4934_v34 }
 0x218   : > { %2183 = vmatmul.mubr.bf16.gmra.mrb[76].mxu0 %v6334_v39 }
 0x219   : > { %2192 = vmatprep.mubr.bf16.mxu0 %v6344_v43  ;;  %4550 = vmatpush3.bf16.msra.mxu0 %v4934_v34 }
 0x21e   : > { %2366 = vmatmul.mubr.bf16.gmra.mrb[72].mxu1 %v6330_v38  ;;  %v764_v38 = vlaneseq }
 0x21f   : > { %2375 = vmatprep.mubr.bf16.mxu1 %v6334_v39 }
 0x220   : > { %2193 = vmatmul.mubr.bf16.gmra.mrb[80].mxu0 %v6344_v43 }
 0x221   : > { %2202 = vmatprep.mubr.bf16.mxu0 %v6354_v47 }
 0x226   : > { %2376 = vmatmul.mubr.bf16.gmra.mrb[76].mxu1 %v6334_v39  ;;  %v6685_v39 = vshrl.u32 %v764_v38, 7 }
 0x227   : > { %2385 = vmatprep.mubr.bf16.mxu1 %v6344_v43 }
 0x228   : > { %2203 = vmatmul.mubr.bf16.gmra.mrb[84].mxu0 %v6354_v47 }
 0x229   : > { %2212 = vmatprep.mubr.bf16.mxu0 %v6358_v48 }
 0x22e   : > { %2386 = vmatmul.mubr.bf16.gmra.mrb[80].mxu1 %v6344_v43  ;;  %v4935_v43 = vld [vmem:[#allocation13 + $0x10] sm:$0xff]  }
 0x22f   : > { %2395 = vmatprep.mubr.bf16.mxu1 %v6354_v47  ;;  %4551 = vmatprep.subr.bf16.mxu0 %v4935_v43 }
 0x230   : > { %2213 = vmatmul.mubr.bf16.gmra.mrb[88].mxu0 %v6358_v48 }
 0x231   : > { %2222 = vmatprep.mubr.bf16.mxu0 %v6368_v52  ;;  %4552 = vmatpush3.bf16.msra.mxu0 %v4935_v43 }
 0x232   : > { %4553 = vmatprep.subr.bf16.mxu0 %v4936_v26 }
 0x235   : > { %4554 = vmatpush3.bf16.msra.mxu0 %v4936_v26 }
 0x236   : > { %2396 = vmatmul.mubr.bf16.gmra.mrb[84].mxu1 %v6354_v47  ;;  %v8113_v47 = vsub.s32 0, %v6685_v39  ;;  %4555 = vmatprep.subr.bf16.mxu0 %v4937_v18 }
 0x237   : > { %2405 = vmatprep.mubr.bf16.mxu1 %v6358_v48 }
 0x238   : > { %2223 = vmatmul.mubr.bf16.gmra.mrb[92].mxu0 %v6368_v52  ;;  %v6697_v33 = vrot.slane %v6691_v36, %v8113_v47 }
 0x239   : > { %4556 = vmatpush3.bf16.msra.mxu0 %v4937_v18 }
 0x23a   : > { %4557 = vmatprep.subr.bf16.mxu0 %v4938_v37 }
 0x23d   : > { %4558 = vmatpush3.bf16.msra.mxu0 %v4938_v37 }
 0x23e   : > { %2406 = vmatmul.mubr.bf16.gmra.mrb[88].mxu1 %v6358_v48  ;;  %v8112_v48 = vsub.s32 1, %v6685_v39 }
 0x23f   : > { %2415 = vmatprep.mubr.bf16.mxu1 %v6368_v52 }
 0x246   : > { %2416 = vmatmul.mubr.bf16.gmra.mrb[92].mxu1 %v6368_v52  ;;  %v6702_v52 = vrot.slane %v6691_v36, %v8112_v48 }
 0x253   : > { %v1138_v45 = vpop.f32.mrb[0].mxu0  ;;  %v6704_v15 = vpop.f32.mrb[0].mxu1 }
 0x254   : > { %v1139_v27 = vadd.f32 %v1138_v45, %v6697_v33  ;;  %v1140_v41 = vpop.f32.mrb[1].mxu0  ;;  %v6707_v17 = vpop.f32.mrb[1].mxu1 }
 0x255   : > { %v1141_v24 = vadd.f32 %v1140_v41, %v6702_v52  ;;  %v1142_v22 = vpop.f32.mrb[2].mxu0  ;;  %v6710_v23 = vpop.f32.mrb[2].mxu1  ;;  %v4939_v41 = vld [vmem:[#allocation13 + $0x30] sm:$0xff]  }
 0x256   : > { %v4269_v40 = vmul.f32 -1.442695, %v1139_v27  ;;  %v1143_v32 = vadd.f32 %v1142_v22, %v6697_v33  ;;  %v1144_v19 = vpop.f32.mrb[3].mxu0  ;;  %v6713_v35 = vpop.f32.mrb[3].mxu1  ;;  %4559 = vmatprep.subr.bf16.mxu0 %v4939_v41 }
 0x257   : > { %v4270_v42 = vmul.f32 -1.442695, %v1141_v24  ;;  %v1145_v44 = vadd.f32 %v1144_v19, %v6702_v52  ;;  %4560 = vmatpush3.bf16.msra.mxu0 %v4939_v41 }
 0x258   : > { %4941 = vpow2.f32 %v4269_v40  ;;  %v4271_v28 = vmul.f32 -1.442695, %v1143_v32 }
 0x259   : > { %4943 = vpow2.f32 %v4270_v42  ;;  %v4272_v31 = vmul.f32 -1.442695, %v1145_v44 }
 0x25a   : > { %4945 = vpow2.f32 %v4271_v28 }
 0x25b   : > { %4947 = vpow2.f32 %v4272_v31  ;;  %v1148_v7 = vpop.f32.mrb[4].mxu0  ;;  %v6716_v11 = vpop.f32.mrb[4].mxu1 }
 0x25c   : > { %v1149_v12 = vadd.f32 %v1148_v7, %v6697_v33  ;;  %v1150_v16 = vpop.f32.mrb[5].mxu0  ;;  %v6719_v20 = vpop.f32.mrb[5].mxu1  ;;  %v4940_v7 = vld [vmem:[#allocation13 + $0x38] sm:$0xff]  }
 0x25d   : > { %v1151_v21 = vadd.f32 %v1150_v16, %v6702_v52  ;;  %v1152_v25 = vpop.f32.mrb[6].mxu0  ;;  %v6722_v29 = vpop.f32.mrb[6].mxu1  ;;  %v8111_v16 = vsub.s32 3, %v6685_v39  ;;  %4561 = vmatprep.subr.bf16.mxu0 %v4940_v7 }
 0x25e   : > { %v4273_v30 = vmul.f32 -1.442695, %v1149_v12  ;;  %v1153_v34 = vadd.f32 %v1152_v25, %v6697_v33  ;;  %v1154_v38 = vpop.f32.mrb[7].mxu0  ;;  %v6725_v43 = vpop.f32.mrb[7].mxu1  ;;  %4562 = vmatpush3.bf16.msra.mxu0 %v4940_v7 }
 0x25f   : > { %v4274_v26 = vmul.f32 -1.442695, %v1151_v21  ;;  %v1155_v45 = vadd.f32 %v1154_v38, %v6702_v52 }
 0x260   : > { %4949 = vpow2.f32 %v4273_v30  ;;  %v4275_v27 = vmul.f32 -1.442695, %v1153_v34 }
 0x261   : > { %4951 = vpow2.f32 %v4274_v26  ;;  %v4276_v24 = vmul.f32 -1.442695, %v1155_v45 }
 0x262   : > { %v4942_v22 = vpop.eup %4941  ;;  %4953 = vpow2.f32 %v4275_v27 }
 0x263   : > { %v4944_v40 = vpop.eup %4943  ;;  %v1426_v32 = vadd.f32 1.0, %v4942_v22  ;;  %4955 = vpow2.f32 %v4276_v24  ;;  %v1158_v19 = vpop.f32.mrb[8].mxu0  ;;  %v8110_v24 = vsub.s32 2, %v6685_v39 }
 0x264   : > { %v6728_v18 = vpop.f32.mrb[8].mxu1  ;;  %v4946_v42 = vpop.eup %4945  ;;  %v1427_v44 = vadd.f32 1.0, %v4944_v40  ;;  %v1159_v28 = vadd.f32 %v1158_v19, %v6697_v33  ;;  %v6745_v19 = vrot.slane %v6691_v36, %v8111_v16 }
 0x265   : > { %v1160_v31 = vpop.f32.mrb[9].mxu0  ;;  %v6731_v37 = vpop.f32.mrb[9].mxu1  ;;  %4957 = vrcp.f32 %v1426_v32  ;;  %v1428_v21 = vadd.f32 1.0, %v4946_v42 }
 0x266   : > { %v4948_v12 = vpop.eup %4947  ;;  %v1161_v25 = vadd.f32 %v1160_v31, %v6702_v52  ;;  %v1162_v30 = vpop.f32.mrb[10].mxu0  ;;  %4959 = vrcp.f32 %v1427_v44  ;;  %v4277_v26 = vmul.f32 -1.442695, %v1159_v28  ;;  %v6750_v31 = vrot.slane %v6691_v36, %v8110_v24 }
 0x267   : > { %v6735_v34 = vpop.f32.mrb[10].mxu1  ;;  %v1429_v38 = vadd.f32 1.0, %v4948_v12  ;;  %v1163_v45 = vadd.f32 %v1162_v30, %v6697_v33  ;;  %v1164_v27 = vpop.f32.mrb[11].mxu0  ;;  %4961 = vrcp.f32 %v1428_v21  ;;  %v1274_v9 = vadd.f32 %v6731_v37, %v6745_v19 }
 0x268   : > { %v6738_v41 = vpop.f32.mrb[11].mxu1  ;;  %v4278_v22 = vmul.f32 -1.442695, %v1161_v25  ;;  %v1165_v40 = vadd.f32 %v1164_v27, %v6702_v52  ;;  %v1252_v47 = vadd.f32 %v6704_v15, %v6750_v31  ;;  %v1256_v15 = vadd.f32 %v6710_v23, %v6750_v31 }
 0x269   : > { %4963 = vrcp.f32 %v1429_v38  ;;  %v4279_v32 = vmul.f32 -1.442695, %v1163_v45 }
 0x26a   : > { %4965 = vpow2.f32 %v4277_v26  ;;  %v4280_v42 = vmul.f32 -1.442695, %v1165_v40  ;;  %v4950_v44 = vpop.eup %4949 }
 0x26b   : > { %4967 = vpow2.f32 %v4278_v22  ;;  %v4952_v28 = vpop.eup %4951  ;;  %v1430_v12 = vadd.f32 1.0, %v4950_v44  ;;  %v1168_v7 = vpop.f32.mrb[12].mxu0  ;;  %v1254_v22 = vadd.f32 %v6707_v17, %v6745_v19 }
 0x26c   : > { %4969 = vpow2.f32 %v4279_v32  ;;  %v6752_v21 = vpop.f32.mrb[12].mxu1  ;;  %v4954_v25 = vpop.eup %4953  ;;  %v1431_v30 = vadd.f32 1.0, %v4952_v28  ;;  %v1169_v38 = vadd.f32 %v1168_v7, %v6697_v33 }
 0x26d   : > { %4971 = vpow2.f32 %v4280_v42  ;;  %v1170_v26 = vpop.f32.mrb[13].mxu0  ;;  %v6755_v45 = vpop.f32.mrb[13].mxu1  ;;  %v1432_v36 = vadd.f32 1.0, %v4954_v25 }
 0x26e   : > { %v4956_v27 = vpop.eup %4955  ;;  %4973 = vrcp.f32 %v1430_v12  ;;  %v1171_v40 = vadd.f32 %v1170_v26, %v6702_v52  ;;  %v1172_v32 = vpop.f32.mrb[14].mxu0  ;;  %v4281_v28 = vmul.f32 -1.442695, %v1169_v38  ;;  %v6816_v37 = vadd.f32 %v6755_v45, %v6745_v19 }
 0x26f   : > { %v6760_v44 = vpop.f32.mrb[14].mxu1  ;;  %4975 = vrcp.f32 %v1431_v30  ;;  %v1433_v24 = vadd.f32 1.0, %v4956_v27  ;;  %v1173_v42 = vadd.f32 %v1172_v32, %v6697_v33  ;;  %v1174_v7 = vpop.f32.mrb[15].mxu0  ;;  %v1258_v30 = vadd.f32 %v6713_v35, %v6745_v19 }
 0x270   : > { %v6763_v16 = vpop.f32.mrb[15].mxu1  ;;  %v4958_v48 = vpop.eup %4957  ;;  %4977 = vrcp.f32 %v1432_v36  ;;  %v4282_v17 = vmul.f32 -1.442695, %v1171_v40  ;;  %v1175_v12 = vadd.f32 %v1174_v7, %v6702_v52  ;;  %v6826_v45 = vadd.f32 %v6760_v44, %v6750_v31 }
 0x271   : > { %v6768_v25 = vpop.eup %4959  ;;  %v1522_v26 = vmul.f32 %v4958_v48, %v1254_v22  ;;  %4979 = vrcp.f32 %v1433_v24  ;;  %v4283_v38 = vmul.f32 -1.442695, %v1173_v42 }
 0x272   : > { %v4962_v27 = vpop.eup %4961  ;;  %4981 = vpow2.f32 %v4281_v28  ;;  %v4284_v32 = vmul.f32 -1.442695, %v1175_v12 }
 0x273   : > { %v6772_v14 = vpop.eup %4963  ;;  %v1538_v13 = vadd.f32 %v1522_v26, %v1252_v47  ;;  %v1523_v36 = vmul.f32 %v4962_v27, %v1258_v30  ;;  %4983 = vpow2.f32 %v4282_v17  ;;  %v1178_v7 = vpop.f32.mrb[16].mxu0  ;;  %v1264_v27 = vadd.f32 %v6719_v20, %v6745_v19 }
 0x274   : > { %v4966_v40 = vpop.eup %4965  ;;  %4985 = vpow2.f32 %v4283_v38  ;;  %v6776_v48 = vpop.f32.mrb[16].mxu1  ;;  %v1179_v28 = vadd.f32 %v1178_v7, %v6697_v33  ;;  %v6798_v20 = vadd.f32 %v6728_v18, %v6750_v31 }
 0x275   : > { %v4968_v22 = vpop.eup %4967  ;;  %4987 = vtanh.f32 %v1538_v13  ;;  %v1539_v35 = vadd.f32 %v1523_v36, %v1256_v15  ;;  %v1434_v24 = vadd.f32 1.0, %v4966_v40  ;;  %v1180_v42 = vpop.f32.mrb[17].mxu0  ;;  %v1262_v13 = vadd.f32 %v6716_v11, %v6750_v31 }
 0x276   : > { %v6779_v12 = vpop.f32.mrb[17].mxu1  ;;  %v4970_v47 = vpop.eup %4969  ;;  %v1435_v26 = vadd.f32 1.0, %v4968_v22  ;;  %4989 = vpow2.f32 %v4284_v32  ;;  %v1181_v23 = vadd.f32 %v1180_v42, %v6702_v52  ;;  %v1266_v32 = vadd.f32 %v6722_v29, %v6750_v31 }
 0x277   : > { %v1182_v17 = vpop.f32.mrb[18].mxu0  ;;  %v6782_v30 = vpop.f32.mrb[18].mxu1  ;;  %4991 = vtanh.f32 %v1539_v35  ;;  %v1436_v15 = vadd.f32 1.0, %v4970_v47  ;;  %v4285_v42 = vmul.f32 -1.442695, %v1179_v28  ;;  %v1268_v11 = vadd.f32 %v6725_v43, %v6745_v19 }
 0x278   : > { %v4972_v38 = vpop.eup %4971  ;;  %v1184_v36 = vpop.f32.mrb[19].mxu0  ;;  %4993 = vrcp.f32 %v1434_v24  ;;  %v6804_v29 = vadd.f32 %v6735_v34, %v6750_v31  ;;  %v4286_v24 = vmul.f32 -1.442695, %v1181_v23  ;;  %v1278_v43 = vadd.f32 %v6738_v41, %v6745_v19 }
 0x279   : > { %v6788_v40 = vpop.f32.mrb[19].mxu1  ;;  %v4974_v7 = vpop.eup %4973  ;;  %v1437_v22 = vadd.f32 1.0, %v4972_v38  ;;  %4995 = vrcp.f32 %v1435_v26  ;;  %v6812_v26 = vadd.f32 %v6752_v21, %v6750_v31  ;;  %v1183_v34 = vadd.f32 %v1182_v17, %v6697_v33 }
 0x27a   : > { %v6792_v10 = vpop.eup %4975  ;;  %v1524_v35 = vmul.f32 %v4974_v7, %v1264_v27  ;;  %4997 = vrcp.f32 %v1436_v15  ;;  %v1185_v41 = vadd.f32 %v1184_v36, %v6702_v52 }
 0x27b   : > { %v4978_v47 = vpop.eup %4977  ;;  %4999 = vrcp.f32 %v1437_v22  ;;  %v1188_v23 = vpop.f32.mrb[20].mxu0  ;;  %v4287_v44 = vmul.f32 -1.442695, %v1183_v34 }
 0x27c   : > { %v6806_v28 = vpop.eup %4979  ;;  %v1540_v38 = vadd.f32 %v1524_v35, %v1262_v13  ;;  %v1525_v27 = vmul.f32 %v4978_v47, %v1268_v11  ;;  %5001 = vpow2.f32 %v4285_v42  ;;  %v6819_v15 = vpop.f32.mrb[20].mxu1  ;;  %v1189_v17 = vadd.f32 %v1188_v23, %v6697_v33 }
 0x27d   : > { %v4982_v18 = vpop.eup %4981  ;;  %v1190_v35 = vpop.f32.mrb[21].mxu0  ;;  %v1602_v23 = vmul.f32 %v6768_v25, %v6350_v46 }
 0x27e   : > { %v4984_v13 = vpop.eup %4983  ;;  %5003 = vtanh.f32 %v1540_v38  ;;  %v1541_v7 = vadd.f32 %v1525_v27, %v1266_v32  ;;  %v1438_v22 = vadd.f32 1.0, %v4982_v18  ;;  %v6822_v11 = vpop.f32.mrb[21].mxu1  ;;  %v1191_v36 = vadd.f32 %v1190_v35, %v6702_v52 }
 0x27f   : > { %v4986_v21 = vpop.eup %4985  ;;  %v1439_v47 = vadd.f32 1.0, %v4984_v13  ;;  %5005 = vpow2.f32 %v4286_v24  ;;  %v1192_v42 = vpop.f32.mrb[22].mxu0  ;;  %v1570_v13 = vsub.f32 1.0, %v6768_v25  ;;  %v1571_v24 = vsub.f32 1.0, %v6772_v14 }
 0x280   : > { %v6829_v8 = vpop.f32.mrb[22].mxu1  ;;  %v4988_v38 = vpop.eup %4987  ;;  %5007 = vtanh.f32 %v1541_v7  ;;  %v1440_v32 = vadd.f32 1.0, %v4986_v21  ;;  %v4288_v7 = vmul.f32 -1.442695, %v1185_v41  ;;  %v1603_v35 = vmul.f32 %v6772_v14, %v6360_v49 }
 0x281   : > { %v1194_v27 = vpop.f32.mrb[23].mxu0  ;;  %v6832_v18 = vpop.f32.mrb[23].mxu1  ;;  %5009 = vrcp.f32 %v1438_v22  ;;  %v4289_v3 = vmul.f32 -1.442695, %v1189_v17  ;;  %v1586_v2 = vmul.f32 %v4988_v38, %v1570_v13  ;;  %v1288_v22 = vadd.f32 %v6763_v16, %v6745_v19 }
 0x282   : > { %v4990_v6 = vpop.eup %4989  ;;  %5011 = vrcp.f32 %v1439_v47  ;;  %v4290_v25 = vmul.f32 -1.442695, %v1191_v36  ;;  %v1195_v16 = vadd.f32 %v1194_v27, %v6702_v52 }
 0x283   : > { %v4992_v5 = vpop.eup %4991  ;;  %v1441_v4 = vadd.f32 1.0, %v4990_v6  ;;  %5013 = vrcp.f32 %v1440_v32  ;;  %v1193_v6 = vadd.f32 %v1192_v42, %v6697_v33  ;;  %v1198_v41 = vpop.f32.mrb[24].mxu0  ;;  %v6847_v14 = vadd.f32 %v1602_v23, %v1586_v2 }
 0x284   : > { %v4994_v21 = vpop.eup %4993  ;;  %v1587_v1 = vmul.f32 %v4992_v5, %v1571_v24  ;;  %v6845_v47 = vpop.f32.mrb[24].mxu1  ;;  %v1572_v42 = vsub.f32 1.0, %v6792_v10  ;;  %v6860_v2 = vadd.f32 %v6779_v12, %v6745_v19  ;;  %v1604_v12 = vmul.f32 %v6792_v10, %v6362_v50 }
 0x285   : > { %v6840_v0 = vpop.eup %4995  ;;  %v1526_v34 = vmul.f32 %v4994_v21, %v1274_v9  ;;  %5015 = vrcp.f32 %v1441_v4  ;;  %8274 = vst [vmem:[#allocation86_spill] sm:$0xff] %v6847_v14  ;;  %v1200_v38 = vpop.f32.mrb[25].mxu0 }
 0x286   : > { %v4998_v46 = vpop.eup %4997  ;;  %5017 = vpow2.f32 %v4287_v44  ;;  %v6849_v17 = vadd.f32 %v1603_v35, %v1587_v1  ;;  %v6855_v32 = vpop.f32.mrb[25].mxu1  ;;  %v1199_v1 = vadd.f32 %v1198_v41, %v6697_v33  ;;  %v1201_v27 = vadd.f32 %v1200_v38, %v6702_v52 }
 0x287   : > { %v6851_v5 = vpop.eup %4999  ;;  %v1542_v9 = vadd.f32 %v1526_v34, %v6798_v20  ;;  %v1527_v4 = vmul.f32 %v4998_v46, %v1278_v43  ;;  %5019 = vpow2.f32 %v4288_v7  ;;  %v1202_v13 = vpop.f32.mrb[26].mxu0  ;;  %v4291_v35 = vmul.f32 -1.442695, %v1193_v6 }
 0x288   : > { %8275 = vst [vmem:[#allocation87_spill] sm:$0xff] %v6849_v17  ;;  %v5002_v36 = vpop.eup %5001  ;;  %5021 = vpow2.f32 %v4289_v3  ;;  %v6863_v44 = vpop.f32.mrb[26].mxu1  ;;  %v1573_v3 = vsub.f32 1.0, %v6806_v28  ;;  %v1605_v34 = vmul.f32 %v6806_v28, %v6364_v51  ;;  %v1574_v41 = vsub.f32 1.0, %v6840_v0 }
 0x289   : > { %v5004_v46 = vpop.eup %5003  ;;  %5023 = vtanh.f32 %v1542_v9  ;;  %v1543_v20 = vadd.f32 %v1527_v4, %v6804_v29  ;;  %v1442_v43 = vadd.f32 1.0, %v5002_v36  ;;  %v1204_v24 = vpop.f32.mrb[27].mxu0  ;;  %v4292_v29 = vmul.f32 -1.442695, %v1195_v16 }
 0x28a   : > { %v6867_v23 = vpop.f32.mrb[27].mxu1  ;;  %v5006_v7 = vpop.eup %5005  ;;  %5025 = vpow2.f32 %v4290_v25  ;;  %v4293_v4 = vmul.f32 -1.442695, %v1199_v1  ;;  %v3602_v38 = vpack.c.bf16 %v6849_v17, %v6847_v14  ;;  %v1588_v36 = vmul.f32 %v5004_v46, %v1572_v42 }
 0x28b   : > { %v5008_v21 = vpop.eup %5007  ;;  %5027 = vtanh.f32 %v1543_v20  ;;  %v4294_v6 = vmul.f32 -1.442695, %v1201_v27  ;;  %v1203_v49 = vadd.f32 %v1202_v13, %v6697_v33  ;;  %v1443_v20 = vadd.f32 1.0, %v5006_v7  ;;  %v1321_v1 = vpop.f32.mrb[28].mxu1 }
 0x28c   : > { %v5010_v9 = vpop.eup %5009  ;;  %5029 = vrcp.f32 %v1442_v43  ;;  %v1589_v50 = vmul.f32 %v5008_v21, %v1573_v3  ;;  %v1205_v16 = vadd.f32 %v1204_v24, %v6702_v52  ;;  %4611 = vmatprep.mubr.bf16.mxu1 %v3602_v38  ;;  %v1208_v43 = vpop.f32.mrb[28].mxu0  ;;  %v6882_v51 = vadd.f32 %v1604_v12, %v1588_v36 }
 0x28d   : > { %v6877_v10 = vpop.eup %5011  ;;  %v1528_v25 = vmul.f32 %v5010_v9, %v6816_v37  ;;  %5031 = vpow2.f32 %v4291_v35  ;;  %v1209_v37 = vadd.f32 %v1208_v43, %v6697_v33  ;;  %v1210_v13 = vpop.f32.mrb[29].mxu0  ;;  %v6889_v7 = vadd.f32 %v1321_v1, %v6750_v31 }
 0x28e   : > { %v5014_v28 = vpop.eup %5013  ;;  %8276 = vst [vmem:[#allocation88_spill] sm:$0xff] %v6882_v51  ;;  %5033 = vpow2.f32 %v4292_v29  ;;  %v1323_v27 = vpop.f32.mrb[29].mxu1  ;;  %v1211_v24 = vadd.f32 %v1210_v13, %v6702_v52  ;;  %v4295_v29 = vmul.f32 -1.442695, %v1203_v49 }
 0x28f   : > { %v6884_v17 = vpop.eup %5015  ;;  %v1544_v42 = vadd.f32 %v1528_v25, %v6812_v26  ;;  %v1529_v46 = vmul.f32 %v5014_v28, %v1288_v22  ;;  %5035 = vpow2.f32 %v4293_v4  ;;  %v6893_v12 = vadd.f32 %v1323_v27, %v6745_v19  ;;  %v1212_v35 = vpop.f32.mrb[30].mxu0 }
 0x290   : > { %v5018_v3 = vpop.eup %5017  ;;  %v1325_v21 = vpop.f32.mrb[30].mxu1  ;;  %v4296_v28 = vmul.f32 -1.442695, %v1205_v16  ;;  %v1213_v43 = vadd.f32 %v1212_v35, %v6697_v33  ;;  %v6910_v33 = vld [vmem:[%s8046_s9] sm:$0xf] }
 0x291   : > { %v5020_v9 = vpop.eup %5019  ;;  %5037 = vtanh.f32 %v1544_v42  ;;  %v1545_v26 = vadd.f32 %v1529_v46, %v6826_v45  ;;  %v1444_v22 = vadd.f32 1.0, %v5018_v3  ;;  %v1214_v38 = vpop.f32.mrb[31].mxu0  ;;  %v6898_v27 = vadd.f32 %v1325_v21, %v6750_v31 }
 0x292   : > { %v1327_v36 = vpop.f32.mrb[31].mxu1  ;;  %v5022_v25 = vpop.eup %5021  ;;  %5039 = vrcp.f32 %v1443_v20  ;;  %v1445_v4 = vadd.f32 1.0, %v5020_v9  ;;  %v1215_v42 = vadd.f32 %v1214_v38, %v6702_v52  ;;  %v6904_v45 = vadd.f32 %v1605_v34, %v1589_v50 }
 0x293   : > { %v5024_v1 = vpop.eup %5023  ;;  %5041 = vtanh.f32 %v1545_v26  ;;  %v1446_v13 = vadd.f32 1.0, %v5022_v25  ;;  %v6902_v49 = vadd.f32 %v1327_v36, %v6745_v19  ;;  %v1575_v20 = vsub.f32 1.0, %v6851_v5  ;;  %v2074_v34 = vpop.f32.mrb[32].mxu0 }
 0x294   : > { %v5026_v14 = vpop.eup %5025  ;;  %5043 = vrcp.f32 %v1444_v22  ;;  %8277 = vst [vmem:[#allocation89_spill] sm:$0xff] %v6904_v45  ;;  %v4297_v46 = vmul.f32 -1.442695, %v1209_v37  ;;  %v1590_v3 = vmul.f32 %v5024_v1, %v1574_v41  ;;  %v1606_v52 = vmul.f32 %v6840_v0, %v6370_v53  ;;  %v2076_v41 = vpop.f32.mrb[33].mxu0 }
 0x295   : > { %v5028_v16 = vpop.eup %5027  ;;  %5045 = vpow2.f32 %v4294_v6  ;;  %v3603_v50 = vpack.c.bf16 %v6904_v45, %v6882_v51  ;;  %v1607_v9 = vmul.f32 %v6851_v5, %v6372_v54  ;;  %v1292_v26 = vadd.f32 %v6776_v48, %v6750_v31  ;;  %v2078_v48 = vpop.f32.mrb[34].mxu0 }
 0x296   : > { %v5030_v35 = vpop.eup %5029  ;;  %5047 = vrcp.f32 %v1446_v13  ;;  %v1591_v21 = vmul.f32 %v5028_v16, %v1575_v20  ;;  %v6921_v37 = vadd.f32 %v1606_v52, %v1590_v3  ;;  %v8279_v22 = vsub.s32 0, %v6685_v39  ;;  %v6935_v20 = vpop.f32.mrb[35].mxu0 }
 0x297   : > { %v1530_v6 = vmul.f32 %v5030_v35, %v6860_v2  ;;  %5049 = vrcp.f32 %v1445_v4  ;;  %v5032_v0 = vpop.eup %5031  ;;  %v8280_v36 = vsub.s32 1, %v6685_v39  ;;  %4612 = vmatmul.mubr.bf16.vlgmr.msra.gmra.mrb[96].mxu1 %v3603_v50  ;;  %v1447_v1 = vadd.f32 1.0, %v5026_v14 }
 0x298   : > { %8278 = vst [vmem:[#allocation90_spill] sm:$0xff] %v6921_v37  ;;  %v6926_v38 = vrot.slane %v6910_v33, %v8279_v22  ;;  %5051 = vpow2.f32 %v4295_v29  ;;  %v6933_v5 = vadd.f32 %v1607_v9, %v1591_v21  ;;  %v5034_v2 = vpop.eup %5033  ;;  %v1448_v13 = vadd.f32 1.0, %v5032_v0 }
 0x299   : > { %v6931_v25 = vrot.slane %v6910_v33, %v8280_v36  ;;  %v1546_v4 = vadd.f32 %v1530_v6, %v1292_v26  ;;  %5053 = vpow2.f32 %v4296_v28  ;;  %v5036_v16 = vpop.eup %5035  ;;  %v1296_v3 = vadd.f32 %v6782_v30, %v6750_v31 }
 0x29a   : > { %8281 = vst [vmem:[#allocation91_spill] sm:$0xff] %v6933_v5  ;;  %5055 = vpow2.f32 %v4297_v46  ;;  %v4298_v52 = vmul.f32 -1.442695, %v1211_v24  ;;  %v1576_v35 = vsub.f32 1.0, %v6877_v10  ;;  %v1449_v50 = vadd.f32 1.0, %v5034_v2 }
 0x29b   : > { %v5038_v29 = vpop.eup %5037  ;;  %5057 = vtanh.f32 %v1546_v4  ;;  %v1450_v21 = vadd.f32 1.0, %v5036_v16  ;;  %v3604_v9 = vpack.c.bf16 %v6933_v5, %v6921_v37  ;;  %v2075_v28 = vadd.f32 %v2074_v34, %v6926_v38  ;;  %v6948_v2 = vpop.f32.mrb[36].mxu0 }
 0x29c   : > { %v5040_v14 = vpop.eup %5039  ;;  %5059 = vrcp.f32 %v1448_v13  ;;  %v1577_v26 = vsub.f32 1.0, %v6884_v17  ;;  %v1592_v6 = vmul.f32 %v5038_v29, %v1576_v35  ;;  %v1298_v30 = vadd.f32 %v6788_v40, %v6745_v19 }
 0x29d   : > { %v5042_v0 = vpop.eup %5041  ;;  %5061 = vrcp.f32 %v1447_v1  ;;  %v4299_v24 = vmul.f32 -1.442695, %v1213_v43  ;;  %4615 = vmatprep.mubr.bf16.mxu1 %v3604_v9  ;;  %v1608_v46 = vmul.f32 %v6877_v10, %v6374_v55  ;;  %v4300_v36 = vmul.f32 -1.442695, %v1215_v42  ;;  %v6954_v43 = vpop.f32.mrb[37].mxu0 }
 0x29e   : > { %v5044_v22 = vpop.eup %5043  ;;  %5063 = vrcp.f32 %v1450_v21  ;;  %v1593_v4 = vmul.f32 %v5042_v0, %v1577_v26  ;;  %v1609_v34 = vmul.f32 %v6884_v17, %v6376_v56  ;;  %v1304_v40 = vadd.f32 %v6822_v11, %v6745_v19  ;;  %v6960_v29 = vpop.f32.mrb[38].mxu0 }
 0x29f   : > { %v5046_v13 = vpop.eup %5045  ;;  %v1531_v16 = vmul.f32 %v5044_v22, %v1298_v30  ;;  %5065 = vrcp.f32 %v1449_v50  ;;  %v6956_v1 = vadd.f32 %v1608_v46, %v1592_v6  ;;  %v1302_v42 = vadd.f32 %v6819_v15, %v6750_v31  ;;  %v6967_v50 = vpop.f32.mrb[39].mxu0 }
 0x2a0   : > { %v5048_v10 = vpop.eup %5047  ;;  %5067 = vpow2.f32 %v4298_v52  ;;  %v4365_v35 = vmul.f32 -1.442695, %v2075_v28  ;;  %v6962_v21 = vadd.f32 %v1609_v34, %v1593_v4  ;;  %v2077_v11 = vadd.f32 %v2076_v41, %v6931_v25 }
 0x2a1   : > { %8282 = vst [vmem:[#allocation92_spill] sm:$0xff] %v6956_v1  ;;  %v6964_v17 = vpop.eup %5049  ;;  %v1547_v9 = vadd.f32 %v1531_v16, %v1296_v3  ;;  %v1532_v26 = vmul.f32 %v5048_v10, %v1304_v40  ;;  %5069 = vpow2.f32 %v4299_v24  ;;  %v1451_v0 = vadd.f32 1.0, %v5046_v13  ;;  %v6974_v24 = vpop.f32.mrb[32].mxu1 }
 0x2a2   : > { %8283 = vst [vmem:[#allocation93_spill] sm:$0xff] %v6962_v21  ;;  %v5052_v6 = vpop.eup %5051  ;;  %5071 = vpow2.f32 %v4300_v36  ;;  %v2079_v15 = vadd.f32 %v2078_v48, %v6926_v38  ;;  %v3605_v46 = vpack.c.bf16 %v6962_v21, %v6956_v1  ;;  %v1308_v3 = vadd.f32 %v6832_v18, %v6745_v19  ;;  %v6978_v13 = vpop.f32.mrb[33].mxu1  ;;  %v8315_v1 = vld [vmem:[#allocation48_spill] sm:$0xff] }
 0x2a3   : > { %v5054_v52 = vpop.eup %5053  ;;  %5073 = vtanh.f32 %v1547_v9  ;;  %v1548_v28 = vadd.f32 %v1532_v26, %v1302_v42  ;;  %v1452_v30 = vadd.f32 1.0, %v5052_v6  ;;  %v1578_v41 = vsub.f32 1.0, %v5040_v14  ;;  %v6980_v10 = vpop.f32.mrb[40].mxu0 }
 0x2a4   : > { %v5056_v22 = vpop.eup %5055  ;;  %5075 = vpow2.f32 %v4365_v35  ;;  %v4366_v34 = vmul.f32 -1.442695, %v2077_v11  ;;  %v2081_v48 = vadd.f32 %v6935_v20, %v6931_v25  ;;  %4616 = vmatmul.mubr.bf16.gmra.mrb[100].mxu1 %v3605_v46  ;;  %v4367_v40 = vmul.f32 -1.442695, %v2079_v15  ;;  %v6983_v35 = vpop.f32.mrb[34].mxu1 }
 0x2a5   : > { %v5058_v4 = vpop.eup %5057  ;;  %5077 = vtanh.f32 %v1548_v28  ;;  %v1454_v36 = vadd.f32 1.0, %v5056_v22  ;;  %v1610_v42 = vmul.f32 %v5040_v14, %v6378_v57  ;;  %v1306_v26 = vadd.f32 %v6829_v8, %v6750_v31  ;;  %v6991_v6 = vpop.f32.mrb[41].mxu0 }
 0x2a6   : > { %v5060_v16 = vpop.eup %5059  ;;  %5079 = vrcp.f32 %v1452_v30  ;;  %v1594_v18 = vmul.f32 %v5058_v4, %v1578_v41  ;;  %v1314_v20 = vadd.f32 %v6855_v32, %v6745_v19  ;;  %v6993_v15 = vpop.f32.mrb[35].mxu1  ;;  %v1312_v14 = vadd.f32 %v6845_v47, %v6750_v31 }
 0x2a7   : > { %v6985_v9 = vpop.eup %5061  ;;  %v1533_v11 = vmul.f32 %v5060_v16, %v1308_v3  ;;  %5081 = vrcp.f32 %v1451_v0  ;;  %v1453_v30 = vadd.f32 1.0, %v5054_v52  ;;  %v6997_v46 = vpop.f32.mrb[42].mxu0  ;;  %v2085_v32 = vadd.f32 %v6948_v2, %v6926_v38 }
 0x2a8   : > { %v5064_v28 = vpop.eup %5063  ;;  %5083 = vrcp.f32 %v1454_v36  ;;  %v6999_v22 = vadd.f32 %v1610_v42, %v1594_v18  ;;  %v7005_v41 = vpop.f32.mrb[43].mxu0  ;;  %v8285_v16 = vsub.s32 3, %v6685_v39  ;;  %v4368_v52 = vmul.f32 -1.442695, %v2081_v48 }
 0x2a9   : > { %v7001_v8 = vpop.eup %5065  ;;  %v1549_v0 = vadd.f32 %v1533_v11, %v1306_v26  ;;  %v1534_v3 = vmul.f32 %v5064_v28, %v1314_v20  ;;  %5085 = vpow2.f32 %v4366_v34  ;;  %v2087_v42 = vadd.f32 %v6954_v43, %v6931_v25  ;;  %v7017_v28 = vpop.f32.mrb[36].mxu1 }
 0x2aa   : > { %8284 = vst [vmem:[#allocation94_spill] sm:$0xff] %v6999_v22  ;;  %v5068_v4 = vpop.eup %5067  ;;  %v7010_v47 = vrot.slane %v6910_v33, %v8285_v16  ;;  %5087 = vpow2.f32 %v4367_v40  ;;  %v1579_v34 = vsub.f32 1.0, %v6964_v17  ;;  %v2089_v20 = vadd.f32 %v6960_v29, %v6926_v38 }
 0x2ab   : > { %v5070_v36 = vpop.eup %5069  ;;  %5089 = vtanh.f32 %v1549_v0  ;;  %v1550_v18 = vadd.f32 %v1534_v3, %v1312_v14  ;;  %v1455_v2 = vadd.f32 1.0, %v5068_v4  ;;  %v1316_v48 = vadd.f32 %v6863_v44, %v6750_v31  ;;  %v7023_v14 = vpop.f32.mrb[37].mxu1 }
 0x2ac   : > { %v5072_v26 = vpop.eup %5071  ;;  %5091 = vrcp.f32 %v1453_v30  ;;  %v1456_v11 = vadd.f32 1.0, %v5070_v36  ;;  %v4369_v40 = vmul.f32 -1.442695, %v2085_v32  ;;  %v2091_v43 = vadd.f32 %v6967_v50, %v6931_v25  ;;  %v7027_v29 = vpop.f32.mrb[44].mxu0 }
 0x2ad   : > { %v5074_v16 = vpop.eup %5073  ;;  %5093 = vtanh.f32 %v1550_v18  ;;  %v1611_v3 = vmul.f32 %v6964_v17, %v6380_v58  ;;  %v1580_v4 = vsub.f32 1.0, %v6985_v9  ;;  %v7030_v36 = vpop.f32.mrb[38].mxu1  ;;  %v1318_v31 = vadd.f32 %v6867_v23, %v6745_v19 }
 0x2ae   : > { %v5076_v0 = vpop.eup %5075  ;;  %5095 = vpow2.f32 %v4368_v52  ;;  %v1595_v30 = vmul.f32 %v5074_v16, %v1579_v34  ;;  %v4370_v50 = vmul.f32 -1.442695, %v2087_v42  ;;  %v7034_v32 = vpop.f32.mrb[45].mxu0  ;;  %v4371_v17 = vmul.f32 -1.442695, %v2089_v20 }
 0x2af   : > { %v5078_v18 = vpop.eup %5077  ;;  %5097 = vrcp.f32 %v1456_v11  ;;  %v2618_v44 = vadd.f32 1.0, %v5076_v0  ;;  %v7036_v52 = vpop.f32.mrb[39].mxu1  ;;  %v4372_v56 = vmul.f32 -1.442695, %v2091_v43  ;;  %v2095_v19 = vadd.f32 %v6980_v10, %v6926_v38 }
 0x2b0   : > { %v5080_v34 = vpop.eup %5079  ;;  %5099 = vrcp.f32 %v1455_v2  ;;  %v7038_v16 = vadd.f32 %v1611_v3, %v1595_v30  ;;  %v7040_v58 = vpop.f32.mrb[46].mxu0  ;;  %v1596_v57 = vmul.f32 %v5078_v18, %v1580_v4  ;;  %v1457_v11 = vadd.f32 1.0, %v5072_v26 }
 0x2b1   : > { %v5082_v54 = vpop.eup %5081  ;;  %v1535_v5 = vmul.f32 %v5080_v34, %v1318_v31  ;;  %5101 = vrcp.f32 %v2618_v44  ;;  %v7044_v23 = vpop.f32.mrb[47].mxu0  ;;  %v1612_v20 = vmul.f32 %v6985_v9, %v6382_v59  ;;  %v2097_v43 = vadd.f32 %v6991_v6, %v6931_v25 }
 0x2b2   : > { %8286 = vst [vmem:[#allocation95_spill] sm:$0xff] %v7038_v16  ;;  %v5084_v42 = vpop.eup %5083  ;;  %5103 = vpow2.f32 %v4369_v40  ;;  %v3606_v2 = vpack.c.bf16 %v7038_v16, %v6999_v22  ;;  %v2099_v26 = vadd.f32 %v6997_v46, %v6926_v38  ;;  %v1581_v40 = vsub.f32 1.0, %v7001_v8  ;;  %v7058_v18 = vpop.f32.mrb[40].mxu1 }
 0x2b3   : > { %v5086_v0 = vpop.eup %5085  ;;  %v1551_v30 = vadd.f32 %v1535_v5, %v1316_v48  ;;  %v1536_v3 = vmul.f32 %v5084_v42, %v6893_v12  ;;  %5105 = vpow2.f32 %v4370_v50  ;;  %v7056_v4 = vadd.f32 %v1612_v20, %v1596_v57  ;;  %v7061_v31 = vpop.f32.mrb[41].mxu1 }
 0x2b4   : > { %v5088_v10 = vpop.eup %5087  ;;  %5107 = vpow2.f32 %v4371_v17  ;;  %4619 = vmatprep.mubr.bf16.mxu1 %v3606_v2  ;;  %v2619_v5 = vadd.f32 1.0, %v5086_v0  ;;  %v1613_v46 = vmul.f32 %v7001_v8, %v6384_v60  ;;  %v7067_v50 = vpop.f32.mrb[48].mxu0  ;;  %v1582_v57 = vsub.f32 1.0, %v5082_v54 }
 0x2b5   : > { %8287 = vst [vmem:[#allocation96_spill] sm:$0xff] %v7056_v4  ;;  %v5090_v9 = vpop.eup %5089  ;;  %5109 = vtanh.f32 %v1551_v30  ;;  %v1552_v12 = vadd.f32 %v1536_v3, %v6889_v7  ;;  %v2620_v48 = vadd.f32 1.0, %v5088_v10  ;;  %v7069_v34 = vpop.f32.mrb[42].mxu1  ;;  %v8288_v42 = vsub.s32 2, %v6685_v39 }
 0x2b6   : > { %v7063_v6 = vpop.eup %5091  ;;  %5111 = vrcp.f32 %v1457_v11  ;;  %v1597_v44 = vmul.f32 %v5090_v9, %v1581_v40  ;;  %v4373_v2 = vmul.f32 -1.442695, %v2095_v19  ;;  %v2270_v11 = vadd.f32 %v6978_v13, %v7010_v47  ;;  %v7078_v20 = vpop.f32.mrb[49].mxu0 }
 0x2b7   : > { %v5094_v17 = vpop.eup %5093  ;;  %v7074_v7 = vrot.slane %v6910_v33, %v8288_v42  ;;  %5113 = vtanh.f32 %v1552_v12  ;;  %v7080_v0 = vpop.f32.mrb[43].mxu1  ;;  %v4374_v30 = vmul.f32 -1.442695, %v2097_v43  ;;  %v4375_v33 = vmul.f32 -1.442695, %v2099_v26 }
 0x2b8   : > { %v5096_v8 = vpop.eup %5095  ;;  %5115 = vrcp.f32 %v2620_v48  ;;  %v7082_v3 = vadd.f32 %v1613_v46, %v1597_v44  ;;  %v7084_v10 = vpop.f32.mrb[50].mxu0  ;;  %v1598_v39 = vmul.f32 %v5094_v17, %v1582_v57  ;;  %v2101_v19 = vadd.f32 %v7005_v41, %v6931_v25 }
 0x2b9   : > { %v5098_v40 = vpop.eup %5097  ;;  %5117 = vrcp.f32 %v2619_v5  ;;  %v7088_v9 = vpop.f32.mrb[51].mxu0  ;;  %v1614_v48 = vmul.f32 %v5082_v54, %v6386_v61  ;;  %v2621_v46 = vadd.f32 1.0, %v5096_v8  ;;  %v2268_v26 = vadd.f32 %v6974_v24, %v7074_v7 }
 0x2ba   : > { %8289 = vst [vmem:[#allocation97_spill] sm:$0xff] %v7082_v3  ;;  %v7090_v13 = vpop.eup %5099  ;;  %v1537_v12 = vmul.f32 %v5098_v40, %v6902_v49  ;;  %5119 = vpow2.f32 %v4372_v56  ;;  %v3607_v43 = vpack.c.bf16 %v7082_v3, %v7056_v4  ;;  %v2105_v41 = vadd.f32 %v7027_v29, %v6926_v38  ;;  %v7103_v17 = vpop.f32.mrb[44].mxu1 }
 0x2bb   : > { %v5102_v44 = vpop.eup %5101  ;;  %5121 = vpow2.f32 %v4373_v2  ;;  %v7101_v56 = vadd.f32 %v1614_v48, %v1598_v39  ;;  %v4376_v2 = vmul.f32 -1.442695, %v2101_v19  ;;  %v7105_v8 = vpop.f32.mrb[45].mxu1  ;;  %v2109_v29 = vadd.f32 %v7040_v58, %v6926_v38 }
 0x2bc   : > { %v5104_v5 = vpop.eup %5103  ;;  %v1553_v57 = vadd.f32 %v1537_v12, %v6898_v27  ;;  %5123 = vpow2.f32 %v4374_v30  ;;  %v2810_v49 = vmul.f32 %v5102_v44, %v2270_v11  ;;  %4620 = vmatmul.mubr.bf16.gmra.mrb[104].mxu1 %v3607_v43  ;;  %v1583_v27 = vsub.f32 1.0, %v7063_v6  ;;  %v7110_v11 = vpop.f32.mrb[52].mxu0 }
 0x2bd   : > { %8290 = vst [vmem:[#allocation98_spill] sm:$0xff] %v7101_v56  ;;  %v5106_v54 = vpop.eup %5105  ;;  %v2622_v42 = vadd.f32 1.0, %v5104_v5  ;;  %5125 = vpow2.f32 %v4375_v33  ;;  %v7112_v30 = vpop.f32.mrb[46].mxu1  ;;  %v2107_v33 = vadd.f32 %v7034_v32, %v6931_v25  ;;  %v4377_v44 = vmul.f32 -1.442695, %v2105_v41 }
 0x2be   : > { %v5108_v24 = vpop.eup %5107  ;;  %5127 = vtanh.f32 %v1553_v57  ;;  %v2842_v40 = vadd.f32 %v2810_v49, %v2268_v26  ;;  %v7116_v19 = vpop.f32.mrb[53].mxu0  ;;  %v1615_v26 = vmul.f32 %v7063_v6, %v6388_v62  ;;  %v2623_v49 = vadd.f32 1.0, %v5106_v54 }
 0x2bf   : > { %v5110_v39 = vpop.eup %5109  ;;  %5129 = vrcp.f32 %v2622_v42  ;;  %v2624_v12 = vadd.f32 1.0, %v5108_v24  ;;  %v7118_v43 = vpop.f32.mrb[47].mxu1  ;;  %v2272_v42 = vadd.f32 %v6983_v35, %v7074_v7  ;;  %v2274_v32 = vadd.f32 %v6993_v15, %v7010_v47 }
 0x2c0   : > { %v5112_v48 = vpop.eup %5111  ;;  %5131 = vrcp.f32 %v2621_v46  ;;  %v1599_v58 = vmul.f32 %v5110_v39, %v1583_v27  ;;  %v7122_v5 = vpop.f32.mrb[54].mxu0  ;;  %v4379_v46 = vmul.f32 -1.442695, %v2109_v29  ;;  %v1584_v6 = vsub.f32 1.0, %v7090_v13 }
 0x2c1   : > { %v5114_v57 = vpop.eup %5113  ;;  %5133 = vrcp.f32 %v2624_v12  ;;  %v7128_v24 = vpop.f32.mrb[55].mxu0  ;;  %v4378_v54 = vmul.f32 -1.442695, %v2107_v33  ;;  %v2111_v35 = vadd.f32 %v7044_v23, %v6931_v25  ;;  %v2115_v15 = vadd.f32 %v7067_v50, %v6926_v38 }
 0x2c2   : > { %v5116_v61 = vpop.eup %5115  ;;  %5135 = vpow2.f32 %v4376_v2  ;;  %v7130_v41 = vadd.f32 %v1615_v26, %v1599_v58  ;;  %v1600_v29 = vmul.f32 %v5114_v57, %v1584_v6  ;;  %v7141_v58 = vpop.f32.mrb[48].mxu1  ;;  %v2280_v50 = vadd.f32 %v7023_v14, %v7010_v47 }
 0x2c3   : > { %v7133_v27 = vpop.eup %5117  ;;  %5137 = vtanh.f32 %v2842_v40  ;;  %v2811_v39 = vmul.f32 %v5116_v61, %v2274_v32  ;;  %v1616_v61 = vmul.f32 %v7090_v13, %v6390_v63  ;;  %v7145_v33 = vpop.f32.mrb[49].mxu1  ;;  %v8293_v63 = vld [vmem:[#allocation85_spill] sm:$0xff] }
 0x2c4   : > { %8291 = vst [vmem:[#allocation99_spill] sm:$0xff] %v7130_v41  ;;  %v5120_v12 = vpop.eup %5119  ;;  %5139 = vpow2.f32 %v4377_v44  ;;  %v3608_v2 = vpack.c.bf16 %v7130_v41, %v7101_v56  ;;  %v7149_v32 = vpop.f32.mrb[56].mxu0  ;;  %v4381_v56 = vmul.f32 -1.442695, %v2115_v15  ;;  %v2310_v4 = vadd.f32 %v7145_v33, %v7010_v47 }
 0x2c5   : > { %v5122_v26 = vpop.eup %5121  ;;  %5141 = vrcp.f32 %v2623_v49  ;;  %v2625_v62 = vadd.f32 1.0, %v5120_v12  ;;  %v2843_v40 = vadd.f32 %v2811_v39, %v2272_v42  ;;  %v7151_v57 = vpop.f32.mrb[50].mxu1  ;;  %v2278_v49 = vadd.f32 %v7017_v28, %v7074_v7 }
 0x2c6   : > { %v5124_v23 = vpop.eup %5123  ;;  %v2626_v44 = vadd.f32 1.0, %v5122_v26  ;;  %5143 = vpow2.f32 %v4379_v46  ;;  %4623 = vmatprep.mubr.bf16.mxu1 %v3608_v2  ;;  %v1585_v42 = vsub.f32 1.0, %v5112_v48  ;;  %v7155_v13 = vadd.f32 %v1616_v61, %v1600_v29  ;;  %v7157_v39 = vpop.f32.mrb[57].mxu0 }
 0x2c7   : > { %v5126_v6 = vpop.eup %5125  ;;  %5145 = vpow2.f32 %v4378_v54  ;;  %v7159_v12 = vpop.f32.mrb[51].mxu1  ;;  %v4380_v2 = vmul.f32 -1.442695, %v2111_v35  ;;  %v2117_v26 = vadd.f32 %v7078_v20, %v6931_v25  ;;  %v1617_v29 = vmul.f32 %v5112_v48, %v8293_v63 }
 0x2c8   : > { %8292 = vst [vmem:[#allocation100_spill] sm:$0xff] %v7155_v13  ;;  %v5128_v46 = vpop.eup %5127  ;;  %5147 = vrcp.f32 %v2626_v44  ;;  %v2628_v14 = vadd.f32 1.0, %v5126_v6  ;;  %v7163_v41 = vpop.f32.mrb[58].mxu0  ;;  %v2284_v35 = vadd.f32 %v7036_v52, %v7010_v47  ;;  %v2119_v20 = vadd.f32 %v7084_v10, %v6926_v38 }
 0x2c9   : > { %v5130_v54 = vpop.eup %5129  ;;  %5149 = vrcp.f32 %v2625_v62  ;;  %v1601_v28 = vmul.f32 %v5128_v46, %v1585_v42  ;;  %v7166_v61 = vpop.f32.mrb[59].mxu0  ;;  %v2627_v6 = vadd.f32 1.0, %v5124_v23  ;;  %v2282_v62 = vadd.f32 %v7030_v36, %v7074_v7 }
 0x2ca   : > { %v7168_v16 = vpop.eup %5131  ;;  %5151 = vrcp.f32 %v2628_v14  ;;  %v2812_v60 = vmul.f32 %v5130_v54, %v2280_v50  ;;  %v4382_v46 = vmul.f32 -1.442695, %v2117_v26  ;;  %v7178_v50 = vpop.f32.mrb[52].mxu1  ;;  %v2121_v10 = vadd.f32 %v7088_v9, %v6931_v25 }
 0x2cb   : > { %v5134_v44 = vpop.eup %5133  ;;  %5153 = vtanh.f32 %v2843_v40  ;;  %v7176_v15 = vadd.f32 %v1617_v29, %v1601_v28  ;;  %v7184_v23 = vpop.f32.mrb[53].mxu1  ;;  %v2290_v9 = vadd.f32 %v7061_v31, %v7010_v47 }
 0x2cc   : > { %v5136_v48 = vpop.eup %5135  ;;  %5155 = vpow2.f32 %v4380_v2  ;;  %v2844_v42 = vadd.f32 %v2812_v60, %v2278_v49  ;;  %v2813_v14 = vmul.f32 %v5134_v44, %v2284_v35  ;;  %v4383_v2 = vmul.f32 -1.442695, %v2119_v20  ;;  %v7187_v49 = vpop.f32.mrb[60].mxu0 }
 0x2cd   : > { %8294 = vst [vmem:[#allocation101_spill] sm:$0xff] %v7176_v15  ;;  %v5138_v54 = vpop.eup %5137  ;;  %v2629_v52 = vadd.f32 1.0, %v5136_v48  ;;  %5157 = vpow2.f32 %v4381_v56  ;;  %v3609_v40 = vpack.c.bf16 %v7176_v15, %v7155_v13  ;;  %v2906_v60 = vsub.f32 1.0, %v7133_v27  ;;  %v7189_v26 = vpop.f32.mrb[54].mxu1 }
 0x2ce   : > { %v5140_v36 = vpop.eup %5139  ;;  %5159 = vtanh.f32 %v2844_v42  ;;  %v2845_v28 = vadd.f32 %v2813_v14, %v2282_v62  ;;  %v2125_v35 = vadd.f32 %v7110_v11, %v6926_v38  ;;  %v7197_v44 = vpop.f32.mrb[61].mxu0  ;;  %v2127_v48 = vadd.f32 %v7116_v19, %v6931_v25  ;;  %v8295_v14 = vld [vmem:[#allocation38_spill] sm:$0xff] }
 0x2cf   : > { %v7191_v29 = vpop.eup %5141  ;;  %5161 = vrcp.f32 %v2627_v6  ;;  %v2630_v56 = vadd.f32 1.0, %v5140_v36  ;;  %4624 = vmatmul.mubr.bf16.gmra.mrb[108].mxu1 %v3609_v40  ;;  %v7199_v20 = vpop.f32.mrb[55].mxu1  ;;  %v2938_v42 = vmul.f32 %v5138_v54, %v2906_v60  ;;  %v2970_v6 = vmul.f32 %v7133_v27, %v8295_v14 }
 0x2d0   : > { %v5144_v62 = vpop.eup %5143  ;;  %5163 = vrcp.f32 %v2629_v52  ;;  %v7205_v36 = vpop.f32.mrb[62].mxu0  ;;  %v4384_v11 = vmul.f32 -1.442695, %v2121_v10  ;;  %v2288_v40 = vadd.f32 %v7058_v18, %v7074_v7  ;;  %v2292_v19 = vadd.f32 %v7069_v34, %v7074_v7 }
 0x2d1   : > { %v5146_v31 = vpop.eup %5145  ;;  %5165 = vrcp.f32 %v2630_v56  ;;  %v2632_v63 = vadd.f32 1.0, %v5144_v62  ;;  %v7209_v15 = vpop.f32.mrb[63].mxu0  ;;  %v2294_v54 = vadd.f32 %v7080_v0, %v7010_v47  ;;  %v7215_v27 = vadd.f32 %v2970_v6, %v2938_v42 }
 0x2d2   : > { %v5148_v13 = vpop.eup %5147  ;;  %5167 = vpow2.f32 %v4382_v46  ;;  %v4385_v10 = vmul.f32 -1.442695, %v2125_v35  ;;  %v2129_v18 = vadd.f32 %v7122_v5, %v6926_v38  ;;  %v4386_v62 = vmul.f32 -1.442695, %v2127_v48  ;;  %v7224_v14 = vpop.f32.mrb[56].mxu1  ;;  %v8297_v35 = vld [vmem:[#allocation39_spill] sm:$0xff] }
 0x2d3   : > { %8296 = vst [vmem:[#allocation102_spill] sm:$0xff] %v7215_v27  ;;  %v7217_v52 = vpop.eup %5149  ;;  %5169 = vrcp.f32 %v2632_v63  ;;  %v2814_v60 = vmul.f32 %v5148_v13, %v2290_v9  ;;  %v2131_v46 = vadd.f32 %v7128_v24, %v6931_v25  ;;  %v2907_v34 = vsub.f32 1.0, %v7168_v16  ;;  %v7226_v13 = vpop.f32.mrb[57].mxu1 }
 0x2d4   : > { %v5152_v56 = vpop.eup %5151  ;;  %5171 = vtanh.f32 %v2845_v28  ;;  %v2631_v42 = vadd.f32 1.0, %v5146_v31  ;;  %v2300_v5 = vadd.f32 %v7105_v8, %v7010_v47  ;;  %v2971_v24 = vmul.f32 %v7168_v16, %v8297_v35  ;;  %v7232_v48 = vpop.f32.mrb[64].mxu0 }
 0x2d5   : > { %v5154_v0 = vpop.eup %5153  ;;  %5173 = vpow2.f32 %v4383_v2  ;;  %v2846_v6 = vadd.f32 %v2814_v60, %v2288_v40  ;;  %v2815_v63 = vmul.f32 %v5152_v56, %v2294_v54  ;;  %v7234_v3 = vpop.f32.mrb[58].mxu1  ;;  %v2908_v2 = vsub.f32 1.0, %v7191_v29 }
 0x2d6   : > { %v5156_v9 = vpop.eup %5155  ;;  %5175 = vpow2.f32 %v4384_v11  ;;  %v2939_v28 = vmul.f32 %v5154_v0, %v2907_v34  ;;  %v2135_v40 = vadd.f32 %v7149_v32, %v6926_v38  ;;  %v7239_v11 = vpop.f32.mrb[65].mxu0  ;;  %v2137_v16 = vadd.f32 %v7157_v39, %v6931_v25 }
 0x2d7   : > { %v5158_v22 = vpop.eup %5157  ;;  %5177 = vtanh.f32 %v2846_v6  ;;  %v2847_v31 = vadd.f32 %v2815_v63, %v2292_v19  ;;  %v7241_v54 = vpop.f32.mrb[59].mxu1  ;;  %v8299_v6 = vld [vmem:[#allocation40_spill] sm:$0xff]  ;;  %v2633_v32 = vadd.f32 1.0, %v5156_v9  ;;  %v2145_v33 = vadd.f32 %v7187_v49, %v6926_v38 }
 0x2d8   : > { %v5160_v8 = vpop.eup %5159  ;;  %v2634_v60 = vadd.f32 1.0, %v5158_v22  ;;  %5179 = vpow2.f32 %v4385_v10  ;;  %v7245_v56 = vadd.f32 %v2971_v24, %v2939_v28  ;;  %v7247_v34 = vpop.f32.mrb[66].mxu0  ;;  %v2972_v19 = vmul.f32 %v7191_v29, %v8299_v6 }
 0x2d9   : > { %v5162_v0 = vpop.eup %5161  ;;  %5181 = vrcp.f32 %v2631_v42  ;;  %v2940_v63 = vmul.f32 %v5160_v8, %v2908_v2  ;;  %v7251_v35 = vpop.f32.mrb[67].mxu0  ;;  %v4387_v22 = vmul.f32 -1.442695, %v2129_v18  ;;  %v4388_v10 = vmul.f32 -1.442695, %v2131_v46 }
 0x2da   : > { %8298 = vst [vmem:[#allocation103_spill] sm:$0xff] %v7245_v56  ;;  %v7253_v59 = vpop.eup %5163  ;;  %5183 = vrcp.f32 %v2634_v60  ;;  %v3034_v39 = vpack.c.bf16 %v7245_v56, %v7215_v27  ;;  %v2298_v24 = vadd.f32 %v7103_v17, %v7074_v7  ;;  %v2302_v29 = vadd.f32 %v7112_v30, %v7074_v7  ;;  %v7265_v46 = vpop.f32.mrb[60].mxu1  ;;  %v8301_v56 = vld [vmem:[#allocation41_spill] sm:$0xff] }
 0x2db   : > { %v5166_v28 = vpop.eup %5165  ;;  %5185 = vpow2.f32 %v4386_v62  ;;  %v7261_v42 = vadd.f32 %v2972_v19, %v2940_v63  ;;  %v4389_v8 = vmul.f32 -1.442695, %v2135_v40  ;;  %v2304_v18 = vadd.f32 %v7118_v43, %v7010_v47  ;;  %v7270_v19 = vpop.f32.mrb[61].mxu1 }
 0x2dc   : > { %v5168_v9 = vpop.eup %5167  ;;  %5187 = vtanh.f32 %v2847_v31  ;;  %v2816_v2 = vmul.f32 %v5166_v28, %v2300_v5  ;;  %4563 = vmatprep.mubr.bf16.mxu0 %v3034_v39  ;;  %v2909_v62 = vsub.f32 1.0, %v7217_v52  ;;  %v4390_v17 = vmul.f32 -1.442695, %v2137_v16  ;;  %v7274_v40 = vpop.f32.mrb[68].mxu0 }
 0x2dd   : > { %8300 = vst [vmem:[#allocation104_spill] sm:$0xff] %v7261_v42  ;;  %v5170_v60 = vpop.eup %5169  ;;  %5189 = vrcp.f32 %v2633_v32  ;;  %v2139_v30 = vadd.f32 %v7163_v41, %v6926_v38  ;;  %v2141_v43 = vadd.f32 %v7166_v61, %v6931_v25  ;;  %v7276_v39 = vpop.f32.mrb[62].mxu1  ;;  %v2973_v16 = vmul.f32 %v7217_v52, %v8301_v56  ;;  %v8303_v56 = vld [vmem:[#allocation42_spill] sm:$0xff] }
 0x2de   : > { %v5172_v63 = vpop.eup %5171  ;;  %5191 = vpow2.f32 %v4387_v22  ;;  %v2848_v5 = vadd.f32 %v2816_v2, %v2298_v24  ;;  %v2817_v31 = vmul.f32 %v5170_v60, %v2304_v18  ;;  %v2635_v32 = vadd.f32 1.0, %v5168_v9  ;;  %v7280_v27 = vpop.f32.mrb[69].mxu0 }
 0x2df   : > { %v5174_v28 = vpop.eup %5173  ;;  %5193 = vpow2.f32 %v4388_v10  ;;  %v2941_v41 = vmul.f32 %v5172_v63, %v2909_v62  ;;  %v7282_v6 = vpop.f32.mrb[63].mxu1  ;;  %v2910_v61 = vsub.f32 1.0, %v5162_v0  ;;  %v4391_v62 = vmul.f32 -1.442695, %v2139_v30 }
 0x2e0   : > { %v5176_v22 = vpop.eup %5175  ;;  %v2636_v24 = vadd.f32 1.0, %v5174_v28  ;;  %5195 = vtanh.f32 %v2848_v5  ;;  %v2849_v2 = vadd.f32 %v2817_v31, %v2302_v29  ;;  %v7284_v18 = vpop.f32.mrb[70].mxu0  ;;  %v2974_v28 = vmul.f32 %v5162_v0, %v8303_v56 }
 0x2e1   : > { %v5178_v60 = vpop.eup %5177  ;;  %5197 = vpow2.f32 %v4389_v8  ;;  %v7288_v52 = vadd.f32 %v2973_v16, %v2941_v41  ;;  %v7290_v10 = vpop.f32.mrb[71].mxu0  ;;  %v4392_v31 = vmul.f32 -1.442695, %v2141_v43  ;;  %v2637_v53 = vadd.f32 1.0, %v5176_v22 }
 0x2e2   : > { %v5180_v9 = vpop.eup %5179  ;;  %5199 = vrcp.f32 %v2636_v24  ;;  %v2942_v63 = vmul.f32 %v5178_v60, %v2910_v61  ;;  %v7299_v41 = vpop.f32.mrb[64].mxu1  ;;  %v2308_v0 = vadd.f32 %v7141_v58, %v7074_v7  ;;  %v2911_v43 = vsub.f32 1.0, %v7253_v59 }
 0x2e3   : > { %8302 = vst [vmem:[#allocation105_spill] sm:$0xff] %v7288_v52  ;;  %v5182_v5 = vpop.eup %5181  ;;  %5201 = vrcp.f32 %v2635_v32  ;;  %v2638_v29 = vadd.f32 1.0, %v5180_v9  ;;  %v3035_v8 = vpack.c.bf16 %v7288_v52, %v7261_v42  ;;  %v7304_v24 = vpop.f32.mrb[65].mxu1  ;;  %v2312_v49 = vadd.f32 %v7151_v57, %v7074_v7 }
 0x2e4   : > { %v5184_v21 = vpop.eup %5183  ;;  %5203 = vpow2.f32 %v4390_v17  ;;  %v7297_v16 = vadd.f32 %v2974_v28, %v2942_v63  ;;  %v2147_v17 = vadd.f32 %v7197_v44, %v6931_v25  ;;  %v2149_v61 = vadd.f32 %v7205_v36, %v6926_v38  ;;  %v7312_v60 = vpop.f32.mrb[72].mxu0  ;;  %v8305_v63 = vld [vmem:[#allocation43_spill] sm:$0xff] }
 0x2e5   : > { %v5186_v30 = vpop.eup %5185  ;;  %5205 = vrcp.f32 %v2638_v29  ;;  %v2818_v32 = vmul.f32 %v5184_v21, %v2310_v4  ;;  %4564 = vmatmul.mubr.bf16.vlgmr.msra.gmra.mrb[96].mxu0 %v3035_v8  ;;  %v7314_v58 = vpop.f32.mrb[66].mxu1  ;;  %v4393_v36 = vmul.f32 -1.442695, %v2145_v33  ;;  %v2314_v8 = vadd.f32 %v7159_v12, %v7010_v47 }
 0x2e6   : > { %8304 = vst [vmem:[#allocation106_spill] sm:$0xff] %v7297_v16  ;;  %v5188_v22 = vpop.eup %5187  ;;  %5207 = vtanh.f32 %v2849_v2  ;;  %v2975_v2 = vmul.f32 %v7253_v59, %v8305_v63  ;;  %v7320_v28 = vpop.f32.mrb[73].mxu0  ;;  %v2639_v29 = vadd.f32 1.0, %v5186_v30  ;;  %v4395_v63 = vmul.f32 -1.442695, %v2149_v61 }
 0x2e7   : > { %v7316_v21 = vpop.eup %5189  ;;  %5209 = vpow2.f32 %v4391_v62  ;;  %v2850_v4 = vadd.f32 %v2818_v32, %v2308_v0  ;;  %v2943_v9 = vmul.f32 %v5188_v22, %v2911_v43  ;;  %v7322_v57 = vpop.f32.mrb[67].mxu1  ;;  %v2912_v32 = vsub.f32 1.0, %v5182_v5 }
 0x2e8   : > { %v5192_v44 = vpop.eup %5191  ;;  %5211 = vrcp.f32 %v2637_v53  ;;  %v7326_v56 = vpop.f32.mrb[74].mxu0  ;;  %v4394_v22 = vmul.f32 -1.442695, %v2147_v17  ;;  %v2151_v53 = vadd.f32 %v7209_v15, %v6931_v25  ;;  %v2320_v42 = vadd.f32 %v7184_v23, %v7010_v47 }
 0x2e9   : > { %v5194_v52 = vpop.eup %5193  ;;  %v2640_v62 = vadd.f32 1.0, %v5192_v44  ;;  %5213 = vpow2.f32 %v4392_v31  ;;  %v7328_v0 = vadd.f32 %v2975_v2, %v2943_v9  ;;  %v7330_v59 = vpop.f32.mrb[75].mxu0  ;;  %v8307_v44 = vld [vmem:[#allocation44_spill] sm:$0xff]  ;;  %v2155_v17 = vadd.f32 %v7232_v48, %v6926_v38 }
 0x2ea   : > { %v5196_v43 = vpop.eup %5195  ;;  %5215 = vtanh.f32 %v2850_v4  ;;  %v2976_v31 = vmul.f32 %v5182_v5, %v8307_v44  ;;  %v7341_v61 = vpop.f32.mrb[68].mxu1  ;;  %v2641_v4 = vadd.f32 1.0, %v5194_v52  ;;  %v2318_v52 = vadd.f32 %v7178_v50, %v7074_v7 }
 0x2eb   : > { %8306 = vst [vmem:[#allocation107_spill] sm:$0xff] %v7328_v0  ;;  %v5198_v33 = vpop.eup %5197  ;;  %5217 = vrcp.f32 %v2640_v62  ;;  %v3036_v12 = vpack.c.bf16 %v7328_v0, %v7297_v16  ;;  %v2944_v30 = vmul.f32 %v5196_v43, %v2912_v32  ;;  %v7345_v32 = vpop.f32.mrb[69].mxu1  ;;  %v4397_v50 = vmul.f32 -1.442695, %v2155_v17 }
 0x2ec   : > { %v5200_v9 = vpop.eup %5199  ;;  %5219 = vrcp.f32 %v2639_v29  ;;  %v2642_v2 = vadd.f32 1.0, %v5198_v33  ;;  %v4396_v29 = vmul.f32 -1.442695, %v2151_v53  ;;  %v7347_v43 = vpop.f32.mrb[76].mxu0  ;;  %v2157_v53 = vadd.f32 %v7239_v11, %v6931_v25 }
 0x2ed   : > { %v5202_v15 = vpop.eup %5201  ;;  %5221 = vpow2.f32 %v4393_v36  ;;  %v2819_v62 = vmul.f32 %v5200_v9, %v2314_v8  ;;  %4567 = vmatprep.mubr.bf16.mxu0 %v3036_v12  ;;  %v7343_v0 = vadd.f32 %v2976_v31, %v2944_v30  ;;  %v7349_v23 = vpop.f32.mrb[70].mxu1  ;;  %v2913_v36 = vsub.f32 1.0, %v7316_v21 }
 0x2ee   : > { %v5204_v5 = vpop.eup %5203  ;;  %5223 = vrcp.f32 %v2642_v2  ;;  %v7354_v8 = vpop.f32.mrb[77].mxu0  ;;  %v2159_v9 = vadd.f32 %v7247_v34, %v6926_v38  ;;  %v2324_v34 = vadd.f32 %v7199_v20, %v7010_v47  ;;  %v2914_v17 = vsub.f32 1.0, %v5202_v15 }
 0x2ef   : > { %8308 = vst [vmem:[#allocation108_spill] sm:$0xff] %v7343_v0  ;;  %v5206_v33 = vpop.eup %5205  ;;  %5225 = vpow2.f32 %v4394_v22  ;;  %v2851_v48 = vadd.f32 %v2819_v62, %v2312_v49  ;;  %v7356_v12 = vpop.f32.mrb[71].mxu1  ;;  %v8309_v62 = vld [vmem:[#allocation45_spill] sm:$0xff] }
 0x2f0   : > { %v5208_v30 = vpop.eup %5207  ;;  %5227 = vpow2.f32 %v4395_v63  ;;  %v2820_v31 = vmul.f32 %v5206_v33, %v2320_v42  ;;  %v7362_v22 = vpop.f32.mrb[78].mxu0  ;;  %v2977_v16 = vmul.f32 %v7316_v21, %v8309_v62  ;;  %v2643_v42 = vadd.f32 1.0, %v5204_v5 }
 0x2f1   : > { %v5210_v49 = vpop.eup %5209  ;;  %5229 = vrcp.f32 %v2641_v4  ;;  %v2945_v2 = vmul.f32 %v5208_v30, %v2913_v36  ;;  %v7366_v44 = vpop.f32.mrb[79].mxu0  ;;  %v4398_v36 = vmul.f32 -1.442695, %v2157_v53  ;;  %v4399_v21 = vmul.f32 -1.442695, %v2159_v9 }
 0x2f2   : > { %v7368_v37 = vpop.eup %5211  ;;  %v2644_v63 = vadd.f32 1.0, %v5210_v49  ;;  %5231 = vtanh.f32 %v2851_v48  ;;  %v2852_v11 = vadd.f32 %v2820_v31, %v2318_v52  ;;  %v2330_v30 = vadd.f32 %v7226_v13, %v7010_v47  ;;  %v7376_v62 = vpop.f32.mrb[72].mxu1  ;;  %v8311_v52 = vld [vmem:[#allocation46_spill] sm:$0xff] }
 0x2f3   : > { %v5214_v33 = vpop.eup %5213  ;;  %5233 = vpow2.f32 %v4396_v29  ;;  %v7372_v55 = vadd.f32 %v2977_v16, %v2945_v2  ;;  %v2978_v20 = vmul.f32 %v5202_v15, %v8311_v52  ;;  %v7381_v16 = vpop.f32.mrb[73].mxu1  ;;  %v2322_v53 = vadd.f32 %v7189_v26, %v7074_v7 }
 0x2f4   : > { %v5216_v4 = vpop.eup %5215  ;;  %5235 = vrcp.f32 %v2644_v63  ;;  %v2161_v13 = vadd.f32 %v7251_v35, %v6931_v25  ;;  %v7389_v49 = vpop.f32.mrb[80].mxu0  ;;  %v2165_v15 = vadd.f32 %v7274_v40, %v6926_v38 }
 0x2f5   : > { %8310 = vst [vmem:[#allocation109_spill] sm:$0xff] %v7372_v55  ;;  %v5218_v5 = vpop.eup %5217  ;;  %5237 = vtanh.f32 %v2852_v11  ;;  %v3037_v29 = vpack.c.bf16 %v7372_v55, %v7343_v0  ;;  %v2946_v48 = vmul.f32 %v5216_v4, %v2914_v17  ;;  %v7391_v2 = vpop.f32.mrb[74].mxu1  ;;  %v8313_v0 = vld [vmem:[#allocation47_spill] sm:$0xff] }
 0x2f6   : > { %v7383_v31 = vpop.eup %5219  ;;  %5239 = vrcp.f32 %v2643_v42  ;;  %v2821_v9 = vmul.f32 %v5218_v5, %v2324_v34  ;;  %v7397_v42 = vpop.f32.mrb[81].mxu0  ;;  %v2645_v34 = vadd.f32 1.0, %v5214_v33  ;;  %v4400_v55 = vmul.f32 -1.442695, %v2161_v13 }
 0x2f7   : > { %v5222_v63 = vpop.eup %5221  ;;  %5241 = vpow2.f32 %v4397_v50  ;;  %4568 = vmatmul.mubr.bf16.gmra.mrb[100].mxu0 %v3037_v29  ;;  %v7395_v11 = vadd.f32 %v2978_v20, %v2946_v48  ;;  %v7399_v17 = vpop.f32.mrb[75].mxu1  ;;  %v2328_v50 = vadd.f32 %v7224_v14, %v7074_v7  ;;  %v2167_v29 = vadd.f32 %v7280_v27, %v6931_v25 }
 0x2f8   : > { %v5224_v26 = vpop.eup %5223  ;;  %v2646_v4 = vadd.f32 1.0, %v5222_v63  ;;  %5243 = vpow2.f32 %v4398_v36  ;;  %v2853_v35 = vadd.f32 %v2821_v9, %v2322_v53  ;;  %v7401_v5 = vpop.f32.mrb[82].mxu0  ;;  %v2332_v33 = vadd.f32 %v7234_v3, %v7074_v7 }
 0x2f9   : > { %8312 = vst [vmem:[#allocation110_spill] sm:$0xff] %v7395_v11  ;;  %v5226_v52 = vpop.eup %5225  ;;  %5245 = vpow2.f32 %v4399_v21  ;;  %v2822_v40 = vmul.f32 %v5224_v26, %v2330_v30  ;;  %v7407_v48 = vpop.f32.mrb[83].mxu0  ;;  %v2169_v36 = vadd.f32 %v7284_v18, %v6926_v38  ;;  %v2915_v30 = vsub.f32 1.0, %v7368_v37 }
 0x2fa   : > { %v5228_v20 = vpop.eup %5227  ;;  %5247 = vrcp.f32 %v2646_v4  ;;  %v2647_v27 = vadd.f32 1.0, %v5226_v52  ;;  %v4401_v63 = vmul.f32 -1.442695, %v2165_v15  ;;  %v2334_v13 = vadd.f32 %v7241_v54, %v7010_v47  ;;  %v7418_v26 = vpop.f32.mrb[76].mxu1 }
 0x2fb   : > { %v7413_v53 = vpop.eup %5229  ;;  %v2648_v21 = vadd.f32 1.0, %v5228_v20  ;;  %5249 = vtanh.f32 %v2853_v35  ;;  %v2854_v14 = vadd.f32 %v2822_v40, %v2328_v50  ;;  %v4402_v4 = vmul.f32 -1.442695, %v2167_v29  ;;  %v7422_v35 = vpop.f32.mrb[77].mxu1 }
 0x2fc   : > { %v5232_v9 = vpop.eup %5231  ;;  %5251 = vrcp.f32 %v2645_v34  ;;  %v2979_v20 = vmul.f32 %v7368_v37, %v8313_v0  ;;  %v4403_v40 = vmul.f32 -1.442695, %v2169_v36  ;;  %v2171_v52 = vadd.f32 %v7290_v10, %v6931_v25  ;;  %v7427_v54 = vpop.f32.mrb[84].mxu0 }
 0x2fd   : > { %v5234_v3 = vpop.eup %5233  ;;  %5253 = vrcp.f32 %v2648_v21  ;;  %v2947_v18 = vmul.f32 %v5232_v9, %v2915_v30  ;;  %v2916_v15 = vsub.f32 1.0, %v7383_v31  ;;  %v7429_v34 = vpop.f32.mrb[78].mxu1  ;;  %v2340_v37 = vadd.f32 %v7270_v19, %v7010_v47 }
 0x2fe   : > { %v5236_v50 = vpop.eup %5235  ;;  %5255 = vpow2.f32 %v4400_v55  ;;  %v7435_v9 = vpop.f32.mrb[85].mxu0  ;;  %v2175_v10 = vadd.f32 %v7312_v60, %v6926_v38  ;;  %v2649_v19 = vadd.f32 1.0, %v5234_v3  ;;  %v2177_v60 = vadd.f32 %v7320_v28, %v6931_v25 }
 0x2ff   : > { %v5238_v21 = vpop.eup %5237  ;;  %5257 = vtanh.f32 %v2854_v14  ;;  %v2823_v29 = vmul.f32 %v5236_v50, %v2334_v13  ;;  %v7433_v30 = vadd.f32 %v2979_v20, %v2947_v18  ;;  %v7437_v55 = vpop.f32.mrb[79].mxu1  ;;  %v2980_v14 = vmul.f32 %v7383_v31, %v8315_v1 }
 0x300   : > { %v7439_v36 = vpop.eup %5239  ;;  %5259 = vrcp.f32 %v2647_v27  ;;  %v2948_v0 = vmul.f32 %v5238_v21, %v2916_v15  ;;  %v7445_v13 = vpop.f32.mrb[86].mxu0  ;;  %v4404_v21 = vmul.f32 -1.442695, %v2171_v52  ;;  %v2917_v28 = vsub.f32 1.0, %v7413_v53 }
 0x301   : > { %8314 = vst [vmem:[#allocation111_spill] sm:$0xff] %v7433_v30  ;;  %v5242_v50 = vpop.eup %5241  ;;  %5261 = vpow2.f32 %v4401_v63  ;;  %v2855_v18 = vadd.f32 %v2823_v29, %v2332_v33  ;;  %v3038_v20 = vpack.c.bf16 %v7433_v30, %v7395_v11  ;;  %v7449_v45 = vpop.f32.mrb[87].mxu0  ;;  %v2338_v63 = vadd.f32 %v7265_v46, %v7074_v7 }
 0x302   : > { %v5244_v51 = vpop.eup %5243  ;;  %v2650_v27 = vadd.f32 1.0, %v5242_v50  ;;  %5263 = vpow2.f32 %v4402_v4  ;;  %v7453_v15 = vadd.f32 %v2980_v14, %v2948_v0  ;;  %v2342_v33 = vadd.f32 %v7276_v39, %v7074_v7  ;;  %v7462_v0 = vpop.f32.mrb[80].mxu1 }
 0x303   : > { %v5246_v31 = vpop.eup %5245  ;;  %5265 = vtanh.f32 %v2855_v18  ;;  %4571 = vmatprep.mubr.bf16.mxu0 %v3038_v20  ;;  %v2344_v4 = vadd.f32 %v7282_v6, %v7010_v47  ;;  %v4405_v50 = vmul.f32 -1.442695, %v2175_v10  ;;  %v2179_v46 = vadd.f32 %v7326_v56, %v6926_v38  ;;  %v7466_v18 = vpop.f32.mrb[81].mxu1 }
 0x304   : > { %8316 = vst [vmem:[#allocation112_spill] sm:$0xff] %v7453_v15  ;;  %v5248_v3 = vpop.eup %5247  ;;  %5267 = vrcp.f32 %v2650_v27  ;;  %v2652_v29 = vadd.f32 1.0, %v5246_v31  ;;  %v4406_v20 = vmul.f32 -1.442695, %v2177_v60  ;;  %v8317_v31 = vld [vmem:[#allocation49_spill] sm:$0xff]  ;;  %v7470_v30 = vpop.f32.mrb[88].mxu0  ;;  %v2181_v56 = vadd.f32 %v7330_v59, %v6931_v25 }
 0x305   : > { %v5250_v14 = vpop.eup %5249  ;;  %5269 = vrcp.f32 %v2649_v19  ;;  %v2824_v52 = vmul.f32 %v5248_v3, %v2340_v37  ;;  %v2981_v6 = vmul.f32 %v7413_v53, %v8317_v31  ;;  %v7472_v11 = vpop.f32.mrb[82].mxu1  ;;  %v2651_v19 = vadd.f32 1.0, %v5244_v51  ;;  %v8320_v59 = vld [vmem:[#allocation50_spill] sm:$0xff] }
 0x306   : > { %v5252_v39 = vpop.eup %5251  ;;  %5271 = vrcp.f32 %v2652_v29  ;;  %v2949_v27 = vmul.f32 %v5250_v14, %v2917_v28  ;;  %8318 = vst [vmem:[#allocation113_spill] sm:$0xff] %v7472_v11  ;;  %v7476_v10 = vpop.f32.mrb[89].mxu0  ;;  %v2918_v53 = vsub.f32 1.0, %v7439_v36  ;;  %v4407_v51 = vmul.f32 -1.442695, %v2179_v46 }
 0x307   : > { %v5254_v1 = vpop.eup %5253  ;;  %5273 = vpow2.f32 %v4403_v40  ;;  %v2856_v37 = vadd.f32 %v2824_v52, %v2338_v63  ;;  %v7478_v3 = vpop.f32.mrb[83].mxu1  ;;  %v2185_v40 = vadd.f32 %v7347_v43, %v6926_v38  ;;  %v2982_v63 = vmul.f32 %v7439_v36, %v8320_v59 }
 0x308   : > { %v5256_v60 = vpop.eup %5255  ;;  %5275 = vpow2.f32 %v4404_v21  ;;  %v2825_v29 = vmul.f32 %v5254_v1, %v2344_v4  ;;  %v7480_v28 = vadd.f32 %v2981_v6, %v2949_v27  ;;  %v7483_v14 = vpop.f32.mrb[90].mxu0  ;;  %v2350_v46 = vadd.f32 %v7304_v24, %v7010_v47 }
 0x309   : > { %v5258_v31 = vpop.eup %5257  ;;  %5277 = vtanh.f32 %v2856_v37  ;;  %v7489_v52 = vpop.f32.mrb[91].mxu0  ;;  %v2653_v6 = vadd.f32 1.0, %v5256_v60  ;;  %v2187_v43 = vadd.f32 %v7354_v8, %v6931_v25  ;;  %v2919_v59 = vsub.f32 1.0, %v5252_v39 }
 0x30a   : > { %8319 = vst [vmem:[#allocation114_spill] sm:$0xff] %v7480_v28  ;;  %v5260_v11 = vpop.eup %5259  ;;  %5279 = vpow2.f32 %v4405_v50  ;;  %v2857_v1 = vadd.f32 %v2825_v29, %v2342_v33  ;;  %v3039_v21 = vpack.c.bf16 %v7480_v28, %v7453_v15  ;;  %v2950_v4 = vmul.f32 %v5258_v31, %v2918_v53  ;;  %v7499_v33 = vpop.f32.mrb[84].mxu1 }
 0x30b   : > { %v5262_v27 = vpop.eup %5261  ;;  %5281 = vrcp.f32 %v2651_v19  ;;  %v4408_v31 = vmul.f32 -1.442695, %v2181_v56  ;;  %v2348_v19 = vadd.f32 %v7299_v41, %v7074_v7  ;;  %v7503_v60 = vpop.f32.mrb[85].mxu1  ;;  %v4409_v8 = vmul.f32 -1.442695, %v2185_v40 }
 0x30c   : > { %v5264_v37 = vpop.eup %5263  ;;  %v2654_v36 = vadd.f32 1.0, %v5262_v27  ;;  %5283 = vpow2.f32 %v4406_v20  ;;  %4572 = vmatmul.mubr.bf16.gmra.mrb[104].mxu0 %v3039_v21  ;;  %v7497_v50 = vadd.f32 %v2982_v63, %v2950_v4  ;;  %v8322_v27 = vld [vmem:[#allocation51_spill] sm:$0xff]  ;;  %v7506_v21 = vpop.f32.mrb[92].mxu0  ;;  %v2352_v56 = vadd.f32 %v7314_v58, %v7074_v7 }
 0x30d   : > { %v5266_v29 = vpop.eup %5265  ;;  %5285 = vtanh.f32 %v2857_v1  ;;  %v2983_v20 = vmul.f32 %v5252_v39, %v8322_v27  ;;  %v7508_v63 = vpop.f32.mrb[86].mxu1  ;;  %v2354_v41 = vadd.f32 %v7322_v57, %v7010_v47  ;;  %v4410_v39 = vmul.f32 -1.442695, %v2187_v43 }
 0x30e   : > { %8321 = vst [vmem:[#allocation115_spill] sm:$0xff] %v7497_v50  ;;  %v5268_v24 = vpop.eup %5267  ;;  %5287 = vrcp.f32 %v2654_v36  ;;  %v2951_v53 = vmul.f32 %v5266_v29, %v2919_v59  ;;  %8323 = vst [vmem:[#allocation116_spill] sm:$0xff] %v7508_v63  ;;  %v7514_v1 = vpop.f32.mrb[93].mxu0  ;;  %v2189_v59 = vadd.f32 %v7362_v22, %v6926_v38  ;;  %v2920_v43 = vsub.f32 1.0, %v5260_v11 }
 0x30f   : > { %v5270_v4 = vpop.eup %5269  ;;  %5289 = vrcp.f32 %v2653_v6  ;;  %v2826_v28 = vmul.f32 %v5268_v24, %v2350_v46  ;;  %v7516_v36 = vpop.f32.mrb[87].mxu1  ;;  %v2655_v24 = vadd.f32 1.0, %v5264_v37 }
 0x310   : > { %8324 = vst [vmem:[#allocation117_spill] sm:$0xff] %v7516_v36  ;;  %v5272_v40 = vpop.eup %5271  ;;  %5291 = vpow2.f32 %v4407_v51  ;;  %v7520_v29 = vadd.f32 %v2983_v20, %v2951_v53  ;;  %v7522_v6 = vpop.f32.mrb[94].mxu0  ;;  %v2191_v53 = vadd.f32 %v7366_v44, %v6931_v25 }
 0x311   : > { %v5274_v46 = vpop.eup %5273  ;;  %5293 = vpow2.f32 %v4408_v31  ;;  %v2858_v58 = vadd.f32 %v2826_v28, %v2348_v19  ;;  %v2827_v27 = vmul.f32 %v5272_v40, %v2354_v41  ;;  %v7524_v57 = vpop.f32.mrb[95].mxu0  ;;  %v2195_v28 = vadd.f32 %v7389_v49, %v6926_v38  ;;  %v8326_v31 = vld [vmem:[#allocation52_spill] sm:$0xff] }
 0x312   : > { %8325 = vst [vmem:[#allocation118_spill] sm:$0xff] %v7520_v29  ;;  %v5276_v15 = vpop.eup %5275  ;;  %v2656_v63 = vadd.f32 1.0, %v5274_v46  ;;  %5295 = vpow2.f32 %v4409_v8  ;;  %v3040_v51 = vpack.c.bf16 %v7520_v29, %v7497_v50  ;;  %v2984_v19 = vmul.f32 %v5260_v11, %v8326_v31  ;;  %v7533_v8 = vpop.f32.mrb[88].mxu1  ;;  %v8327_v29 = vld [vmem:[#allocation53_spill] sm:$0xff] }
 0x313   : > { %v5278_v36 = vpop.eup %5277  ;;  %5297 = vtanh.f32 %v2858_v58  ;;  %v2859_v22 = vadd.f32 %v2827_v27, %v2352_v56  ;;  %v2657_v40 = vadd.f32 1.0, %v5276_v15  ;;  %v2360_v27 = vadd.f32 %v7345_v32, %v7010_v47  ;;  %v7537_v56 = vpop.f32.mrb[89].mxu1 }
 0x314   : > { %v5280_v20 = vpop.eup %5279  ;;  %5299 = vrcp.f32 %v2656_v63  ;;  %4575 = vmatprep.mubr.bf16.mxu0 %v3040_v51  ;;  %v2952_v37 = vmul.f32 %v5278_v36, %v2920_v43  ;;  %v4411_v63 = vmul.f32 -1.442695, %v2189_v59  ;;  %v2921_v58 = vsub.f32 1.0, %v5270_v4  ;;  %v7541_v36 = vpop.f32.mrb[90].mxu1 }
 0x315   : > { %v5282_v41 = vpop.eup %5281  ;;  %5301 = vrcp.f32 %v2655_v24  ;;  %v2658_v46 = vadd.f32 1.0, %v5280_v20  ;;  %v2197_v15 = vadd.f32 %v7397_v42, %v6931_v25  ;;  %v7545_v24 = vpop.f32.mrb[91].mxu1  ;;  %v4413_v32 = vmul.f32 -1.442695, %v2195_v28 }
 0x316   : > { %v5284_v44 = vpop.eup %5283  ;;  %5303 = vpow2.f32 %v4410_v39  ;;  %v7539_v49 = vadd.f32 %v2984_v19, %v2952_v37  ;;  %v2985_v39 = vmul.f32 %v5270_v4, %v8327_v29  ;;  %v2358_v37 = vadd.f32 %v7341_v61, %v7074_v7 }
 0x317   : > { %v5286_v11 = vpop.eup %5285  ;;  %5305 = vrcp.f32 %v2658_v46  ;;  %v2659_v51 = vadd.f32 1.0, %v5284_v44  ;;  %v2199_v46 = vadd.f32 %v7401_v5, %v6926_v38  ;;  %v4412_v42 = vmul.f32 -1.442695, %v2191_v53 }
 0x318   : > { %v5288_v43 = vpop.eup %5287  ;;  %5307 = vtanh.f32 %v2859_v22  ;;  %v2953_v20 = vmul.f32 %v5286_v11, %v2921_v58  ;;  %v4414_v58 = vmul.f32 -1.442695, %v2197_v15 }
 0x319   : > { %v5290_v59 = vpop.eup %5289  ;;  %5309 = vrcp.f32 %v2657_v40  ;;  %v2828_v19 = vmul.f32 %v5288_v43, %v2360_v27  ;;  %v2364_v40 = vadd.f32 %v7356_v12, %v7010_v47  ;;  %v2922_v27 = vsub.f32 1.0, %v5282_v41  ;;  %v7558_v5 = vpop.f32.mrb[92].mxu1 }
 0x31a   : > { %v5292_v44 = vpop.eup %5291  ;;  %5311 = vpow2.f32 %v4411_v63  ;;  %v7552_v50 = vadd.f32 %v2985_v39, %v2953_v20  ;;  %v4415_v11 = vmul.f32 -1.442695, %v2199_v46  ;;  %v7562_v43 = vpop.f32.mrb[93].mxu1  ;;  %v2370_v12 = vadd.f32 %v7381_v16, %v7010_v47  ;;  %v8328_v20 = vld [vmem:[#allocation54_spill] sm:$0xff] }
 0x31b   : > { %v5294_v31 = vpop.eup %5293  ;;  %5313 = vrcp.f32 %v2659_v51  ;;  %v2660_v22 = vadd.f32 1.0, %v5292_v44  ;;  %v2860_v28 = vadd.f32 %v2828_v19, %v2358_v37  ;;  %v2201_v51 = vadd.f32 %v7407_v48, %v6931_v25  ;;  %v7567_v37 = vpop.f32.mrb[94].mxu1 }
 0x31c   : > { %v5296_v4 = vpop.eup %5295  ;;  %5315 = vpow2.f32 %v4413_v32  ;;  %v3041_v61 = vpack.c.bf16 %v7552_v50, %v7539_v49  ;;  %v2986_v39 = vmul.f32 %v5282_v41, %v8328_v20  ;;  %v2661_v44 = vadd.f32 1.0, %v5294_v31 }
 0x31d   : > { %v5298_v63 = vpop.eup %5297  ;;  %5317 = vrcp.f32 %v2660_v22  ;;  %v2662_v53 = vadd.f32 1.0, %v5296_v4  ;;  %v2362_v48 = vadd.f32 %v7349_v23, %v7074_v7  ;;  %v7573_v22 = vpop.f32.mrb[95].mxu1  ;;  %v2205_v16 = vadd.f32 %v7427_v54, %v6926_v38  ;;  %v8329_v54 = vld [vmem:[#allocation55_spill] sm:$0xff] }
 0x31e   : > { %v5300_v15 = vpop.eup %5299  ;;  %5319 = vpow2.f32 %v4412_v42  ;;  %4576 = vmatmul.mubr.bf16.gmra.mrb[108].mxu0 %v3041_v61  ;;  %v2954_v32 = vmul.f32 %v5298_v63, %v2922_v27  ;;  %v4416_v27 = vmul.f32 -1.442695, %v2201_v51  ;;  %v2923_v63 = vsub.f32 1.0, %v5290_v59 }
 0x31f   : > { %v7569_v19 = vpop.eup %5301  ;;  %5321 = vrcp.f32 %v2662_v53  ;;  %v2829_v46 = vmul.f32 %v5300_v15, %v2364_v40  ;;  %v2368_v23 = vadd.f32 %v7376_v62, %v7074_v7  ;;  %v2207_v53 = vadd.f32 %v7435_v9, %v6931_v25 }
 0x320   : > { %v5304_v42 = vpop.eup %5303  ;;  %5323 = vtanh.f32 %v2860_v28  ;;  %v7577_v4 = vadd.f32 %v2986_v39, %v2954_v32  ;;  %v2987_v32 = vmul.f32 %v5290_v59, %v8329_v54  ;;  %v4417_v51 = vmul.f32 -1.442695, %v2205_v16 }
 0x321   : > { %v5306_v41 = vpop.eup %5305  ;;  %5325 = vpow2.f32 %v4414_v58  ;;  %v2861_v61 = vadd.f32 %v2829_v46, %v2362_v48  ;;  %v2663_v20 = vadd.f32 1.0, %v5304_v42  ;;  %v2209_v62 = vadd.f32 %v7445_v13, %v6926_v38 }
 0x322   : > { %v5308_v31 = vpop.eup %5307  ;;  %5327 = vpow2.f32 %v4415_v11  ;;  %v2830_v40 = vmul.f32 %v5306_v41, %v2370_v12  ;;  %v2374_v59 = vadd.f32 %v7399_v17, %v7010_v47  ;;  %v2380_v46 = vadd.f32 %v7422_v35, %v7010_v47 }
 0x323   : > { %v5310_v28 = vpop.eup %5309  ;;  %5329 = vrcp.f32 %v2661_v44  ;;  %v2955_v15 = vmul.f32 %v5308_v31, %v2923_v63  ;;  %v4418_v44 = vmul.f32 -1.442695, %v2207_v53  ;;  %v2211_v41 = vadd.f32 %v7449_v45, %v6931_v25 }
 0x324   : > { %v5312_v39 = vpop.eup %5311  ;;  %5331 = vtanh.f32 %v2861_v61  ;;  %v2862_v58 = vadd.f32 %v2830_v40, %v2368_v23  ;;  %v4419_v17 = vmul.f32 -1.442695, %v2209_v62  ;;  %v2378_v35 = vadd.f32 %v7418_v26, %v7074_v7 }
 0x325   : > { %v7584_v48 = vpop.eup %5313  ;;  %v2664_v11 = vadd.f32 1.0, %v5312_v39  ;;  %5333 = vpow2.f32 %v4416_v27  ;;  %v7588_v12 = vadd.f32 %v2987_v32, %v2955_v15  ;;  %v2372_v27 = vadd.f32 %v7391_v2, %v7074_v7  ;;  %v8330_v39 = vld [vmem:[#allocation56_spill] sm:$0xff] }
 0x326   : > { %v5316_v9 = vpop.eup %5315  ;;  %5335 = vtanh.f32 %v2862_v58  ;;  %v2924_v23 = vsub.f32 1.0, %v7569_v19  ;;  %v4420_v2 = vmul.f32 -1.442695, %v2211_v41  ;;  %v2988_v58 = vmul.f32 %v7569_v19, %v8330_v39 }
 0x327   : > { %v5318_v42 = vpop.eup %5317  ;;  %5337 = vrcp.f32 %v2664_v11  ;;  %v2666_v16 = vadd.f32 1.0, %v5316_v9  ;;  %v3042_v13 = vpack.c.bf16 %v7588_v12, %v7577_v4  ;;  %v2219_v9 = vadd.f32 %v7483_v14, %v6926_v38 }
 0x328   : > { %v5320_v61 = vpop.eup %5319  ;;  %5339 = vrcp.f32 %v2663_v20  ;;  %v2831_v63 = vmul.f32 %v5318_v42, %v2374_v59  ;;  %v2215_v20 = vadd.f32 %v7470_v30, %v6926_v38  ;;  %v2382_v41 = vadd.f32 %v7429_v34, %v7074_v7 }
 0x329   : > { %v5322_v31 = vpop.eup %5321  ;;  %5341 = vrcp.f32 %v2666_v16  ;;  %4579 = vmatprep.mubr.bf16.mxu0 %v3042_v13  ;;  %v2665_v62 = vadd.f32 1.0, %v5320_v61  ;;  %v2217_v19 = vadd.f32 %v7476_v10, %v6931_v25 }
 0x32a   : > { %v5324_v40 = vpop.eup %5323  ;;  %5343 = vpow2.f32 %v4417_v51  ;;  %v2863_v45 = vadd.f32 %v2831_v63, %v2372_v27  ;;  %v2832_v53 = vmul.f32 %v5322_v31, %v2380_v46  ;;  %v2925_v46 = vsub.f32 1.0, %v5310_v28  ;;  %v8331_v27 = vld [vmem:[#allocation57_spill] sm:$0xff] }
 0x32b   : > { %v5326_v15 = vpop.eup %5325  ;;  %5345 = vpow2.f32 %v4418_v44  ;;  %v2956_v32 = vmul.f32 %v5324_v40, %v2924_v23  ;;  %v4421_v16 = vmul.f32 -1.442695, %v2215_v20  ;;  %v2989_v14 = vmul.f32 %v5310_v28, %v8331_v27 }
 0x32c   : > { %v5328_v11 = vpop.eup %5327  ;;  %5347 = vtanh.f32 %v2863_v45  ;;  %v2864_v26 = vadd.f32 %v2832_v53, %v2378_v35  ;;  %v2667_v44 = vadd.f32 1.0, %v5326_v15  ;;  %v2926_v63 = vsub.f32 1.0, %v7584_v48  ;;  %v8332_v45 = vld [vmem:[#allocation58_spill] sm:$0xff] }
 0x32d   : > { %v5330_v51 = vpop.eup %5329  ;;  %v2668_v59 = vadd.f32 1.0, %v5328_v11  ;;  %5349 = vpow2.f32 %v4419_v17  ;;  %v7609_v42 = vadd.f32 %v2988_v58, %v2956_v32  ;;  %v2384_v17 = vadd.f32 %v7437_v55, %v7010_v47 }
 0x32e   : > { %v5332_v30 = vpop.eup %5331  ;;  %v4423_v35 = vmul.f32 -1.442695, %v2219_v9  ;;  %v2390_v23 = vadd.f32 %v7466_v18, %v7010_v47  ;;  %v2990_v53 = vmul.f32 %v7584_v48, %v8332_v45  ;;  %v2221_v15 = vadd.f32 %v7489_v52, %v6931_v25 }
 0x32f   : > { %v5334_v13 = vpop.eup %5333  ;;  %5351 = vrcp.f32 %v2668_v59  ;;  %v2957_v61 = vmul.f32 %v5332_v30, %v2925_v46  ;;  %v2388_v55 = vadd.f32 %v7462_v0, %v7074_v7  ;;  %v2225_v18 = vadd.f32 %v7506_v21, %v6926_v38 }
 0x330   : > { %v5336_v31 = vpop.eup %5335  ;;  %5353 = vrcp.f32 %v2665_v62  ;;  %v2669_v62 = vadd.f32 1.0, %v5334_v13  ;;  %v4422_v46 = vmul.f32 -1.442695, %v2217_v19  ;;  %v2927_v0 = vsub.f32 1.0, %v5330_v51  ;;  %v8334_v19 = vld [vmem:[#allocation113_spill] sm:$0xff] }
 0x331   : > { %v5338_v34 = vpop.eup %5337  ;;  %5355 = vtanh.f32 %v2864_v26  ;;  %v7621_v40 = vadd.f32 %v2989_v14, %v2957_v61  ;;  %v2958_v10 = vmul.f32 %v5336_v31, %v2926_v63  ;;  %v8333_v14 = vld [vmem:[#allocation59_spill] sm:$0xff] }
 0x332   : > { %v5340_v28 = vpop.eup %5339  ;;  %5357 = vrcp.f32 %v2667_v44  ;;  %v2833_v20 = vmul.f32 %v5338_v34, %v2384_v17  ;;  %v2991_v63 = vmul.f32 %v5330_v51, %v8333_v14  ;;  %v2392_v17 = vadd.f32 %v8334_v19, %v7074_v7 }
 0x333   : > { %v5342_v32 = vpop.eup %5341  ;;  %5359 = vpow2.f32 %v4421_v16  ;;  %v3043_v58 = vpack.c.bf16 %v7621_v40, %v7609_v42  ;;  %v7633_v11 = vadd.f32 %v2990_v53, %v2958_v10  ;;  %v4424_v16 = vmul.f32 -1.442695, %v2221_v15 }
 0x334   : > { %v5344_v48 = vpop.eup %5343  ;;  %5361 = vpow2.f32 %v4420_v2  ;;  %v2865_v26 = vadd.f32 %v2833_v20, %v2382_v41  ;;  %v2834_v9 = vmul.f32 %v5342_v32, %v2390_v23  ;;  %v4425_v2 = vmul.f32 -1.442695, %v2225_v18 }
 0x335   : > { %v5346_v59 = vpop.eup %5345  ;;  %v2670_v52 = vadd.f32 1.0, %v5344_v48  ;;  %5363 = vpow2.f32 %v4423_v35  ;;  %4580 = vmatmul.mubr.bf16.gmra.mrb[112].mxu0 %v3043_v58  ;;  %v2394_v41 = vadd.f32 %v7478_v3, %v7010_v47  ;;  %v2227_v35 = vadd.f32 %v7514_v1, %v6931_v25  ;;  %v8335_v1 = vld [vmem:[#allocation60_spill] sm:$0xff] }
 0x336   : > { %v5348_v30 = vpop.eup %5347  ;;  %5365 = vtanh.f32 %v2865_v26  ;;  %v2866_v44 = vadd.f32 %v2834_v9, %v2388_v55  ;;  %v2671_v10 = vadd.f32 1.0, %v5346_v59  ;;  %v2928_v53 = vsub.f32 1.0, %v5340_v28 }
 0x337   : > { %v5350_v21 = vpop.eup %5349  ;;  %5367 = vrcp.f32 %v2670_v52  ;;  %v2959_v61 = vmul.f32 %v5348_v30, %v2927_v0  ;;  %v2229_v3 = vadd.f32 %v7522_v6, %v6926_v38  ;;  %v2992_v58 = vmul.f32 %v5340_v28, %v8335_v1 }
 0x338   : > { %5369 = vrcp.f32 %v2669_v62  ;;  %v2672_v13 = vadd.f32 1.0, %v5350_v21  ;;  %v4426_v62 = vmul.f32 -1.442695, %v2227_v35  ;;  %v2400_v59 = vadd.f32 %v7503_v60, %v7010_v47 }
 0x339   : > { %v5352_v31 = vpop.eup %5351  ;;  %5371 = vpow2.f32 %v4422_v46  ;;  %v7642_v23 = vadd.f32 %v2991_v63, %v2959_v61  ;;  %v4427_v52 = vmul.f32 -1.442695, %v2229_v3  ;;  %v2231_v28 = vadd.f32 %v7524_v57, %v6931_v25 }
 0x33a   : > { %v5354_v34 = vpop.eup %5353  ;;  %5373 = vrcp.f32 %v2672_v13  ;;  %v2835_v51 = vmul.f32 %v5352_v31, %v2394_v41  ;;  %v2398_v60 = vadd.f32 %v7499_v33, %v7074_v7  ;;  %v8337_v31 = vld [vmem:[#allocation117_spill] sm:$0xff] }
 0x33b   : > { %v5356_v20 = vpop.eup %5355  ;;  %5375 = vtanh.f32 %v2866_v44  ;;  %v3044_v15 = vpack.c.bf16 %v7642_v23, %v7633_v11  ;;  %v2929_v46 = vsub.f32 1.0, %v5354_v34  ;;  %v2404_v19 = vadd.f32 %v8337_v31, %v7010_v47 }
 0x33c   : > { %v5358_v55 = vpop.eup %5357  ;;  %5377 = vpow2.f32 %v4425_v2  ;;  %v2867_v32 = vadd.f32 %v2835_v51, %v2392_v17  ;;  %v2960_v18 = vmul.f32 %v5356_v20, %v2928_v53  ;;  %v4428_v57 = vmul.f32 -1.442695, %v2231_v28  ;;  %v8340_v28 = vld [vmem:[#allocation63_spill] sm:$0xff] }
 0x33d   : > { %v5360_v48 = vpop.eup %5359  ;;  %5379 = vpow2.f32 %v4424_v16  ;;  %4583 = vmatprep.mubr.bf16.mxu0 %v3044_v15  ;;  %v8336_v16 = vld [vmem:[#allocation61_spill] sm:$0xff]  ;;  %v2410_v15 = vadd.f32 %v7537_v56, %v7010_v47 }
 0x33e   : > { %v5362_v26 = vpop.eup %5361  ;;  %5381 = vrcp.f32 %v2671_v10  ;;  %v2674_v9 = vadd.f32 1.0, %v5360_v48  ;;  %v7651_v38 = vadd.f32 %v2992_v58, %v2960_v18  ;;  %v2993_v61 = vmul.f32 %v5354_v34, %v8336_v16  ;;  %v8338_v34 = vld [vmem:[#allocation116_spill] sm:$0xff]  ;;  %v8339_v18 = vld [vmem:[#allocation62_spill] sm:$0xff] }
 0x33f   : > { %v5364_v6 = vpop.eup %5363  ;;  %5383 = vtanh.f32 %v2867_v32  ;;  %v2673_v13 = vadd.f32 1.0, %v5362_v26  ;;  %v2930_v10 = vsub.f32 1.0, %v5358_v55  ;;  %v2402_v53 = vadd.f32 %v8338_v34, %v7074_v7 }
 0x340   : > { %v5366_v0 = vpop.eup %5365  ;;  %5385 = vrcp.f32 %v2674_v9  ;;  %v2676_v30 = vadd.f32 1.0, %v5364_v6  ;;  %v2994_v58 = vmul.f32 %v5358_v55, %v8339_v18 }
 0x341   : > { %v5368_v44 = vpop.eup %5367  ;;  %5387 = vpow2.f32 %v4426_v62  ;;  %v2961_v21 = vmul.f32 %v5366_v0, %v2929_v46 }
 0x342   : > { %v5370_v63 = vpop.eup %5369  ;;  %5389 = vrcp.f32 %v2676_v30  ;;  %v2836_v2 = vmul.f32 %v5368_v44, %v2400_v59 }
 0x343   : > { %v5372_v41 = vpop.eup %5371  ;;  %5391 = vpow2.f32 %v4427_v52  ;;  %v7660_v17 = vadd.f32 %v2993_v61, %v2961_v21  ;;  %v2931_v6 = vsub.f32 1.0, %v5370_v63  ;;  %v2995_v44 = vmul.f32 %v5370_v63, %v8340_v28 }
 0x344   : > { %v5374_v25 = vpop.eup %5373  ;;  %v2868_v35 = vadd.f32 %v2836_v2, %v2398_v60  ;;  %5393 = vrcp.f32 %v2673_v13  ;;  %v2675_v62 = vadd.f32 1.0, %v5372_v41  ;;  %v2408_v21 = vadd.f32 %v7533_v8, %v7074_v7 }
 0x345   : > { %v5376_v51 = vpop.eup %5375  ;;  %v2837_v20 = vmul.f32 %v5374_v25, %v2404_v19  ;;  %v3045_v33 = vpack.c.bf16 %v7660_v17, %v7651_v38  ;;  %v2414_v13 = vadd.f32 %v7545_v24, %v7010_v47  ;;  %v2412_v19 = vadd.f32 %v7541_v36, %v7074_v7 }
 0x346   : > { %v5378_v3 = vpop.eup %5377  ;;  %v2962_v32 = vmul.f32 %v5376_v51, %v2930_v10  ;;  %5395 = vtanh.f32 %v2868_v35  ;;  %v2420_v24 = vadd.f32 %v7562_v43, %v7010_v47 }
 0x347   : > { %v5380_v48 = vpop.eup %5379  ;;  %v2678_v26 = vadd.f32 1.0, %v5378_v3  ;;  %v2869_v9 = vadd.f32 %v2837_v20, %v2402_v53  ;;  %4584 = vmatmul.mubr.bf16.gmra.mrb[116].mxu0 %v3045_v33  ;;  %5397 = vpow2.f32 %v4428_v57  ;;  %v8341_v20 = vld [vmem:[#allocation64_spill] sm:$0xff] }
 0x348   : > { %v5382_v59 = vpop.eup %5381  ;;  %v7669_v52 = vadd.f32 %v2994_v58, %v2962_v32  ;;  %v2677_v30 = vadd.f32 1.0, %v5380_v48  ;;  %v2418_v58 = vadd.f32 %v7558_v5, %v7074_v7 }
 0x349   : > { %v5384_v46 = vpop.eup %5383  ;;  %5399 = vrcp.f32 %v2678_v26  ;;  %v2932_v51 = vsub.f32 1.0, %v5382_v59  ;;  %v2996_v33 = vmul.f32 %v5382_v59, %v8341_v20 }
 0x34a   : > { %v5386_v0 = vpop.eup %5385  ;;  %5401 = vtanh.f32 %v2869_v9  ;;  %v2963_v56 = vmul.f32 %v5384_v46, %v2931_v6  ;;  %v8342_v9 = vld [vmem:[#allocation65_spill] sm:$0xff] }
 0x34b   : > { %v5388_v55 = vpop.eup %5387  ;;  %5403 = vrcp.f32 %v2675_v62  ;;  %v2838_v61 = vmul.f32 %v5386_v0, %v2410_v15 }
 0x34c   : > { %v5390_v60 = vpop.eup %5389  ;;  %v7676_v2 = vadd.f32 %v2995_v44, %v2963_v56  ;;  %5405 = vrcp.f32 %v2677_v30  ;;  %v2679_v10 = vadd.f32 1.0, %v5388_v55  ;;  %v2424_v55 = vadd.f32 %v7573_v22, %v7010_v47  ;;  %v8344_v47 = vld [vmem:[#allocation67_spill] sm:$0xff] }
 0x34d   : > { %v5392_v41 = vpop.eup %5391  ;;  %v2870_v31 = vadd.f32 %v2838_v61, %v2408_v21  ;;  %v2839_v25 = vmul.f32 %v5390_v60, %v2414_v13  ;;  %v8343_v13 = vld [vmem:[#allocation66_spill] sm:$0xff] }
 0x34e   : > { %v2680_v63 = vadd.f32 1.0, %v5392_v41  ;;  %v3046_v57 = vpack.c.bf16 %v7676_v2, %v7669_v52  ;;  %v5394_v35 = vpop.eup %5393  ;;  %v2422_v41 = vadd.f32 %v7567_v37, %v7074_v7  ;;  %v8345_v37 = vld [vmem:[#allocation68_spill] sm:$0xff] }
 0x34f   : > { %5407 = vtanh.f32 %v2870_v31  ;;  %v2871_v8 = vadd.f32 %v2839_v25, %v2412_v19  ;;  %v2933_v15 = vsub.f32 1.0, %v5394_v35  ;;  %v2997_v6 = vmul.f32 %v5394_v35, %v8342_v9 }
 0x350   : > { %5409 = vrcp.f32 %v2680_v63  ;;  %4587 = vmatprep.mubr.bf16.mxu0 %v3046_v57  ;;  %v5396_v34 = vpop.eup %5395 }
 0x351   : > { %v5398_v53 = vpop.eup %5397  ;;  %5411 = vtanh.f32 %v2871_v8  ;;  %v2964_v36 = vmul.f32 %v5396_v34, %v2932_v51 }
 0x352   : > { %5413 = vrcp.f32 %v2679_v10  ;;  %v2681_v0 = vadd.f32 1.0, %v5398_v53 }
 0x353   : > { %v5400_v3 = vpop.eup %5399  ;;  %v7687_v62 = vadd.f32 %v2996_v33, %v2964_v36 }
 0x354   : > { %v5402_v32 = vpop.eup %5401  ;;  %v2840_v48 = vmul.f32 %v5400_v3, %v2420_v24 }
 0x355   : > { %v5404_v26 = vpop.eup %5403  ;;  %v2965_v43 = vmul.f32 %v5402_v32, %v2933_v15  ;;  %v7712_v32 = vld [vmem:[%s8050_s13] ss:$0 sm:$0xff] }
 0x356   : > { %v2872_v46 = vadd.f32 %v2840_v48, %v2418_v58  ;;  %v5406_v56 = vpop.eup %5405  ;;  %v2934_v59 = vsub.f32 1.0, %v5404_v26  ;;  %v2998_v60 = vmul.f32 %v5404_v26, %v8343_v13  ;;  %v8346_v48 = vld [vmem:[#allocation69_spill] sm:$0xff] }
 0x357   : > { %v7690_v30 = vadd.f32 %v2997_v6, %v2965_v43  ;;  %v2935_v19 = vsub.f32 1.0, %v5406_v56  ;;  %v2999_v22 = vmul.f32 %v5406_v56, %v8344_v47 }
 0x358   : > { %5415 = vtanh.f32 %v2872_v46 }
 0x359   : > { %v5408_v44 = vpop.eup %5407  ;;  %v3047_v5 = vpack.c.bf16 %v7690_v30, %v7687_v62  ;;  %5417 = vrcp.f32 %v2681_v0 }
 0x35a   : > { %v5410_v21 = vpop.eup %5409  ;;  %v2966_v61 = vmul.f32 %v5408_v44, %v2934_v59 }
 0x35b   : > { %v2841_v31 = vmul.f32 %v5410_v21, %v2424_v55  ;;  %4588 = vmatmul.mubr.bf16.gmra.mrb[120].mxu0 %v3047_v5  ;;  %v5412_v25 = vpop.eup %5411 }
 0x35c   : > { %v7699_v63 = vadd.f32 %v2998_v60, %v2966_v61  ;;  %v2967_v8 = vmul.f32 %v5412_v25, %v2935_v19  ;;  %v5414_v35 = vpop.eup %5413 }
 0x35d   : > { %v2873_v57 = vadd.f32 %v2841_v31, %v2422_v41  ;;  %v2936_v51 = vsub.f32 1.0, %v5414_v35  ;;  %v3000_v53 = vmul.f32 %v5414_v35, %v8345_v37 }
 0x35e   : > { %v7702_v10 = vadd.f32 %v2999_v22, %v2967_v8 }
 0x35f   : > { %5419 = vtanh.f32 %v2873_v57 }
 0x360   : > { %v3048_v24 = vpack.c.bf16 %v7702_v10, %v7699_v63 }
 0x362   : > { %v5416_v34 = vpop.eup %5415  ;;  %4591 = vmatprep.mubr.bf16.mxu0 %v3048_v24 }
 0x363   : > { %v2968_v7 = vmul.f32 %v5416_v34, %v2936_v51  ;;  %v5418_v36 = vpop.eup %5417 }
 0x364   : > { %v2937_v3 = vsub.f32 1.0, %v5418_v36  ;;  %v3001_v26 = vmul.f32 %v5418_v36, %v8346_v48 }
 0x365   : > { %v7707_v33 = vadd.f32 %v3000_v53, %v2968_v7 }
 0x369   : > { %v5420_v15 = vpop.eup %5419 }
 0x36a   : > { %v2969_v58 = vmul.f32 %v5420_v15, %v2937_v3  ;;  %v4613_v43 = vpop.f32.mrb[96].mxu1 }
 0x36b   : > { %v3724_v46 = vadd.f32 %v4613_v43, %v7712_v32  ;;  %v3715_v0 = vpop.f32.mrb[97].mxu1 }
 0x36c   : > { %v7715_v6 = vadd.f32 %v3001_v26, %v2969_v58  ;;  %v3716_v56 = vadd.f32 %v7712_v32, %v3715_v0  ;;  %v4614_v59 = vpop.f32.mrb[98].mxu1 }
 0x36d   : > { %v4481_v55 = vmul.f32 -1.442695, %v3724_v46  ;;  %v3727_v5 = vadd.f32 %v4614_v59, %v7712_v32  ;;  %v3718_v21 = vpop.f32.mrb[99].mxu1 }
 0x36e   : > { %v3049_v44 = vpack.c.bf16 %v7715_v6, %v7707_v33  ;;  %v4479_v61 = vmul.f32 -1.442695, %v3716_v56  ;;  %v3719_v60 = vadd.f32 %v7712_v32, %v3718_v21 }
 0x36f   : > { %5421 = vpow2.f32 %v4481_v55  ;;  %v4482_v41 = vmul.f32 -1.442695, %v3727_v5 }
 0x370   : > { %4592 = vmatmul.mubr.bf16.gmra.mrb[124].mxu0 %v3049_v44  ;;  %5423 = vpow2.f32 %v4479_v61  ;;  %v4480_v31 = vmul.f32 -1.442695, %v3719_v60  ;;  %v8347_v60 = vld [vmem:[#allocation88_spill] sm:$0xff] }
 0x371   : > { %5425 = vpow2.f32 %v4482_v41 }
 0x372   : > { %5427 = vpow2.f32 %v4480_v31  ;;  %v8348_v31 = vld [vmem:[#allocation72_spill] sm:$0xff] }
 0x377   : > { %v4617_v19 = vpop.f32.mrb[100].mxu1 }
 0x378   : > { %v3740_v25 = vadd.f32 %v4617_v19, %v7712_v32  ;;  %v3731_v57 = vpop.f32.mrb[101].mxu1 }
 0x379   : > { %v5422_v8 = vpop.eup %5421  ;;  %v3732_v22 = vadd.f32 %v7712_v32, %v3731_v57  ;;  %v4618_v35 = vpop.f32.mrb[102].mxu1 }
 0x37a   : > { %v5424_v24 = vpop.eup %5423  ;;  %v3828_v51 = vadd.f32 1.0, %v5422_v8  ;;  %v3743_v34 = vadd.f32 %v4618_v35, %v7712_v32  ;;  %v3734_v7 = vpop.f32.mrb[103].mxu1  ;;  %v4485_v26 = vmul.f32 -1.442695, %v3740_v25  ;;  %v8349_v8 = vld [vmem:[#allocation86_spill] sm:$0xff] }
 0x37b   : > { %v5426_v53 = vpop.eup %5425  ;;  %v3826_v36 = vadd.f32 1.0, %v5424_v24  ;;  %v3735_v3 = vadd.f32 %v7712_v32, %v3734_v7  ;;  %v4483_v46 = vmul.f32 -1.442695, %v3732_v22  ;;  %v8350_v35 = vld [vmem:[#allocation70_spill] sm:$0xff] }
 0x37c   : > { %v5428_v15 = vpop.eup %5427  ;;  %5429 = vrcp.f32 %v3828_v51  ;;  %v3829_v58 = vadd.f32 1.0, %v5426_v53  ;;  %v4486_v0 = vmul.f32 -1.442695, %v3743_v34  ;;  %v8351_v53 = vld [vmem:[#allocation89_spill] sm:$0xff] }
 0x37d   : > { %5431 = vrcp.f32 %v3826_v36  ;;  %v3827_v43 = vadd.f32 1.0, %v5428_v15  ;;  %v4484_v56 = vmul.f32 -1.442695, %v3735_v3  ;;  %v8352_v3 = vld [vmem:[#allocation73_spill] sm:$0xff] }
 0x37e   : > { %5433 = vrcp.f32 %v3829_v58 }
 0x37f   : > { %5435 = vrcp.f32 %v3827_v43 }
 0x380   : > { %5437 = vpow2.f32 %v4485_v26 }
 0x381   : > { %5439 = vpow2.f32 %v4483_v46  ;;  %v8353_v46 = vld [vmem:[#allocation87_spill] sm:$0xff] }
 0x382   : > { %5441 = vpow2.f32 %v4486_v0 }
 0x383   : > { %5443 = vpow2.f32 %v4484_v56  ;;  %v8354_v56 = vld [vmem:[#allocation71_spill] sm:$0xff] }
 0x386   : > { %v5430_v59 = vpop.eup %5429 }
 0x387   : > { %v5432_v44 = vpop.eup %5431  ;;  %v3892_v55 = vsub.f32 1.0, %v5430_v59  ;;  %v3876_v41 = vmul.f32 %v5430_v59, %v8347_v60 }
 0x388   : > { %v5434_v5 = vpop.eup %5433  ;;  %v3890_v21 = vsub.f32 1.0, %v5432_v44  ;;  %v3874_v22 = vmul.f32 %v5432_v44, %v8349_v8 }
 0x389   : > { %v5436_v61 = vpop.eup %5435  ;;  %v3908_v19 = vmul.f32 %v3892_v55, %v8348_v31  ;;  %v3893_v25 = vsub.f32 1.0, %v5434_v5  ;;  %v3877_v36 = vmul.f32 %v5434_v5, %v8351_v53 }
 0x38a   : > { %v5438_v57 = vpop.eup %5437  ;;  %v3906_v24 = vmul.f32 %v3890_v21, %v8350_v35  ;;  %v3891_v51 = vsub.f32 1.0, %v5436_v61  ;;  %v3875_v0 = vmul.f32 %v5436_v61, %v8353_v46 }
 0x38b   : > { %v5440_v34 = vpop.eup %5439  ;;  %v7731_v7 = vadd.f32 %v3908_v19, %v3876_v41  ;;  %v3909_v15 = vmul.f32 %v3893_v25, %v8352_v3  ;;  %v3832_v58 = vadd.f32 1.0, %v5438_v57 }
 0x38c   : > { %v5442_v26 = vpop.eup %5441  ;;  %v7735_v43 = vadd.f32 %v3906_v24, %v3874_v22  ;;  %v3907_v59 = vmul.f32 %v3891_v51, %v8354_v56  ;;  %v3830_v55 = vadd.f32 1.0, %v5440_v34 }
 0x38d   : > { %v5444_v44 = vpop.eup %5443  ;;  %3972 = vst [vmem:[#allocation3 + $0x10] sm:$0xff] %v7731_v7  ;;  %v7740_v21 = vadd.f32 %v3909_v15, %v3877_v36  ;;  %5445 = vrcp.f32 %v3832_v58  ;;  %v3833_v60 = vadd.f32 1.0, %v5442_v26  ;;  %4024 = vst [vmem:[#allocation17 + $0x10] sm:$0xff] (!%p4495_p1), %v7731_v7 }
 0x38e   : > { %3970 = vst [vmem:[#allocation3] sm:$0xff] %v7735_v43  ;;  %v7743_v5 = vadd.f32 %v3907_v59, %v3875_v0  ;;  %5447 = vrcp.f32 %v3830_v55  ;;  %v3831_v41 = vadd.f32 1.0, %v5444_v44  ;;  %v8356_v0 = vld [vmem:[#allocation92_spill] sm:$0xff]  ;;  %4022 = vst [vmem:[#allocation17] sm:$0xff] (!%p4495_p1), %v7735_v43 }
 0x38f   : > { %8355 = vst [vmem:[#allocation53_spill] sm:$0xff] %v7740_v21  ;;  %v4621_v31 = vpop.f32.mrb[104].mxu1  ;;  %3973 = vst [vmem:[#allocation3 + $0x18] sm:$0xff] %v7740_v21  ;;  %5449 = vrcp.f32 %v3833_v60  ;;  %v8357_v59 = vld [vmem:[#allocation76_spill] sm:$0xff]  ;;  %v8358_v60 = vld [vmem:[#allocation90_spill] sm:$0xff] }
 0x390   : > { %v3756_v61 = vadd.f32 %v4621_v31, %v7712_v32  ;;  %v3747_v19 = vpop.f32.mrb[105].mxu1  ;;  %3971 = vst [vmem:[#allocation3 + $0x8] sm:$0xff] %v7743_v5  ;;  %5451 = vrcp.f32 %v3831_v41  ;;  %v8359_v31 = vld [vmem:[#allocation74_spill] sm:$0xff]  ;;  %4023 = vst [vmem:[#allocation17 + $0x8] sm:$0xff] (!%p4495_p1), %v7743_v5 }
 0x391   : > { %v3748_v25 = vadd.f32 %v7712_v32, %v3747_v19  ;;  %v4622_v57 = vpop.f32.mrb[106].mxu1 }
 0x392   : > { %v4489_v8 = vmul.f32 -1.442695, %v3756_v61  ;;  %v3759_v22 = vadd.f32 %v4622_v57, %v7712_v32  ;;  %v3750_v35 = vpop.f32.mrb[107].mxu1  ;;  %v8361_v57 = vld [vmem:[#allocation93_spill] sm:$0xff] }
 0x393   : > { %v4487_v24 = vmul.f32 -1.442695, %v3748_v25  ;;  %v3751_v51 = vadd.f32 %v7712_v32, %v3750_v35 }
 0x394   : > { %5453 = vpow2.f32 %v4489_v8  ;;  %v4490_v34 = vmul.f32 -1.442695, %v3759_v22  ;;  %v8362_v22 = vld [vmem:[#allocation77_spill] sm:$0xff] }
 0x395   : > { %5455 = vpow2.f32 %v4487_v24  ;;  %v4488_v53 = vmul.f32 -1.442695, %v3751_v51 }
 0x396   : > { %5457 = vpow2.f32 %v4490_v34  ;;  %v8364_v34 = vld [vmem:[#allocation91_spill] sm:$0xff] }
 0x397   : > { %5459 = vpow2.f32 %v4488_v53  ;;  %v5446_v36 = vpop.eup %5445 }
 0x398   : > { %v5448_v3 = vpop.eup %5447  ;;  %v3896_v15 = vsub.f32 1.0, %v5446_v36  ;;  %v3880_v56 = vmul.f32 %v5446_v36, %v8356_v0  ;;  %v8365_v36 = vld [vmem:[#allocation75_spill] sm:$0xff] }
 0x399   : > { %v5450_v58 = vpop.eup %5449  ;;  %v3894_v26 = vsub.f32 1.0, %v5448_v3  ;;  %v3878_v41 = vmul.f32 %v5448_v3, %v8358_v60 }
 0x39a   : > { %v5452_v46 = vpop.eup %5451  ;;  %v3912_v55 = vmul.f32 %v3896_v15, %v8357_v59  ;;  %v3897_v44 = vsub.f32 1.0, %v5450_v58  ;;  %v3881_v8 = vmul.f32 %v5450_v58, %v8361_v57 }
 0x39b   : > { %v3910_v61 = vmul.f32 %v3894_v26, %v8359_v31  ;;  %v3895_v19 = vsub.f32 1.0, %v5452_v46  ;;  %v3879_v53 = vmul.f32 %v5452_v46, %v8364_v34 }
 0x39c   : > { %v7755_v25 = vadd.f32 %v3912_v55, %v3880_v56  ;;  %v3913_v35 = vmul.f32 %v3897_v44, %v8362_v22 }
 0x39d   : > { %v7759_v51 = vadd.f32 %v3910_v61, %v3878_v41  ;;  %v3911_v0 = vmul.f32 %v3895_v19, %v8365_v36 }
 0x39e   : > { %8360 = vst [vmem:[#allocation55_spill] sm:$0xff] %v7755_v25  ;;  %v5454_v24 = vpop.eup %5453  ;;  %3976 = vst [vmem:[#allocation3 + $0x30] sm:$0xff] %v7755_v25  ;;  %v7764_v3 = vadd.f32 %v3913_v35, %v3881_v8  ;;  %v8376_v25 = vld [vmem:[#allocation95_spill] sm:$0xff] }
 0x39f   : > { %8363 = vst [vmem:[#allocation56_spill] sm:$0xff] %v7759_v51  ;;  %v5456_v15 = vpop.eup %5455  ;;  %v3836_v26 = vadd.f32 1.0, %v5454_v24  ;;  %3974 = vst [vmem:[#allocation3 + $0x20] sm:$0xff] %v7759_v51  ;;  %v7767_v56 = vadd.f32 %v3911_v0, %v3879_v53  ;;  %v8389_v51 = vld [vmem:[#allocation83_spill] sm:$0xff] }
 0x3a0   : > { %8366 = vst [vmem:[#allocation57_spill] sm:$0xff] %v7764_v3  ;;  %v5458_v59 = vpop.eup %5457  ;;  %v3834_v58 = vadd.f32 1.0, %v5456_v15  ;;  %3977 = vst [vmem:[#allocation3 + $0x38] sm:$0xff] %v7764_v3 }
 0x3a1   : > { %8367 = vst [vmem:[#allocation58_spill] sm:$0xff] %v7767_v56  ;;  %v5460_v55 = vpop.eup %5459  ;;  %5461 = vrcp.f32 %v3836_v26  ;;  %v3837_v44 = vadd.f32 1.0, %v5458_v59  ;;  %3975 = vst [vmem:[#allocation3 + $0x28] sm:$0xff] %v7767_v56 }
 0x3a2   : > { %5463 = vrcp.f32 %v3834_v58  ;;  %v3835_v46 = vadd.f32 1.0, %v5460_v55  ;;  %v4625_v60 = vpop.f32.mrb[108].mxu1  ;;  %v8368_v55 = vld [vmem:[#allocation96_spill] sm:$0xff] }
 0x3a3   : > { %5465 = vrcp.f32 %v3837_v44  ;;  %v3772_v41 = vadd.f32 %v4625_v60, %v7712_v32  ;;  %v3763_v31 = vpop.f32.mrb[109].mxu1 }
 0x3a4   : > { %5467 = vrcp.f32 %v3835_v46  ;;  %v3764_v61 = vadd.f32 %v7712_v32, %v3763_v31  ;;  %v4626_v19 = vpop.f32.mrb[110].mxu1  ;;  %v8369_v46 = vld [vmem:[#allocation80_spill] sm:$0xff]  ;;  %v8370_v31 = vld [vmem:[#allocation94_spill] sm:$0xff] }
 0x3a5   : > { %v4493_v57 = vmul.f32 -1.442695, %v3772_v41  ;;  %v3775_v8 = vadd.f32 %v4626_v19, %v7712_v32  ;;  %v3766_v22 = vpop.f32.mrb[111].mxu1 }
 0x3a6   : > { %v4491_v35 = vmul.f32 -1.442695, %v3764_v61  ;;  %v3767_v24 = vadd.f32 %v7712_v32, %v3766_v22  ;;  %v8371_v32 = vld [vmem:[#allocation78_spill] sm:$0xff]  ;;  %v8373_v22 = vld [vmem:[#allocation97_spill] sm:$0xff] }
 0x3a7   : > { %5469 = vpow2.f32 %v4493_v57  ;;  %v4494_v34 = vmul.f32 -1.442695, %v3775_v8 }
 0x3a8   : > { %5471 = vpow2.f32 %v4491_v35  ;;  %v4492_v53 = vmul.f32 -1.442695, %v3767_v24  ;;  %v8374_v24 = vld [vmem:[#allocation81_spill] sm:$0xff] }
 0x3a9   : > { %5473 = vpow2.f32 %v4494_v34 }
 0x3aa   : > { %5475 = vpow2.f32 %v4492_v53 }
 0x3ab   : > { %v5462_v36 = vpop.eup %5461 }
 0x3ac   : > { %v5464_v0 = vpop.eup %5463  ;;  %v3900_v15 = vsub.f32 1.0, %v5462_v36  ;;  %v3884_v44 = vmul.f32 %v5462_v36, %v8368_v55  ;;  %v8377_v36 = vld [vmem:[#allocation79_spill] sm:$0xff] }
 0x3ad   : > { %v5466_v26 = vpop.eup %5465  ;;  %v3898_v59 = vsub.f32 1.0, %v5464_v0  ;;  %v3882_v61 = vmul.f32 %v5464_v0, %v8370_v31 }
 0x3ae   : > { %v5468_v58 = vpop.eup %5467  ;;  %v3916_v60 = vmul.f32 %v3900_v15, %v8369_v46  ;;  %v3901_v41 = vsub.f32 1.0, %v5466_v26  ;;  %v3885_v35 = vmul.f32 %v5466_v26, %v8373_v22 }
 0x3af   : > { %v3914_v19 = vmul.f32 %v3898_v59, %v8371_v32  ;;  %v3899_v57 = vsub.f32 1.0, %v5468_v58  ;;  %v3883_v56 = vmul.f32 %v5468_v58, %v8376_v25  ;;  %v7798_v58 = vld [vmem:[%s8048_s11] ss:$0 sm:$0xff] }
 0x3b0   : > { %v7779_v8 = vadd.f32 %v3916_v60, %v3884_v44  ;;  %v3917_v34 = vmul.f32 %v3901_v41, %v8374_v24 }
 0x3b1   : > { %v5470_v53 = vpop.eup %5469  ;;  %v7783_v3 = vadd.f32 %v3914_v19, %v3882_v61  ;;  %v3915_v55 = vmul.f32 %v3899_v57, %v8377_v36 }
 0x3b2   : > { %8372 = vst [vmem:[#allocation59_spill] sm:$0xff] %v7779_v8  ;;  %v5472_v15 = vpop.eup %5471  ;;  %3980 = vst [vmem:[#allocation3 + $0x50] sm:$0xff] %v7779_v8  ;;  %v7788_v0 = vadd.f32 %v3917_v34, %v3885_v35  ;;  %v3840_v59 = vadd.f32 1.0, %v5470_v53  ;;  %v8386_v8 = vld [vmem:[#allocation85_spill] sm:$0xff] }
 0x3b3   : > { %8375 = vst [vmem:[#allocation113_spill] sm:$0xff] %v7783_v3  ;;  %v5474_v46 = vpop.eup %5473  ;;  %3978 = vst [vmem:[#allocation3 + $0x40] sm:$0xff] %v7783_v3  ;;  %v7791_v44 = vadd.f32 %v3915_v55, %v3883_v56  ;;  %v3838_v26 = vadd.f32 1.0, %v5472_v15 }
 0x3b4   : > { %8378 = vst [vmem:[#allocation60_spill] sm:$0xff] %v7788_v0  ;;  %v5476_v60 = vpop.eup %5475  ;;  %3981 = vst [vmem:[#allocation3 + $0x58] sm:$0xff] %v7788_v0  ;;  %5477 = vrcp.f32 %v3840_v59  ;;  %v3841_v41 = vadd.f32 1.0, %v5474_v46 }
 0x3b5   : > { %8379 = vst [vmem:[#allocation61_spill] sm:$0xff] %v7791_v44  ;;  %3979 = vst [vmem:[#allocation3 + $0x48] sm:$0xff] %v7791_v44  ;;  %5479 = vrcp.f32 %v3838_v26  ;;  %v3839_v25 = vadd.f32 1.0, %v5476_v60 }
 0x3b6   : > { %5481 = vrcp.f32 %v3841_v41  ;;  %v8380_v41 = vld [vmem:[#allocation100_spill] sm:$0xff] }
 0x3b7   : > { %5483 = vrcp.f32 %v3839_v25 }
 0x3b8   : > { %v4565_v31 = vpop.f32.mrb[96].mxu0 }
 0x3b9   : > { %v3164_v56 = vadd.f32 %v4565_v31, %v7798_v58  ;;  %v3155_v61 = vpop.f32.mrb[97].mxu0  ;;  %v8381_v31 = vld [vmem:[#allocation84_spill] sm:$0xff] }
 0x3ba   : > { %v3156_v32 = vadd.f32 %v7798_v58, %v3155_v61  ;;  %v4566_v19 = vpop.f32.mrb[98].mxu0 }
 0x3bb   : > { %v4440_v57 = vmul.f32 -1.442695, %v3164_v56  ;;  %v3167_v22 = vadd.f32 %v4566_v19, %v7798_v58  ;;  %v3158_v35 = vpop.f32.mrb[99].mxu0  ;;  %v8430_v43 = vld [vmem:[#allocation60_spill] sm:$0xff] (!%p4495_p1) }
 0x3bc   : > { %v4438_v24 = vmul.f32 -1.442695, %v3156_v32  ;;  %v3159_v34 = vadd.f32 %v7798_v58, %v3158_v35  ;;  %v8382_v32 = vld [vmem:[#allocation98_spill] sm:$0xff]  ;;  %4033 = vst [vmem:[#allocation17 + $0x58] sm:$0xff] (!%p4495_p1), %v8430_v43 }
 0x3bd   : > { %5485 = vpow2.f32 %v4440_v57  ;;  %v4441_v53 = vmul.f32 -1.442695, %v3167_v22  ;;  %v8383_v35 = vld [vmem:[#allocation82_spill] sm:$0xff] }
 0x3be   : > { %v5478_v36 = vpop.eup %5477  ;;  %5487 = vpow2.f32 %v4438_v24  ;;  %v4439_v55 = vmul.f32 -1.442695, %v3159_v34  ;;  %v8385_v24 = vld [vmem:[#allocation101_spill] sm:$0xff] }
 0x3bf   : > { %v5480_v15 = vpop.eup %5479  ;;  %v3904_v59 = vsub.f32 1.0, %v5478_v36  ;;  %5489 = vpow2.f32 %v4441_v53  ;;  %v3888_v25 = vmul.f32 %v5478_v36, %v8380_v41 }
 0x3c0   : > { %v5482_v46 = vpop.eup %5481  ;;  %v3902_v26 = vsub.f32 1.0, %v5480_v15  ;;  %5491 = vpow2.f32 %v4439_v55  ;;  %v3886_v19 = vmul.f32 %v5480_v15, %v8382_v32  ;;  %v8388_v55 = vld [vmem:[#allocation99_spill] sm:$0xff] }
 0x3c1   : > { %v5484_v60 = vpop.eup %5483  ;;  %v3920_v56 = vmul.f32 %v3904_v59, %v8381_v31  ;;  %v3905_v61 = vsub.f32 1.0, %v5482_v46  ;;  %v3889_v34 = vmul.f32 %v5482_v46, %v8385_v24 }
 0x3c2   : > { %v3918_v57 = vmul.f32 %v3902_v26, %v8383_v35  ;;  %v3903_v22 = vsub.f32 1.0, %v5484_v60  ;;  %v3887_v3 = vmul.f32 %v5484_v60, %v8388_v55 }
 0x3c3   : > { %v7808_v0 = vadd.f32 %v3920_v56, %v3888_v25  ;;  %v3921_v53 = vmul.f32 %v3905_v61, %v8386_v8 }
 0x3c4   : > { %v7812_v44 = vadd.f32 %v3918_v57, %v3886_v19  ;;  %v3919_v36 = vmul.f32 %v3903_v22, %v8389_v51 }
 0x3c5   : > { %8384 = vst [vmem:[#allocation117_spill] sm:$0xff] %v7808_v0  ;;  %3984 = vst [vmem:[#allocation3 + $0x70] sm:$0xff] %v7808_v0  ;;  %v7817_v59 = vadd.f32 %v3921_v53, %v3889_v34 }
 0x3c6   : > { %8387 = vst [vmem:[#allocation116_spill] sm:$0xff] %v7812_v44  ;;  %3982 = vst [vmem:[#allocation3 + $0x60] sm:$0xff] %v7812_v44  ;;  %v7820_v15 = vadd.f32 %v3919_v36, %v3887_v3  ;;  %v8398_v44 = vld [vmem:[#allocation39_spill] sm:$0xff] }
 0x3c7   : > { %8390 = vst [vmem:[#allocation62_spill] sm:$0xff] %v7817_v59  ;;  %v5486_v26 = vpop.eup %5485  ;;  %3985 = vst [vmem:[#allocation3 + $0x78] sm:$0xff] %v7817_v59 }
 0x3c8   : > { %8391 = vst [vmem:[#allocation63_spill] sm:$0xff] %v7820_v15  ;;  %v5488_v46 = vpop.eup %5487  ;;  %3983 = vst [vmem:[#allocation3 + $0x68] sm:$0xff] %v7820_v15  ;;  %v3380_v8 = vadd.f32 1.0, %v5486_v26 }
 0x3c9   : > { %v5490_v41 = vpop.eup %5489  ;;  %v3378_v25 = vadd.f32 1.0, %v5488_v46 }
 0x3ca   : > { %v5492_v60 = vpop.eup %5491  ;;  %5493 = vrcp.f32 %v3380_v8  ;;  %v3381_v51 = vadd.f32 1.0, %v5490_v41  ;;  %v4569_v31 = vpop.f32.mrb[100].mxu0 }
 0x3cb   : > { %5495 = vrcp.f32 %v3378_v25  ;;  %v3379_v56 = vadd.f32 1.0, %v5492_v60  ;;  %v3180_v61 = vadd.f32 %v4569_v31, %v7798_v58  ;;  %v3171_v32 = vpop.f32.mrb[101].mxu0  ;;  %v8392_v60 = vld [vmem:[#allocation40_spill] sm:$0xff] }
 0x3cc   : > { %5497 = vrcp.f32 %v3381_v51  ;;  %v3172_v3 = vadd.f32 %v7798_v58, %v3171_v32  ;;  %v4570_v19 = vpop.f32.mrb[102].mxu0  ;;  %v8393_v31 = vld [vmem:[#allocation104_spill] sm:$0xff]  ;;  %v8394_v32 = vld [vmem:[#allocation38_spill] sm:$0xff] }
 0x3cd   : > { %5499 = vrcp.f32 %v3379_v56  ;;  %v4444_v35 = vmul.f32 -1.442695, %v3180_v61  ;;  %v3183_v57 = vadd.f32 %v4570_v19, %v7798_v58  ;;  %v3174_v22 = vpop.f32.mrb[103].mxu0  ;;  %v8395_v19 = vld [vmem:[#allocation102_spill] sm:$0xff]  ;;  %v8431_v5 = vld [vmem:[#allocation116_spill] sm:$0xff] (!%p4495_p1) }
 0x3ce   : > { %v4442_v24 = vmul.f32 -1.442695, %v3172_v3  ;;  %v3175_v34 = vadd.f32 %v7798_v58, %v3174_v22  ;;  %4034 = vst [vmem:[#allocation17 + $0x60] sm:$0xff] (!%p4495_p1), %v8431_v5 }
 0x3cf   : > { %5501 = vpow2.f32 %v4444_v35  ;;  %v4445_v53 = vmul.f32 -1.442695, %v3183_v57  ;;  %v8432_v7 = vld [vmem:[#allocation63_spill] sm:$0xff] (!%p4495_p1) }
 0x3d0   : > { %5503 = vpow2.f32 %v4442_v24  ;;  %v4443_v55 = vmul.f32 -1.442695, %v3175_v34  ;;  %v8396_v34 = vld [vmem:[#allocation41_spill] sm:$0xff]  ;;  %4035 = vst [vmem:[#allocation17 + $0x68] sm:$0xff] (!%p4495_p1), %v8432_v7 }
 0x3d1   : > { %5505 = vpow2.f32 %v4445_v53 }
 0x3d2   : > { %5507 = vpow2.f32 %v4443_v55  ;;  %v8397_v55 = vld [vmem:[#allocation105_spill] sm:$0xff] }
 0x3d4   : > { %v5494_v36 = vpop.eup %5493 }
 0x3d5   : > { %v5496_v26 = vpop.eup %5495  ;;  %v3508_v46 = vsub.f32 1.0, %v5494_v36  ;;  %v3476_v51 = vmul.f32 %v5494_v36, %v8392_v60 }
 0x3d6   : > { %v5498_v8 = vpop.eup %5497  ;;  %v3506_v41 = vsub.f32 1.0, %v5496_v26  ;;  %v3474_v3 = vmul.f32 %v5496_v26, %v8394_v32 }
 0x3d7   : > { %v5500_v25 = vpop.eup %5499  ;;  %v3540_v56 = vmul.f32 %v3508_v46, %v8393_v31  ;;  %v3509_v61 = vsub.f32 1.0, %v5498_v8  ;;  %v3477_v53 = vmul.f32 %v5498_v8, %v8396_v34  ;;  %v8399_v46 = vld [vmem:[#allocation103_spill] sm:$0xff] }
 0x3d8   : > { %v3538_v35 = vmul.f32 %v3506_v41, %v8395_v19  ;;  %v3507_v57 = vsub.f32 1.0, %v5500_v25  ;;  %v3475_v36 = vmul.f32 %v5500_v25, %v8398_v44 }
 0x3d9   : > { %v5502_v22 = vpop.eup %5501  ;;  %v3572_v24 = vadd.f32 %v3540_v56, %v3476_v51  ;;  %v3541_v59 = vmul.f32 %v3509_v61, %v8397_v55 }
 0x3da   : > { %v5504_v0 = vpop.eup %5503  ;;  %v3570_v15 = vadd.f32 %v3538_v35, %v3474_v3  ;;  %v3539_v60 = vmul.f32 %v3507_v57, %v8399_v46  ;;  %v3384_v31 = vadd.f32 1.0, %v5502_v22 }
 0x3db   : > { %v5506_v21 = vpop.eup %5505  ;;  %3940 = vst [vmem:[#allocation2 + $0x10] sm:$0xff] %v3572_v24  ;;  %3988 = vst [vmem:[%s6221_s24 + $0x10] sm:$0xff] %v3572_v24  ;;  %v3573_v26 = vadd.f32 %v3541_v59, %v3477_v53  ;;  %v3382_v41 = vadd.f32 1.0, %v5504_v0 }
 0x3dc   : > { %v5508_v32 = vpop.eup %5507  ;;  %3938 = vst [vmem:[#allocation2] sm:$0xff] %v3570_v15  ;;  %3986 = vst [vmem:[%s6221_s24] sm:$0xff] %v3570_v15  ;;  %v3571_v8 = vadd.f32 %v3539_v60, %v3475_v36  ;;  %5509 = vrcp.f32 %v3384_v31  ;;  %v3385_v51 = vadd.f32 1.0, %v5506_v21  ;;  %v8400_v60 = vld [vmem:[#allocation44_spill] sm:$0xff] }
 0x3dd   : > { %3941 = vst [vmem:[#allocation2 + $0x18] sm:$0xff] %v3573_v26  ;;  %3989 = vst [vmem:[%s6221_s24 + $0x18] sm:$0xff] %v3573_v26  ;;  %5511 = vrcp.f32 %v3382_v41  ;;  %v3383_v56 = vadd.f32 1.0, %v5508_v32  ;;  %v8401_v26 = vld [vmem:[#allocation108_spill] sm:$0xff] }
 0x3de   : > { %3939 = vst [vmem:[#allocation2 + $0x8] sm:$0xff] %v3571_v8  ;;  %3987 = vst [vmem:[%s6221_s24 + $0x8] sm:$0xff] %v3571_v8  ;;  %5513 = vrcp.f32 %v3385_v51  ;;  %v8402_v8 = vld [vmem:[#allocation42_spill] sm:$0xff] }
 0x3df   : > { %5515 = vrcp.f32 %v3383_v56  ;;  %v4573_v44 = vpop.f32.mrb[104].mxu0  ;;  %v8403_v56 = vld [vmem:[#allocation106_spill] sm:$0xff] }
 0x3e0   : > { %v3196_v25 = vadd.f32 %v4573_v44, %v7798_v58  ;;  %v3187_v61 = vpop.f32.mrb[105].mxu0 }
 0x3e1   : > { %v3188_v0 = vadd.f32 %v7798_v58, %v3187_v61  ;;  %v4574_v59 = vpop.f32.mrb[106].mxu0 }
 0x3e2   : > { %v4448_v3 = vmul.f32 -1.442695, %v3196_v25  ;;  %v3199_v15 = vadd.f32 %v4574_v59, %v7798_v58  ;;  %v3190_v19 = vpop.f32.mrb[107].mxu0 }
 0x3e3   : > { %v4446_v21 = vmul.f32 -1.442695, %v3188_v0  ;;  %v3191_v35 = vadd.f32 %v7798_v58, %v3190_v19  ;;  %v8404_v0 = vld [vmem:[#allocation45_spill] sm:$0xff] }
 0x3e4   : > { %5517 = vpow2.f32 %v4448_v3  ;;  %v4449_v57 = vmul.f32 -1.442695, %v3199_v15  ;;  %v8405_v3 = vld [vmem:[#allocation109_spill] sm:$0xff] }
 0x3e5   : > { %5519 = vpow2.f32 %v4446_v21  ;;  %v4447_v22 = vmul.f32 -1.442695, %v3191_v35  ;;  %v8406_v21 = vld [vmem:[#allocation43_spill] sm:$0xff] }
 0x3e6   : > { %v5510_v24 = vpop.eup %5509  ;;  %5521 = vpow2.f32 %v4449_v57  ;;  %v8407_v57 = vld [vmem:[#allocation107_spill] sm:$0xff] }
 0x3e7   : > { %v5512_v34 = vpop.eup %5511  ;;  %v3512_v53 = vsub.f32 1.0, %v5510_v24  ;;  %5523 = vpow2.f32 %v4447_v22  ;;  %v3480_v31 = vmul.f32 %v5510_v24, %v8400_v60 }
 0x3e8   : > { %v5514_v55 = vpop.eup %5513  ;;  %v3510_v36 = vsub.f32 1.0, %v5512_v34  ;;  %v3478_v51 = vmul.f32 %v5512_v34, %v8402_v8 }
 0x3e9   : > { %v5516_v46 = vpop.eup %5515  ;;  %v3544_v41 = vmul.f32 %v3512_v53, %v8401_v26  ;;  %v3513_v32 = vsub.f32 1.0, %v5514_v55  ;;  %v3481_v59 = vmul.f32 %v5514_v55, %v8404_v0 }
 0x3ea   : > { %v3542_v44 = vmul.f32 %v3510_v36, %v8403_v56  ;;  %v3511_v25 = vsub.f32 1.0, %v5516_v46  ;;  %v3479_v35 = vmul.f32 %v5516_v46, %v8406_v21 }
 0x3eb   : > { %v3576_v61 = vadd.f32 %v3544_v41, %v3480_v31  ;;  %v3545_v15 = vmul.f32 %v3513_v32, %v8405_v3 }
 0x3ec   : > { %v3574_v19 = vadd.f32 %v3542_v44, %v3478_v51  ;;  %v3543_v22 = vmul.f32 %v3511_v25, %v8407_v57 }
 0x3ed   : > { %3944 = vst [vmem:[#allocation2 + $0x30] sm:$0xff] %v3576_v61  ;;  %3992 = vst [vmem:[%s6221_s24 + $0x30] sm:$0xff] %v3576_v61  ;;  %v3577_v24 = vadd.f32 %v3545_v15, %v3481_v59 }
 0x3ee   : > { %v5518_v53 = vpop.eup %5517  ;;  %3942 = vst [vmem:[#allocation2 + $0x20] sm:$0xff] %v3574_v19  ;;  %3990 = vst [vmem:[%s6221_s24 + $0x20] sm:$0xff] %v3574_v19  ;;  %v3575_v34 = vadd.f32 %v3543_v22, %v3479_v35 }
 0x3ef   : > { %v5520_v36 = vpop.eup %5519  ;;  %3945 = vst [vmem:[#allocation2 + $0x38] sm:$0xff] %v3577_v24  ;;  %3993 = vst [vmem:[%s6221_s24 + $0x38] sm:$0xff] %v3577_v24  ;;  %v3388_v60 = vadd.f32 1.0, %v5518_v53 }
 0x3f0   : > { %v5522_v55 = vpop.eup %5521  ;;  %3943 = vst [vmem:[#allocation2 + $0x28] sm:$0xff] %v3575_v34  ;;  %3991 = vst [vmem:[%s6221_s24 + $0x28] sm:$0xff] %v3575_v34  ;;  %v3386_v31 = vadd.f32 1.0, %v5520_v36  ;;  %v8408_v34 = vld [vmem:[#allocation48_spill] sm:$0xff] }
 0x3f1   : > { %v5524_v26 = vpop.eup %5523  ;;  %5525 = vrcp.f32 %v3388_v60  ;;  %v3389_v46 = vadd.f32 1.0, %v5522_v55  ;;  %v4577_v41 = vpop.f32.mrb[108].mxu0  ;;  %v8409_v60 = vld [vmem:[#allocation112_spill] sm:$0xff] }
 0x3f2   : > { %5527 = vrcp.f32 %v3386_v31  ;;  %v3387_v32 = vadd.f32 1.0, %v5524_v26  ;;  %v3212_v8 = vadd.f32 %v4577_v41, %v7798_v58  ;;  %v3203_v51 = vpop.f32.mrb[109].mxu0  ;;  %v8410_v26 = vld [vmem:[#allocation46_spill] sm:$0xff] }
 0x3f3   : > { %5529 = vrcp.f32 %v3389_v46  ;;  %v3204_v56 = vadd.f32 %v7798_v58, %v3203_v51  ;;  %v4578_v44 = vpop.f32.mrb[110].mxu0  ;;  %v8411_v41 = vld [vmem:[#allocation110_spill] sm:$0xff] }
 0x3f4   : > { %5531 = vrcp.f32 %v3387_v32  ;;  %v4452_v25 = vmul.f32 -1.442695, %v3212_v8  ;;  %v3215_v61 = vadd.f32 %v4578_v44, %v7798_v58  ;;  %v3206_v0 = vpop.f32.mrb[111].mxu0  ;;  %v8412_v44 = vld [vmem:[#allocation49_spill] sm:$0xff] }
 0x3f5   : > { %v4450_v59 = vmul.f32 -1.442695, %v3204_v56  ;;  %v3207_v3 = vadd.f32 %v7798_v58, %v3206_v0 }
 0x3f6   : > { %5533 = vpow2.f32 %v4452_v25  ;;  %v4453_v15 = vmul.f32 -1.442695, %v3215_v61  ;;  %v8413_v61 = vld [vmem:[#allocation114_spill] sm:$0xff] }
 0x3f7   : > { %5535 = vpow2.f32 %v4450_v59  ;;  %v4451_v19 = vmul.f32 -1.442695, %v3207_v3 }
 0x3f8   : > { %5537 = vpow2.f32 %v4453_v15  ;;  %v8414_v15 = vld [vmem:[#allocation47_spill] sm:$0xff] }
 0x3f9   : > { %5539 = vpow2.f32 %v4451_v19 }
 0x3fb   : > { %v5526_v21 = vpop.eup %5525 }
 0x3fc   : > { %v5528_v35 = vpop.eup %5527  ;;  %v3516_v57 = vsub.f32 1.0, %v5526_v21  ;;  %v3484_v36 = vmul.f32 %v5526_v21, %v8408_v34  ;;  %v8415_v21 = vld [vmem:[#allocation111_spill] sm:$0xff] }
 0x3fd   : > { %v5530_v22 = vpop.eup %5529  ;;  %v3514_v24 = vsub.f32 1.0, %v5528_v35  ;;  %v3482_v46 = vmul.f32 %v5528_v35, %v8410_v26 }
 0x3fe   : > { %v5532_v53 = vpop.eup %5531  ;;  %v3548_v55 = vmul.f32 %v3516_v57, %v8409_v60  ;;  %v3517_v31 = vsub.f32 1.0, %v5530_v22  ;;  %v3485_v25 = vmul.f32 %v5530_v22, %v8412_v44 }
 0x3ff   : > { %v3546_v32 = vmul.f32 %v3514_v24, %v8411_v41  ;;  %v3515_v8 = vsub.f32 1.0, %v5532_v53  ;;  %v3483_v19 = vmul.f32 %v5532_v53, %v8414_v15 }
 0x400   : > { %v5534_v51 = vpop.eup %5533  ;;  %v3580_v56 = vadd.f32 %v3548_v55, %v3484_v36  ;;  %v3549_v0 = vmul.f32 %v3517_v31, %v8413_v61 }
 0x401   : > { %v5536_v59 = vpop.eup %5535  ;;  %v3578_v3 = vadd.f32 %v3546_v32, %v3482_v46  ;;  %v3547_v57 = vmul.f32 %v3515_v8, %v8415_v21  ;;  %v3392_v34 = vadd.f32 1.0, %v5534_v51 }
 0x402   : > { %v5538_v60 = vpop.eup %5537  ;;  %3948 = vst [vmem:[#allocation2 + $0x50] sm:$0xff] %v3580_v56  ;;  %3996 = vst [vmem:[%s6221_s24 + $0x50] sm:$0xff] %v3580_v56  ;;  %v3581_v35 = vadd.f32 %v3549_v0, %v3485_v25  ;;  %v3390_v24 = vadd.f32 1.0, %v5536_v59 }
 0x403   : > { %v5540_v26 = vpop.eup %5539  ;;  %3946 = vst [vmem:[#allocation2 + $0x40] sm:$0xff] %v3578_v3  ;;  %3994 = vst [vmem:[%s6221_s24 + $0x40] sm:$0xff] %v3578_v3  ;;  %v3579_v22 = vadd.f32 %v3547_v57, %v3483_v19  ;;  %5541 = vrcp.f32 %v3392_v34  ;;  %v3393_v36 = vadd.f32 1.0, %v5538_v60  ;;  %v8416_v34 = vld [vmem:[#allocation52_spill] sm:$0xff] }
 0x404   : > { %3949 = vst [vmem:[#allocation2 + $0x58] sm:$0xff] %v3581_v35  ;;  %3997 = vst [vmem:[%s6221_s24 + $0x58] sm:$0xff] %v3581_v35  ;;  %5543 = vrcp.f32 %v3390_v24  ;;  %v3391_v55 = vadd.f32 1.0, %v5540_v26  ;;  %v8417_v26 = vld [vmem:[#allocation50_spill] sm:$0xff] }
 0x405   : > { %3947 = vst [vmem:[#allocation2 + $0x48] sm:$0xff] %v3579_v22  ;;  %3995 = vst [vmem:[%s6221_s24 + $0x48] sm:$0xff] %v3579_v22  ;;  %5545 = vrcp.f32 %v3393_v36  ;;  %v8418_v36 = vld [vmem:[#allocation115_spill] sm:$0xff] }
 0x406   : > { %5547 = vrcp.f32 %v3391_v55 }
 0x408   : > { %v4581_v53 = vpop.f32.mrb[112].mxu0 }
 0x409   : > { %v3228_v31 = vadd.f32 %v4581_v53, %v7798_v58  ;;  %v3219_v46 = vpop.f32.mrb[113].mxu0 }
 0x40a   : > { %v3220_v41 = vadd.f32 %v7798_v58, %v3219_v46  ;;  %v4582_v32 = vpop.f32.mrb[114].mxu0 }
 0x40b   : > { %v4456_v8 = vmul.f32 -1.442695, %v3228_v31  ;;  %v3231_v51 = vadd.f32 %v4582_v32, %v7798_v58  ;;  %v3222_v56 = vpop.f32.mrb[115].mxu0 }
 0x40c   : > { %v4454_v44 = vmul.f32 -1.442695, %v3220_v41  ;;  %v3223_v25 = vadd.f32 %v7798_v58, %v3222_v56  ;;  %v8420_v56 = vld [vmem:[#allocation118_spill] sm:$0xff] }
 0x40d   : > { %v5542_v61 = vpop.eup %5541  ;;  %5549 = vpow2.f32 %v4456_v8  ;;  %v4457_v0 = vmul.f32 -1.442695, %v3231_v51  ;;  %v8419_v8 = vld [vmem:[#allocation51_spill] sm:$0xff] }
 0x40e   : > { %v5544_v59 = vpop.eup %5543  ;;  %v3520_v3 = vsub.f32 1.0, %v5542_v61  ;;  %5551 = vpow2.f32 %v4454_v44  ;;  %v4455_v15 = vmul.f32 -1.442695, %v3223_v25  ;;  %v3488_v60 = vmul.f32 %v5542_v61, %v8416_v34 }
 0x40f   : > { %v5546_v19 = vpop.eup %5545  ;;  %v3518_v21 = vsub.f32 1.0, %v5544_v59  ;;  %5553 = vpow2.f32 %v4457_v0  ;;  %v3486_v22 = vmul.f32 %v5544_v59, %v8417_v26 }
 0x410   : > { %v5548_v57 = vpop.eup %5547  ;;  %v3552_v35 = vmul.f32 %v3520_v3, %v7539_v49  ;;  %v3521_v24 = vsub.f32 1.0, %v5546_v19  ;;  %5555 = vpow2.f32 %v4455_v15  ;;  %v3489_v46 = vmul.f32 %v5546_v19, %v8327_v29 }
 0x411   : > { %v3550_v55 = vmul.f32 %v3518_v21, %v8418_v36  ;;  %v3519_v53 = vsub.f32 1.0, %v5548_v57  ;;  %v3487_v51 = vmul.f32 %v5548_v57, %v8419_v8 }
 0x412   : > { %v3584_v31 = vadd.f32 %v3552_v35, %v3488_v60  ;;  %v3553_v41 = vmul.f32 %v3521_v24, %v7552_v50 }
 0x413   : > { %v3582_v32 = vadd.f32 %v3550_v55, %v3486_v22  ;;  %v3551_v49 = vmul.f32 %v3519_v53, %v8420_v56 }
 0x414   : > { %3952 = vst [vmem:[#allocation2 + $0x70] sm:$0xff] %v3584_v31  ;;  %4000 = vst [vmem:[%s6221_s24 + $0x70] sm:$0xff] %v3584_v31  ;;  %v3585_v44 = vadd.f32 %v3553_v41, %v3489_v46 }
 0x415   : > { %3950 = vst [vmem:[#allocation2 + $0x60] sm:$0xff] %v3582_v32  ;;  %3998 = vst [vmem:[%s6221_s24 + $0x60] sm:$0xff] %v3582_v32  ;;  %v3583_v25 = vadd.f32 %v3551_v49, %v3487_v51 }
 0x416   : > { %3953 = vst [vmem:[#allocation2 + $0x78] sm:$0xff] %v3585_v44  ;;  %4001 = vst [vmem:[%s6221_s24 + $0x78] sm:$0xff] %v3585_v44 }
 0x417   : > { %v5550_v61 = vpop.eup %5549  ;;  %3951 = vst [vmem:[#allocation2 + $0x68] sm:$0xff] %v3583_v25  ;;  %3999 = vst [vmem:[%s6221_s24 + $0x68] sm:$0xff] %v3583_v25 }
 0x418   : > { %v5552_v0 = vpop.eup %5551  ;;  %v3396_v29 = vadd.f32 1.0, %v5550_v61  ;;  %v8421_v61 = vld [vmem:[#allocation54_spill] sm:$0xff] }
 0x419   : > { %v5554_v59 = vpop.eup %5553  ;;  %v3394_v50 = vadd.f32 1.0, %v5552_v0 }
 0x41a   : > { %v5556_v3 = vpop.eup %5555  ;;  %5557 = vrcp.f32 %v3396_v29  ;;  %v3397_v15 = vadd.f32 1.0, %v5554_v59  ;;  %v4585_v19 = vpop.f32.mrb[116].mxu0 }
 0x41b   : > { %5559 = vrcp.f32 %v3394_v50  ;;  %v3395_v21 = vadd.f32 1.0, %v5556_v3  ;;  %v3244_v57 = vadd.f32 %v4585_v19, %v7798_v58  ;;  %v3235_v34 = vpop.f32.mrb[117].mxu0 }
 0x41c   : > { %5561 = vrcp.f32 %v3397_v15  ;;  %v3236_v60 = vadd.f32 %v7798_v58, %v3235_v34  ;;  %v4586_v35 = vpop.f32.mrb[118].mxu0 }
 0x41d   : > { %5563 = vrcp.f32 %v3395_v21  ;;  %v4460_v24 = vmul.f32 -1.442695, %v3244_v57  ;;  %v3247_v26 = vadd.f32 %v4586_v35, %v7798_v58  ;;  %v3238_v22 = vpop.f32.mrb[119].mxu0 }
 0x41e   : > { %v4458_v36 = vmul.f32 -1.442695, %v3236_v60  ;;  %v3239_v55 = vadd.f32 %v7798_v58, %v3238_v22 }
 0x41f   : > { %5565 = vpow2.f32 %v4460_v24  ;;  %v4461_v53 = vmul.f32 -1.442695, %v3247_v26 }
 0x420   : > { %5567 = vpow2.f32 %v4458_v36  ;;  %v4459_v31 = vmul.f32 -1.442695, %v3239_v55 }
 0x421   : > { %5569 = vpow2.f32 %v4461_v53 }
 0x422   : > { %5571 = vpow2.f32 %v4459_v31 }
 0x424   : > { %v5558_v46 = vpop.eup %5557 }
 0x425   : > { %v5560_v41 = vpop.eup %5559  ;;  %v3524_v32 = vsub.f32 1.0, %v5558_v46  ;;  %v3492_v49 = vmul.f32 %v5558_v46, %v8330_v39 }
 0x426   : > { %v5562_v8 = vpop.eup %5561  ;;  %v3522_v51 = vsub.f32 1.0, %v5560_v41  ;;  %v3490_v0 = vmul.f32 %v5560_v41, %v8421_v61 }
 0x427   : > { %v5564_v56 = vpop.eup %5563  ;;  %v3556_v44 = vmul.f32 %v3524_v32, %v7609_v42  ;;  %v3525_v25 = vsub.f32 1.0, %v5562_v8  ;;  %v3493_v15 = vmul.f32 %v5562_v8, %v8331_v27 }
 0x428   : > { %v3554_v29 = vmul.f32 %v3522_v51, %v7577_v4  ;;  %v3523_v59 = vsub.f32 1.0, %v5564_v56  ;;  %v3491_v39 = vmul.f32 %v5564_v56, %v8329_v54 }
 0x429   : > { %v5566_v50 = vpop.eup %5565  ;;  %v3588_v3 = vadd.f32 %v3556_v44, %v3492_v49  ;;  %v3557_v19 = vmul.f32 %v3525_v25, %v7621_v40 }
 0x42a   : > { %v5568_v21 = vpop.eup %5567  ;;  %v3586_v57 = vadd.f32 %v3554_v29, %v3490_v0  ;;  %v3555_v42 = vmul.f32 %v3523_v59, %v7588_v12  ;;  %v3400_v34 = vadd.f32 1.0, %v5566_v50 }
 0x42b   : > { %v5570_v60 = vpop.eup %5569  ;;  %3956 = vst [vmem:[#allocation2 + $0x90] sm:$0xff] %v3588_v3  ;;  %4004 = vst [vmem:[%s6221_s24 + $0x90] sm:$0xff] %v3588_v3  ;;  %v3589_v4 = vadd.f32 %v3557_v19, %v3493_v15  ;;  %v3398_v35 = vadd.f32 1.0, %v5568_v21 }
 0x42c   : > { %v5572_v24 = vpop.eup %5571  ;;  %3954 = vst [vmem:[#allocation2 + $0x80] sm:$0xff] %v3586_v57  ;;  %4002 = vst [vmem:[%s6221_s24 + $0x80] sm:$0xff] %v3586_v57  ;;  %v3587_v27 = vadd.f32 %v3555_v42, %v3491_v39  ;;  %5573 = vrcp.f32 %v3400_v34  ;;  %v3401_v40 = vadd.f32 1.0, %v5570_v60 }
 0x42d   : > { %3957 = vst [vmem:[#allocation2 + $0x98] sm:$0xff] %v3589_v4  ;;  %4005 = vst [vmem:[%s6221_s24 + $0x98] sm:$0xff] %v3589_v4  ;;  %5575 = vrcp.f32 %v3398_v35  ;;  %v3399_v26 = vadd.f32 1.0, %v5572_v24 }
 0x42e   : > { %3955 = vst [vmem:[#allocation2 + $0x88] sm:$0xff] %v3587_v27  ;;  %4003 = vst [vmem:[%s6221_s24 + $0x88] sm:$0xff] %v3587_v27  ;;  %5577 = vrcp.f32 %v3401_v40  ;;  %v4589_v54 = vpop.f32.mrb[120].mxu0 }
 0x42f   : > { %5579 = vrcp.f32 %v3399_v26  ;;  %v3260_v12 = vadd.f32 %v4589_v54, %v7798_v58  ;;  %v3251_v22 = vpop.f32.mrb[121].mxu0 }
 0x430   : > { %v3252_v36 = vadd.f32 %v7798_v58, %v3251_v22  ;;  %v4590_v55 = vpop.f32.mrb[122].mxu0 }
 0x431   : > { %v4464_v53 = vmul.f32 -1.442695, %v3260_v12  ;;  %v3263_v31 = vadd.f32 %v4590_v55, %v7798_v58  ;;  %v3254_v46 = vpop.f32.mrb[123].mxu0 }
 0x432   : > { %v4462_v41 = vmul.f32 -1.442695, %v3252_v36  ;;  %v3255_v32 = vadd.f32 %v7798_v58, %v3254_v46 }
 0x433   : > { %5581 = vpow2.f32 %v4464_v53  ;;  %v4465_v8 = vmul.f32 -1.442695, %v3263_v31 }
 0x434   : > { %5583 = vpow2.f32 %v4462_v41  ;;  %v4463_v51 = vmul.f32 -1.442695, %v3255_v32 }
 0x435   : > { %5585 = vpow2.f32 %v4465_v8 }
 0x436   : > { %v5574_v56 = vpop.eup %5573  ;;  %5587 = vpow2.f32 %v4463_v51 }
 0x437   : > { %v5576_v49 = vpop.eup %5575  ;;  %v3528_v44 = vsub.f32 1.0, %v5574_v56  ;;  %v3496_v29 = vmul.f32 %v5574_v56, %v8335_v1 }
 0x438   : > { %v5578_v25 = vpop.eup %5577  ;;  %v3526_v61 = vsub.f32 1.0, %v5576_v49  ;;  %v3494_v3 = vmul.f32 %v5576_v49, %v8332_v45 }
 0x439   : > { %v5580_v0 = vpop.eup %5579  ;;  %v3560_v59 = vmul.f32 %v3528_v44, %v7651_v38  ;;  %v3529_v50 = vsub.f32 1.0, %v5578_v25  ;;  %v3497_v57 = vmul.f32 %v5578_v25, %v8336_v16 }
 0x43a   : > { %v3558_v15 = vmul.f32 %v3526_v61, %v7633_v11  ;;  %v3527_v19 = vsub.f32 1.0, %v5580_v0  ;;  %v3495_v34 = vmul.f32 %v5580_v0, %v8333_v14 }
 0x43b   : > { %v3592_v21 = vadd.f32 %v3560_v59, %v3496_v29  ;;  %v3561_v39 = vmul.f32 %v3529_v50, %v7660_v17 }
 0x43c   : > { %v3590_v42 = vadd.f32 %v3558_v15, %v3494_v3  ;;  %v3559_v1 = vmul.f32 %v3527_v19, %v7642_v23 }
 0x43d   : > { %v5582_v38 = vpop.eup %5581  ;;  %3960 = vst [vmem:[#allocation2 + $0xb0] sm:$0xff] %v3592_v21  ;;  %4008 = vst [vmem:[%s6221_s24 + $0xb0] sm:$0xff] %v3592_v21  ;;  %v3593_v60 = vadd.f32 %v3561_v39, %v3497_v57 }
 0x43e   : > { %v5584_v45 = vpop.eup %5583  ;;  %3958 = vst [vmem:[#allocation2 + $0xa0] sm:$0xff] %v3590_v42  ;;  %4006 = vst [vmem:[%s6221_s24 + $0xa0] sm:$0xff] %v3590_v42  ;;  %v3591_v11 = vadd.f32 %v3559_v1, %v3495_v34  ;;  %v3404_v4 = vadd.f32 1.0, %v5582_v38 }
 0x43f   : > { %v5586_v35 = vpop.eup %5585  ;;  %3961 = vst [vmem:[#allocation2 + $0xb8] sm:$0xff] %v3593_v60  ;;  %4009 = vst [vmem:[%s6221_s24 + $0xb8] sm:$0xff] %v3593_v60  ;;  %v3402_v16 = vadd.f32 1.0, %v5584_v45 }
 0x440   : > { %v5588_v17 = vpop.eup %5587  ;;  %3959 = vst [vmem:[#allocation2 + $0xa8] sm:$0xff] %v3591_v11  ;;  %4007 = vst [vmem:[%s6221_s24 + $0xa8] sm:$0xff] %v3591_v11  ;;  %5589 = vrcp.f32 %v3404_v4  ;;  %v3405_v14 = vadd.f32 1.0, %v5586_v35 }
 0x441   : > { %5591 = vrcp.f32 %v3402_v16  ;;  %v3403_v23 = vadd.f32 1.0, %v5588_v17 }
 0x442   : > { %5593 = vrcp.f32 %v3405_v14 }
 0x443   : > { %5595 = vrcp.f32 %v3403_v23  ;;  %v4593_v24 = vpop.f32.mrb[124].mxu0 }
 0x444   : > { %v3276_v27 = vadd.f32 %v4593_v24, %v7798_v58  ;;  %v3267_v40 = vpop.f32.mrb[125].mxu0 }
 0x445   : > { %v3268_v26 = vadd.f32 %v7798_v58, %v3267_v40  ;;  %v4594_v54 = vpop.f32.mrb[126].mxu0 }
 0x446   : > { %v4468_v12 = vmul.f32 -1.442695, %v3276_v27  ;;  %v3279_v22 = vadd.f32 %v4594_v54, %v7798_v58  ;;  %v3270_v36 = vpop.f32.mrb[127].mxu0  ;;  %v8427_v54 = vld [vmem:[#allocation113_spill] sm:$0xff] (!%p4495_p1) }
 0x447   : > { %v4466_v55 = vmul.f32 -1.442695, %v3268_v26  ;;  %v3271_v53 = vadd.f32 %v7798_v58, %v3270_v36  ;;  %4030 = vst [vmem:[#allocation17 + $0x40] sm:$0xff] (!%p4495_p1), %v8427_v54  ;;  %v8433_v36 = vld [vmem:[#allocation117_spill] sm:$0xff] (!%p4495_p1) }
 0x448   : > { %5597 = vpow2.f32 %v4468_v12  ;;  %v4469_v31 = vmul.f32 -1.442695, %v3279_v22  ;;  %v8428_v12 = vld [vmem:[#allocation61_spill] sm:$0xff] (!%p4495_p1)  ;;  %v8429_v22 = vld [vmem:[#allocation59_spill] sm:$0xff] (!%p4495_p1)  ;;  %4036 = vst [vmem:[#allocation17 + $0x70] sm:$0xff] (!%p4495_p1), %v8433_v36 }
 0x449   : > { %5599 = vpow2.f32 %v4466_v55  ;;  %v4467_v46 = vmul.f32 -1.442695, %v3271_v53  ;;  %4031 = vst [vmem:[#allocation17 + $0x48] sm:$0xff] (!%p4495_p1), %v8428_v12  ;;  %4032 = vst [vmem:[#allocation17 + $0x50] sm:$0xff] (!%p4495_p1), %v8429_v22  ;;  %v8434_v55 = vld [vmem:[#allocation62_spill] sm:$0xff] (!%p4495_p1) }
 0x44a   : > { %v5590_v41 = vpop.eup %5589  ;;  %5601 = vpow2.f32 %v4469_v31  ;;  %4037 = vst [vmem:[#allocation17 + $0x78] sm:$0xff] (!%p4495_p1), %v8434_v55 }
 0x44b   : > { %v5592_v32 = vpop.eup %5591  ;;  %v3532_v8 = vsub.f32 1.0, %v5590_v41  ;;  %5603 = vpow2.f32 %v4467_v46  ;;  %v3500_v44 = vmul.f32 %v5590_v41, %v8341_v20 }
 0x44c   : > { %v5594_v51 = vpop.eup %5593  ;;  %v3530_v56 = vsub.f32 1.0, %v5592_v32  ;;  %v3498_v58 = vmul.f32 %v5592_v32, %v8339_v18 }
 0x44d   : > { %v5596_v49 = vpop.eup %5595  ;;  %v3564_v25 = vmul.f32 %v3532_v8, %v7687_v62  ;;  %v3533_v61 = vsub.f32 1.0, %v5594_v51  ;;  %v3501_v50 = vmul.f32 %v5594_v51, %v8342_v9 }
 0x44e   : > { %v3562_v0 = vmul.f32 %v3530_v56, %v7669_v52  ;;  %v3531_v29 = vsub.f32 1.0, %v5596_v49  ;;  %v3499_v19 = vmul.f32 %v5596_v49, %v8340_v28 }
 0x44f   : > { %v3596_v59 = vadd.f32 %v3564_v25, %v3500_v44  ;;  %v3565_v3 = vmul.f32 %v3533_v61, %v7690_v30 }
 0x450   : > { %v3594_v15 = vadd.f32 %v3562_v0, %v3498_v58  ;;  %v3563_v20 = vmul.f32 %v3531_v29, %v7676_v2 }
 0x451   : > { %3964 = vst [vmem:[#allocation2 + $0xd0] sm:$0xff] %v3596_v59  ;;  %4012 = vst [vmem:[%s6221_s24 + $0xd0] sm:$0xff] %v3596_v59  ;;  %v3597_v62 = vadd.f32 %v3565_v3, %v3501_v50 }
 0x452   : > { %v5598_v21 = vpop.eup %5597  ;;  %3962 = vst [vmem:[#allocation2 + $0xc0] sm:$0xff] %v3594_v15  ;;  %4010 = vst [vmem:[%s6221_s24 + $0xc0] sm:$0xff] %v3594_v15  ;;  %v3595_v18 = vadd.f32 %v3563_v20, %v3499_v19 }
 0x453   : > { %v5600_v52 = vpop.eup %5599  ;;  %3965 = vst [vmem:[#allocation2 + $0xd8] sm:$0xff] %v3597_v62  ;;  %4013 = vst [vmem:[%s6221_s24 + $0xd8] sm:$0xff] %v3597_v62  ;;  %v3408_v57 = vadd.f32 1.0, %v5598_v21 }
 0x454   : > { %v5602_v9 = vpop.eup %5601  ;;  %3963 = vst [vmem:[#allocation2 + $0xc8] sm:$0xff] %v3595_v18  ;;  %4011 = vst [vmem:[%s6221_s24 + $0xc8] sm:$0xff] %v3595_v18  ;;  %v3406_v30 = vadd.f32 1.0, %v5600_v52 }
 0x455   : > { %v5604_v39 = vpop.eup %5603  ;;  %5605 = vrcp.f32 %v3408_v57  ;;  %v3409_v28 = vadd.f32 1.0, %v5602_v9 }
 0x456   : > { %5607 = vrcp.f32 %v3406_v30  ;;  %v3407_v2 = vadd.f32 1.0, %v5604_v39 }
 0x457   : > { %5609 = vrcp.f32 %v3409_v28 }
 0x458   : > { %5611 = vrcp.f32 %v3407_v2 }
 0x45f   : > { %v5606_v42 = vpop.eup %5605 }
 0x460   : > { %v5608_v34 = vpop.eup %5607  ;;  %v3536_v1 = vsub.f32 1.0, %v5606_v42  ;;  %v3504_v11 = vmul.f32 %v5606_v42, %v8345_v37 }
 0x461   : > { %v5610_v38 = vpop.eup %5609  ;;  %v3534_v60 = vsub.f32 1.0, %v5608_v34  ;;  %v3502_v16 = vmul.f32 %v5608_v34, %v8343_v13 }
 0x462   : > { %v5612_v45 = vpop.eup %5611  ;;  %v3568_v4 = vmul.f32 %v3536_v1, %v7707_v33  ;;  %v3537_v35 = vsub.f32 1.0, %v5610_v38  ;;  %v3505_v24 = vmul.f32 %v5610_v38, %v8346_v48  ;;  %v8425_v48 = vld [vmem:[#allocation55_spill] sm:$0xff] (!%p4495_p1) }
 0x463   : > { %v3566_v17 = vmul.f32 %v3534_v60, %v7699_v63  ;;  %v3535_v14 = vsub.f32 1.0, %v5612_v45  ;;  %v3503_v26 = vmul.f32 %v5612_v45, %v8344_v47  ;;  %4021 = sbr.rel (%p4495_p1) target bundleno = 1131 (0x46b), region = 91  ;;  %v8422_v63 = vld [vmem:[#allocation53_spill] sm:$0xff] (!%p4495_p1)  ;;  %v8423_v47 = vld [vmem:[#allocation56_spill] sm:$0xff] (!%p4495_p1)  ;;  %4028 = vst [vmem:[#allocation17 + $0x30] sm:$0xff] (!%p4495_p1), %v8425_v48 }
 0x464   : > { %v3600_v23 = vadd.f32 %v3568_v4, %v3504_v11  ;;  %v3569_v27 = vmul.f32 %v3537_v35, %v7715_v6  ;;  %4025 = vst [vmem:[#allocation17 + $0x18] sm:$0xff] (!%p4495_p1), %v8422_v63  ;;  %4026 = vst [vmem:[#allocation17 + $0x20] sm:$0xff] (!%p4495_p1), %v8423_v47  ;;  %v8426_v6 = vld [vmem:[#allocation57_spill] sm:$0xff] (!%p4495_p1) }
 0x465   : > { %v3598_v40 = vadd.f32 %v3566_v17, %v3502_v16  ;;  %v3567_v37 = vmul.f32 %v3535_v14, %v7702_v10  ;;  %v8424_v10 = vld [vmem:[#allocation58_spill] sm:$0xff] (!%p4495_p1)  ;;  %4029 = vst [vmem:[#allocation17 + $0x38] sm:$0xff] (!%p4495_p1), %v8426_v6 }
 0x466   : > { %3968 = vst [vmem:[#allocation2 + $0xf0] sm:$0xff] %v3600_v23  ;;  %4016 = vst [vmem:[%s6221_s24 + $0xf0] sm:$0xff] %v3600_v23  ;;  %v3601_v33 = vadd.f32 %v3569_v27, %v3505_v24 }
 0x467   : > { %3966 = vst [vmem:[#allocation2 + $0xe0] sm:$0xff] %v3598_v40  ;;  %4014 = vst [vmem:[%s6221_s24 + $0xe0] sm:$0xff] %v3598_v40  ;;  %v3599_v13 = vadd.f32 %v3567_v37, %v3503_v26 }
 0x468   : > { %3969 = vst [vmem:[#allocation2 + $0xf8] sm:$0xff] %v3601_v33  ;;  %4017 = vst [vmem:[%s6221_s24 + $0xf8] sm:$0xff] %v3601_v33 }
 0x469   : > { %3967 = vst [vmem:[#allocation2 + $0xe8] sm:$0xff] %v3599_v13  ;;  %4015 = vst [vmem:[%s6221_s24 + $0xe8] sm:$0xff] %v3599_v13 }
 0x46a   : > { %4027 = vst [vmem:[#allocation17 + $0x28] sm:$0xff] %v8424_v10 }
 0x46b PF: > { %s4506_s30 = sshll.u32 %s6040_s23, 12  ;;  %s4052_s19 = sshll.u32 %s6221_s24, 4  ;;  %s7972_s19 = int_to_ptr.vmem [resolvable:$true] %s4052_s19 }
 0x46c   : > { %s7969_s28 = scalar_lea.hbm %s8051_s14, %s4506_s30  ;;  %s7976_s17 = scalar_lea.sflag [#allocation12], %s408_s18 }
 0x46d   : > { %s5783_s20 = scalar_lea.vmem %s7972_s19, 4096  ;;  %p8435_p4 = scmp.ne.s32.totalorder %s8203_s29, 0 }
 0x46e   : > { %p5784_p13 = scmp.ne.s32.totalorder %s7972_s19, %s5783_s20  ;;  %s5917_s22 = smov [#allocation16]  }
 0x46f   : > { %s5787_s25 = sshll.u32 %s5917_s22, 4  ;;  %s5788_s25 = int_to_ptr.vmem [resolvable:$false] %s5787_s25 }
 0x470   : > { %p5785_p5 = pnand %p5784_p13, %p8435_p4  ;;  %s5789_s21 = scalar_lea.vmem %s5788_s25, 8192 }
 0x471   : > { %p5790_p11 = scmp.lt.s32.totalorder %s7972_s19, %s5788_s25  ;;  %p5791_p9 = scmp.lt.s32.totalorder %s5789_s21, %s5783_s20 }
 0x472   : > { %p5786_p8 = pneg %p5785_p5 }
 0x473   : > { %p5792_p12 = por %p5791_p9, %p5790_p11 }
 0x475   : > { %p5793_p0 = pnand %p5792_p12, %p5786_p8 }
 0x477   : > { %5796 = shalt.err (!%p5793_p0)
}
 0x478   : > { %s5797_s18 = scalar_lea.hbm %s7969_s28, 4096  ;;  %s5801_s15 = scalar_lea.hbm %s8051_s14, 16384 }
 0x479   : > { %p5798_p2 = scmp.ne.s32.totalorder %s7969_s28, %s5797_s18  ;;  %p5802_p7 = scmp.lt.u32.totalorder %s7969_s28, %s8051_s14 }
 0x47a   : > { %p5803_p10 = scmp.lt.u32.totalorder %s5801_s15, %s5797_s18  ;;  %p5805_p13 = scmp.lt.u32.totalorder %s5797_s18, %s7969_s28 }
 0x47b   : > { %p5799_p3 = pnand %p5798_p2, %p8435_p4 }
 0x47c   : > { %p5804_p1 = por %p5803_p10, %p5802_p7 }
 0x47d   : > { %p5800_p6 = pneg %p5799_p3 }
 0x47e   : > { %p5806_p5 = por %p5805_p13, %p5804_p1 }
 0x480   : > { %p5807_p8 = pnand %p5806_p5, %p5800_p6 }
 0x482   : > { %5810 = shalt.err (!%p5807_p8)
}
 0x483   : > { %s5918_s2 = smov 128   ;;  %s5919_s30 = smov 8  }
 0x484   : > { %4644 = dma.vmem_to_hbm [thread:$0]  (%p8435_p4), %s7972_s19, 4096, %s7969_s28, %s7976_s17, %s5918_s2, %s5918_s2, %s5919_s30  }
 0x485   : > { %s5920_s27 = smov [#allocation17]   ;;  %p8436_p9 = scmp.eq.s32.totalorder %s6040_s23, 3 }
 0x486   : > { %s4065_s26 = sshll.u32 %s5920_s27, 4  ;;  %s4066_s26 = int_to_ptr.vmem [resolvable:$true] %s4065_s26 }
 0x487   : > { %s5811_s20 = scalar_lea.vmem %s4066_s26, 2048  ;;  %p5818_p2 = scmp.lt.s32.totalorder %s4066_s26, %s4066_s26 }
 0x488   : > { %p5812_p11 = scmp.ne.s32.totalorder %s4066_s26, %s5811_s20  ;;  %p5819_p3 = scmp.lt.s32.totalorder %s5811_s20, %s5811_s20 }
 0x48a   : > { %p5813_p12 = pnand %p5812_p11, %p8436_p9  ;;  %p5820_p6 = por %p5819_p3, %p5818_p2 }
 0x48c   : > { %p5814_p0 = pneg %p5813_p12 }
 0x48e   : > { %p5821_p7 = pnand %p5820_p6, %p5814_p0 }
 0x490   : > { %5824 = shalt.err (!%p5821_p7)
}
 0x491   : > { %s8437_s21 = sld [smem:[#allocation120_spill]]  ;;  %p8439_p10 = pmov %p8436_p9 }
 0x497   : > { %s8438_s18 = smov %s8437_s21  ;;  %s5825_s24 = scalar_lea.hbm %s8437_s21, 2048 }
 0x498   : > { %p5826_p4 = scmp.ne.s32.totalorder %s8438_s18, %s5825_s24  ;;  %p5831_p5 = scmp.lt.u32.totalorder %s5825_s24, %s8438_s18 }
 0x49a   : > { %p5827_p1 = pnand %p5826_p4, %p8439_p10 }
 0x49c   : > { %p5828_p13 = pneg %p5827_p1 }
 0x49e   : > { %p5833_p8 = pnand %p5831_p5, %p5828_p13 }
 0x4a0   : > { %5836 = shalt.err (!%p5833_p8)
}
 0x4a1   : > { %p8440_p11 = pmov %p8436_p9 }
 0x4a3   : > { %4646 = dma.vmem_to_hbm [thread:$0]  (%p8440_p11), %s4066_s26, 2048, %s8438_s18, [#allocation18], %s5918_s2, %s5918_s2, %s5919_s30  }
 0x4a4   : > { %5876 = dma.done.wait (%p8436_p9), [#allocation18], 2048   ;;  %p8441_p12 = pmov %p8436_p9 }
 0x4a6   : > { %5878 = vsyncadd (%p8441_p12), [#allocation18], 4294965248 }
 0x4a7 PF: > { %s8442_s0 = sld [smem:[#allocation34_spill]]  ;;  %s8443_s16 = sld [smem:[#allocation32_spill]] }
 0x4a8   : > { %s8444_s27 = sld [smem:[#allocation37_spill]] }
 0x4ad   : > { %p4673_p0 = scmp.ge.s32.totalorder %s8442_s0, 2  ;;  %s4084_s20 = sand.u32 1, %s8443_s16  }
 0x4ae   : > { %p8445_p2 = scmp.ne.s32.totalorder %s8444_s27, 0  ;;  %s4085_s22 = scalar_lea.sflag [#allocation12], %s4084_s20 }
 0x4b0   : > { %p4661_p3 = pnand %p4673_p0, %p8445_p2 }
 0x4b2   : > { %5880 = dma.done.wait (!%p4661_p3), %s4085_s22, 4096  }
 0x4b3   : > { %5882 = vsyncadd (!%p4661_p3), %s4085_s22, 4294963200  ;;  %s8446_s24 = sld [smem:[#allocation35_spill]]  ;;  %s8447_s25 = sld [smem:[#allocation33_spill]] }
 0x4b4   : > { %s8448_s22 = sld [smem:[#allocation36_spill]]  ;;  %s8449_s21 = smov %s5889_s1 }
 0x4b9   : > { %p41_p6 = scmp.ge.s32.totalorder %s8446_s24, 6   ;;  %s8450_s1 = smov %s8447_s25 }
 0x4bb   :  { %43 = sbr.rel (!%p41_p6) target bundleno = 39 (0x27), region = 150 }
 0x4c2   :  { %4090 = vsyncpa [#allocation11], 1 }
 0x4c3   :  { %4092 = vsyncpa [#allocation11 + $0x1], 1 }
 0x4c4   :  { %4093 = vsyncpa [#allocation14], 1 }
 0x4c5   :  { %4094 = vsyncpa [#allocation12], 1 }
 0x4c6   :  { %4096 = vsyncpa [#allocation12 + $0x1], 1 }
 0x4c7   :  { %4097 = vsyncpa [#allocation18], 1 }
 0x4c8   :  { %4098 = vsyncmov [#allocation5] }
 0x4cb   :  { %s4099_s23 = vpop.sfrf %4098 }
 0x4cc   :  { %p4503_p7 = scmp.ne.s32.totalorder %s4099_s23, 0 }
 0x4ce   :  { %4103 = shalt.err (%p4503_p7)  }
 0x4cf   :  { %4105 = vsyncmov [#allocation5 + $0x1] }
 0x4d2   :  { %s4106_s2 = vpop.sfrf %4105 }
 0x4d3   :  { %p4504_p4 = scmp.ne.s32.totalorder %s4106_s2, 0 }
 0x4d5   :  { %4110 = shalt.err (%p4504_p4)  }

</bundles_post_ra>
